<compile_context>
chip_gen: v7x
topology: tpu7x:2x2x1
jax: 0.10.0
libtpu: 0.0.40
codegen_flags: <defaults>
</compile_context>

<pallas_src>
import functools

import jax
import jax.numpy as jnp
from jax.experimental import pallas as pl
from jax.experimental.pallas import tpu as pltpu

_LN_EPS = 1e-5  # PyTorch nn.LayerNorm default


# ------------------------------ fused DiT kernel ---------------------------- #

def _dit_kernel(tok_ref, cond_ref,
                ln1_g, ln1_b, wqkv, bqkv, wo, bo,
                ln2_g, ln2_b, wq_c, bq_c, wkv_c, bkv_c, wo_c, bo_c,
                ln3_g, ln3_b, w1, b1, w2, b2,
                lnf_g, lnf_b, out_w, out_b,
                o_ref, h_ref, *, num_heads, n_real):
    """One grid step = one batch element x one transformer layer.

    grid = (B, L); the residual stream h_ref (VMEM f32 scratch) persists
    across the layer axis and is (re)initialized from tok_ref at l == 0.
    The final LN + output projection runs at l == L - 1 and is the only
    HBM writeback.
    """
    l = pl.program_id(1)
    n_tok, dim = h_ref.shape
    dh = dim // num_heads
    scale = 1.0 / (dh ** 0.5)

    # ---- layer 0: load this batch element's tokens into the residual stream.
    # Padded token rows are zero; they are masked as keys below and dropped
    # after the kernel, so they never leak into real tokens.
    @pl.when(l == 0)
    def _():
        h_ref[...] = tok_ref[0].astype(jnp.float32)

    def layer_norm(x, g_ref, b_ref):
        mu = jnp.mean(x, axis=-1, keepdims=True)
        var = jnp.mean(jnp.square(x - mu), axis=-1, keepdims=True)
        return (x - mu) * jax.lax.rsqrt(var + _LN_EPS) * g_ref[0] + b_ref[0]

    # Key-padding mask for self-attention: identical for all heads -> hoisted.
    self_mask = None
    if n_real < n_tok:
        kidx = jax.lax.broadcasted_iota(jnp.int32, (n_tok, n_tok), 1)
        self_mask = kidx < n_real

    def mha(q, k, v, mask):
        """q pre-scaled (Nq, D); k/v (Nk, D).  Returns lane-dense (Nq, D)."""
        outs = []
        for hh in range(num_heads):
            sl = slice(hh * dh, (hh + 1) * dh)
            s = jax.lax.dot_general(q[:, sl], k[:, sl],
                                    (((1,), (1,)), ((), ())),
                                    preferred_element_type=jnp.float32)
            if mask is not None:
                s = jnp.where(mask, s, -1e30)
            m = jnp.max(s, axis=-1, keepdims=True)
            p = jnp.exp(s - m)
            inv = pl.reciprocal(jnp.sum(p, axis=-1, keepdims=True), approx=True)
            # reciprocal applied AFTER the PV matmul: (Nq, Dh) scaling, not (Nq, Nk)
            outs.append(jnp.dot(p, v[:, sl],
                                preferred_element_type=jnp.float32) * inv)
        return jnp.concatenate(outs, axis=-1)

    h = h_ref[...]                                              # (N, D) f32

    # ---- self-attention: fused LN + QKV (one N=3D matmul) + attn + Wo + res
    xn = layer_norm(h, ln1_g, ln1_b).astype(jnp.bfloat16)
    qkv = jnp.dot(xn, wqkv[0], preferred_element_type=jnp.float32) + bqkv[0]
    q = qkv[:, :dim] * scale
    k = qkv[:, dim:2 * dim]
    v = qkv[:, 2 * dim:]
    attn = mha(q, k, v, self_mask).astype(jnp.bfloat16)
    h = h + jnp.dot(attn, wo[0], preferred_element_type=jnp.float32) + bo[0]

    # ---- cross-attention to AV/text conditioning tokens ----
    # TODO(synk): cross_attn_mask handling omitted (mask is None in the test).
    xn = layer_norm(h, ln2_g, ln2_b).astype(jnp.bfloat16)
    qc = (jnp.dot(xn, wq_c[0], preferred_element_type=jnp.float32)
          + bq_c[0]) * scale
    kvc = jnp.dot(cond_ref[0], wkv_c[0],
                  preferred_element_type=jnp.float32) + bkv_c[0]     # (S, 2D)
    attn = mha(qc, kvc[:, :dim], kvc[:, dim:], None).astype(jnp.bfloat16)
    h = h + jnp.dot(attn, wo_c[0], preferred_element_type=jnp.float32) + bo_c[0]

    # ---- feed-forward: LN + GELU MLP + residual ----
    xn = layer_norm(h, ln3_g, ln3_b).astype(jnp.bfloat16)
    hid = jnp.dot(xn, w1[0], preferred_element_type=jnp.float32) + b1[0]
    # TODO(synk): torch nn.GELU defaults to exact erf; tanh approximation used.
    hid = jax.nn.gelu(hid, approximate=True).astype(jnp.bfloat16)
    h = h + jnp.dot(hid, w2[0], preferred_element_type=jnp.float32) + b2[0]

    h_ref[...] = h

    # ---- last layer: fused final LN + output projection, single writeback ----
    @pl.when(l == pl.num_programs(1) - 1)
    def _():
        xn = layer_norm(h, lnf_g, lnf_b).astype(jnp.bfloat16)
        o_ref[0] = (jnp.dot(xn, out_w[...], preferred_element_type=jnp.float32)
                    + out_b[...]).astype(o_ref.dtype)


# --------------------------- model forward (glue) --------------------------- #

def dit_forward(params, cfg, x, t, cond):
    """x: (B, C, T), t: (B,), cond: (B, S, cond_dim) -> (B, C, T)."""
    B, C, T = x.shape
    D = cfg["embed_dim"]
    H = cfg["num_heads"]
    L = cfg["depth"]
    p = params

    # Timestep Fourier features + MLP (tiny: plain JAX, no kernel launch).
    ang = 2.0 * jnp.pi * t[:, None] * p["t_freqs"][None, :]
    t_feat = jnp.concatenate([jnp.cos(ang), jnp.sin(ang)], axis=-1)
    t_emb = jax.nn.silu(t_feat @ p["t_w1"] + p["t_b1"])
    t_emb = t_emb @ p["t_w2"] + p["t_b2"]                          # (B, D)

    # Input projection (conv1d k=1 == per-token linear) + cond token projection:
    # tiny matmuls, kept as XLA glue to avoid extra pallas_call launches.
    x_tok = jnp.einsum("bct,cd->btd", x, p["in_w"]) + p["in_b"]    # (B, T, D)
    cond_tok = (cond @ p["cond_w"] + p["cond_b"]).astype(jnp.bfloat16)

    # Prepend timestep token; pad token axis to a multiple of 16 (bf16 packing).
    n_real = T + 1
    N = ((n_real + 15) // 16) * 16
    tokens = jnp.concatenate(
        [t_emb[:, None, :], x_tok,
         jnp.zeros((B, N - n_real, D), x_tok.dtype)], axis=1)      # (B, N, D)
    tokens = tokens.astype(jnp.bfloat16)

    bcast = lambda a: pl.BlockSpec(a.shape, lambda b, l, _nd=a.ndim: (0,) * _nd)
    per_b = lambda a: pl.BlockSpec((1,) + a.shape[1:], lambda b, l: (b, 0, 0))
    per_l = lambda a: pl.BlockSpec((1,) + a.shape[1:], lambda b, l: (l, 0, 0))

    inputs = [
        tokens, cond_tok,
        p["ln1_g"], p["ln1_b"], p["wqkv"], p["bqkv"], p["wo"], p["bo"],
        p["ln2_g"], p["ln2_b"], p["wq_c"], p["bq_c"], p["wkv_c"], p["bkv_c"],
        p["wo_c"], p["bo_c"],
        p["ln3_g"], p["ln3_b"], p["w1"], p["b1"], p["w2"], p["b2"],
        p["lnf_g"], p["lnf_b"], p["out_w"], p["out_b"],
    ]
    in_specs = [per_b(tokens), per_b(cond_tok)]
    in_specs += [per_l(a) for a in inputs[2:22]]     # stacked per-layer weights
    in_specs += [bcast(a) for a in inputs[22:]]      # final LN / output proj

    out = pl.pallas_call(
        functools.partial(_dit_kernel, num_heads=H, n_real=n_real),
        grid=(B, L),
        in_specs=in_specs,
        out_specs=pl.BlockSpec((1, N, C), lambda b, l: (b, 0, 0)),
        out_shape=jax.ShapeDtypeStruct((B, N, C), jnp.float32),
        scratch_shapes=[pltpu.VMEM((N, D), jnp.float32)],
        compiler_params=pltpu.CompilerParams(
            dimension_semantics=("parallel", "arbitrary"),
            vmem_limit_bytes=48 * 1024 * 1024),
    )(*inputs)
    # TODO(synk): at production D (1024+), tile the D / 4D feature dims of the
    # MLP / QKV matmuls with an f32 VMEM accumulator instead of loading full
    # weight slabs per layer (needed for v7x's 64 MiB VMEM).

    out = out[:, 1:n_real, :]                 # drop timestep token + padding
    return jnp.transpose(out, (0, 2, 1))      # back to (B, C, T)


def avclip_dit_wrapper_forward(params, cfg, x, t, cross_attn_cond,
                               cfg_scale=1.0, batch_cfg=True):
    """Mirrors AVClipControlledDiTWrapper.forward with batch_cfg=True."""
    assert batch_cfg, "batch_cfg must be True for DiTWrapper"
    # TODO(synk): rescale_cfg / scale_phi / asym_cfg CFG variants not implemented.
    # TODO(synk): prepend_cond / prepend_cond_mask / global_cond omitted (None).
    if cfg_scale != 1.0:
        xb = jnp.concatenate([x, x], axis=0)
        tb = jnp.concatenate([t, t], axis=0)
        cb = jnp.concatenate(
            [cross_attn_cond, jnp.zeros_like(cross_attn_cond)], axis=0)
        out = dit_forward(params, cfg, xb, tb, cb)
        cond_out, uncond_out = jnp.split(out, 2, axis=0)
        # CFG combine is tiny (B, C, T): plain JAX (kernel launch > work).
        return uncond_out + (cond_out - uncond_out) * cfg_scale
    return dit_forward(params, cfg, x, t, cross_attn_cond)


# ------------------------------- parameters --------------------------------- #

def init_params(key, cfg):
    D = cfg["embed_dim"]
    C = cfg["io_channels"]
    cd = cfg["cond_dim"]
    fd = cfg["fourier_dim"]
    L = cfg["depth"]
    hidden = 4 * D

    keys = iter(jax.random.split(key, 32))

    def nrm(shape, scale=0.02):
        return scale * jax.random.normal(next(keys), shape, jnp.float32)

    def ones(shape):
        return jnp.ones(shape, jnp.float32)

    def zeros(shape):
        return jnp.zeros(shape, jnp.float32)

    p = {
        # tiny embedding params used in plain-JAX glue
        "t_freqs": nrm((fd // 2,), 1.0),
        "t_w1": nrm((fd, D)), "t_b1": zeros((D,)),
        "t_w2": nrm((D, D)), "t_b2": zeros((D,)),
        "in_w": nrm((C, D)), "in_b": zeros((D,)),
        "cond_w": nrm((cd, D)), "cond_b": zeros((D,)),
        # final LN + output projection (consumed inside the fused kernel)
        "lnf_g": ones((1, 1, D)), "lnf_b": zeros((1, 1, D)),
        "out_w": nrm((D, C)), "out_b": zeros((1, C)),
        # stacked per-layer weights (leading axis = layer); QKV and KV fused
        "ln1_g": ones((L, 1, D)), "ln1_b": zeros((L, 1, D)),
        "wqkv": nrm((L, D, 3 * D)), "bqkv": zeros((L, 1, 3 * D)),
        "wo": nrm((L, D, D)), "bo": zeros((L, 1, D)),
        "ln2_g": ones((L, 1, D)), "ln2_b": zeros((L, 1, D)),
        "wq_c": nrm((L, D, D)), "bq_c": zeros((L, 1, D)),
        "wkv_c": nrm((L, D, 2 * D)), "bkv_c": zeros((L, 1, 2 * D)),
        "wo_c": nrm((L, D, D)), "bo_c": zeros((L, 1, D)),
        "ln3_g": ones((L, 1, D)), "ln3_b": zeros((L, 1, D)),
        "w1": nrm((L, D, hidden)), "b1": zeros((L, 1, hidden)),
        "w2": nrm((L, hidden, D)), "b2": zeros((L, 1, D)),
    }

    # AVClipControlledDiTWrapper.__init__: `for param in model.parameters(): param *= 0.5`
    p = jax.tree_util.tree_map(lambda a: a * 0.5, p)

    # MXU weights to bf16 (f32 accumulation in-kernel); biases / LN params f32.
    for k in ("wqkv", "wo", "wq_c", "wkv_c", "wo_c", "w1", "w2", "out_w"):
        p[k] = p[k].astype(jnp.bfloat16)
    return p


# ----------------------------------- main ----------------------------------- #

if __name__ == "__main__":
    cfg = dict(io_channels=4, embed_dim=64, depth=2, num_heads=4,
               cond_dim=32, fourier_dim=16)

    B, C, T, S = 2, 4, 16, 8
    key = jax.random.PRNGKey(0)
    kx, kt, kc, kp = jax.random.split(key, 4)

    x = jax.random.normal(kx, (B, C, T), jnp.float32)             # audio latents (NCL)
    t = jax.random.uniform(kt, (B,), jnp.float32)                  # diffusion timestep
    cond = jax.random.normal(kc, (B, S, cfg["cond_dim"]), jnp.float32)  # cross-attn cond

    params = init_params(kp, cfg)

    @jax.jit
    def run(p, x_, t_, c_):
        return avclip_dit_wrapper_forward(p, cfg, x_, t_, c_,
                                          cfg_scale=3.0, batch_cfg=True)

    out = jax.block_until_ready(run(params, x, t, cond))

    assert out.shape == (B, C, T), out.shape
    assert bool(jnp.all(jnp.isfinite(out)))
    print("KERNEL_OK")
</pallas_src>

<mosaic_0001>
module attributes {stable_mosaic.version = 11 : i64} {
  func.func @_dit_kernel(%arg0: i32, %arg1: i32, %arg2: memref<1x32x64xbf16, #tpu.memory_space<vmem>>, %arg3: memref<1x8x64xbf16, #tpu.memory_space<vmem>>, %arg4: memref<1x1x64xf32, #tpu.memory_space<vmem>>, %arg5: memref<1x1x64xf32, #tpu.memory_space<vmem>>, %arg6: memref<1x64x192xbf16, #tpu.memory_space<vmem>>, %arg7: memref<1x1x192xf32, #tpu.memory_space<vmem>>, %arg8: memref<1x64x64xbf16, #tpu.memory_space<vmem>>, %arg9: memref<1x1x64xf32, #tpu.memory_space<vmem>>, %arg10: memref<1x1x64xf32, #tpu.memory_space<vmem>>, %arg11: memref<1x1x64xf32, #tpu.memory_space<vmem>>, %arg12: memref<1x64x64xbf16, #tpu.memory_space<vmem>>, %arg13: memref<1x1x64xf32, #tpu.memory_space<vmem>>, %arg14: memref<1x64x128xbf16, #tpu.memory_space<vmem>>, %arg15: memref<1x1x128xf32, #tpu.memory_space<vmem>>, %arg16: memref<1x64x64xbf16, #tpu.memory_space<vmem>>, %arg17: memref<1x1x64xf32, #tpu.memory_space<vmem>>, %arg18: memref<1x1x64xf32, #tpu.memory_space<vmem>>, %arg19: memref<1x1x64xf32, #tpu.memory_space<vmem>>, %arg20: memref<1x64x256xbf16, #tpu.memory_space<vmem>>, %arg21: memref<1x1x256xf32, #tpu.memory_space<vmem>>, %arg22: memref<1x256x64xbf16, #tpu.memory_space<vmem>>, %arg23: memref<1x1x64xf32, #tpu.memory_space<vmem>>, %arg24: memref<1x1x64xf32, #tpu.memory_space<vmem>>, %arg25: memref<1x1x64xf32, #tpu.memory_space<vmem>>, %arg26: memref<64x4xbf16, #tpu.memory_space<vmem>>, %arg27: memref<1x4xf32, #tpu.memory_space<vmem>>, %arg28: memref<1x32x4xf32, #tpu.memory_space<vmem>>, %arg29: memref<32x64xf32, #tpu.memory_space<vmem>>) attributes {dimension_semantics = [#tpu.dimension_semantics<parallel>, #tpu.dimension_semantics<arbitrary>], iteration_bounds = array<i64: 4, 2>, scalar_prefetch = 0 : i64, scratch_operands = 1 : i64, tpu.core_type = #tpu.core_type<tc>, window_params = [{transform_indices = @transform_0, window_bounds = array<i64: 1, 32, 64>}, {transform_indices = @transform_1, window_bounds = array<i64: 1, 8, 64>}, {transform_indices = @transform_2, window_bounds = array<i64: 1, 1, 64>}, {transform_indices = @transform_3, window_bounds = array<i64: 1, 1, 64>}, {transform_indices = @transform_4, window_bounds = array<i64: 1, 64, 192>}, {transform_indices = @transform_5, window_bounds = array<i64: 1, 1, 192>}, {transform_indices = @transform_6, window_bounds = array<i64: 1, 64, 64>}, {transform_indices = @transform_7, window_bounds = array<i64: 1, 1, 64>}, {transform_indices = @transform_8, window_bounds = array<i64: 1, 1, 64>}, {transform_indices = @transform_9, window_bounds = array<i64: 1, 1, 64>}, {transform_indices = @transform_10, window_bounds = array<i64: 1, 64, 64>}, {transform_indices = @transform_11, window_bounds = array<i64: 1, 1, 64>}, {transform_indices = @transform_12, window_bounds = array<i64: 1, 64, 128>}, {transform_indices = @transform_13, window_bounds = array<i64: 1, 1, 128>}, {transform_indices = @transform_14, window_bounds = array<i64: 1, 64, 64>}, {transform_indices = @transform_15, window_bounds = array<i64: 1, 1, 64>}, {transform_indices = @transform_16, window_bounds = array<i64: 1, 1, 64>}, {transform_indices = @transform_17, window_bounds = array<i64: 1, 1, 64>}, {transform_indices = @transform_18, window_bounds = array<i64: 1, 64, 256>}, {transform_indices = @transform_19, window_bounds = array<i64: 1, 1, 256>}, {transform_indices = @transform_20, window_bounds = array<i64: 1, 256, 64>}, {transform_indices = @transform_21, window_bounds = array<i64: 1, 1, 64>}, {pipeline_mode = #tpu.pipeline_mode<synchronous>, transform_indices = @transform_22, window_bounds = array<i64: 1, 1, 64>}, {pipeline_mode = #tpu.pipeline_mode<synchronous>, transform_indices = @transform_23, window_bounds = array<i64: 1, 1, 64>}, {pipeline_mode = #tpu.pipeline_mode<synchronous>, transform_indices = @transform_24, window_bounds = array<i64: 64, 4>}, {pipeline_mode = #tpu.pipeline_mode<synchronous>, transform_indices = @transform_25, window_bounds = array<i64: 1, 4>}, {transform_indices = @transform_26, window_bounds = array<i64: 1, 32, 4>}]} {
    %c0_i32 = arith.constant 0 : i32
    %0 = arith.cmpi eq, %arg1, %c0_i32 : i32
    %1 = arith.extui %0 : i1 to i32
    %c0_i32_0 = arith.constant 0 : i32
    %2 = arith.cmpi ne, %1, %c0_i32_0 : i32
    scf.if %2 {
      %c0_131 = arith.constant 0 : index
      %c0_132 = arith.constant 0 : index
      %c0_133 = arith.constant 0 : index
      %301 = vector.load %arg2[%c0_131, %c0_132, %c0_133] : memref<1x32x64xbf16, #tpu.memory_space<vmem>>, vector<1x32x64xbf16>
      %302 = vector.shape_cast %301 : vector<1x32x64xbf16> to vector<32x64xbf16>
      %303 = arith.extf %302 : vector<32x64xbf16> to vector<32x64xf32>
      %c0_134 = arith.constant 0 : index
      %c0_135 = arith.constant 0 : index
      %304 = vector.load %arg29[%c0_134, %c0_135] : memref<32x64xf32, #tpu.memory_space<vmem>>, vector<32x64xf32>
      tpu.vector_store %arg29[%c0_134, %c0_135], %303 {strides = array<i32>} : memref<32x64xf32, #tpu.memory_space<vmem>>, vector<32x64xf32>,
    } else {
    }
    %3 = tpu.iota {dimensions = array<i32: 1>} : vector<32x32xi32>
    %c17_i32 = arith.constant 17 : i32
    %4 = vector.broadcast %c17_i32 : i32 to vector<32x32xi32>
    %5 = arith.cmpi slt, %3, %4 : vector<32x32xi32>
    %c0 = arith.constant 0 : index
    %c0_1 = arith.constant 0 : index
    %6 = vector.load %arg29[%c0, %c0_1] : memref<32x64xf32, #tpu.memory_space<vmem>>, vector<32x64xf32>
    %cst = arith.constant dense<0.000000e+00> : vector<32xf32>
    %7 = vector.multi_reduction <add>, %6, %cst [1] : vector<32x64xf32> to vector<32xf32>
    %8 = vector.shape_cast %7 : vector<32xf32> to vector<32x1xf32>
    %cst_2 = arith.constant 6.400000e+01 : f32
    %9 = vector.broadcast %cst_2 : f32 to vector<32x1xf32>
    %10 = arith.divf %8, %9 : vector<32x1xf32>
    %11 = vector.broadcast %10 : vector<32x1xf32> to vector<32x64xf32>
    %12 = arith.subf %6, %11 : vector<32x64xf32>
    %13 = arith.mulf %12, %12 : vector<32x64xf32>
    %cst_3 = arith.constant dense<0.000000e+00> : vector<32xf32>
    %14 = vector.multi_reduction <add>, %13, %cst_3 [1] : vector<32x64xf32> to vector<32xf32>
    %15 = vector.shape_cast %14 : vector<32xf32> to vector<32x1xf32>
    %cst_4 = arith.constant 6.400000e+01 : f32
    %16 = vector.broadcast %cst_4 : f32 to vector<32x1xf32>
    %17 = arith.divf %15, %16 : vector<32x1xf32>
    %18 = vector.broadcast %10 : vector<32x1xf32> to vector<32x64xf32>
    %19 = arith.subf %6, %18 : vector<32x64xf32>
    %cst_5 = arith.constant 9.99999974E-6 : f32
    %20 = vector.broadcast %cst_5 : f32 to vector<32x1xf32>
    %21 = arith.addf %17, %20 : vector<32x1xf32>
    %22 = math.rsqrt %21 : vector<32x1xf32>
    %23 = vector.broadcast %22 : vector<32x1xf32> to vector<32x64xf32>
    %24 = arith.mulf %19, %23 : vector<32x64xf32>
    %c0_6 = arith.constant 0 : index
    %c0_7 = arith.constant 0 : index
    %c0_8 = arith.constant 0 : index
    %25 = vector.load %arg4[%c0_6, %c0_7, %c0_8] : memref<1x1x64xf32, #tpu.memory_space<vmem>>, vector<1x1x64xf32>
    %26 = vector.shape_cast %25 : vector<1x1x64xf32> to vector<1x64xf32>
    %27 = vector.broadcast %26 : vector<1x64xf32> to vector<32x64xf32>
    %28 = arith.mulf %24, %27 : vector<32x64xf32>
    %c0_9 = arith.constant 0 : index
    %c0_10 = arith.constant 0 : index
    %c0_11 = arith.constant 0 : index
    %29 = vector.load %arg5[%c0_9, %c0_10, %c0_11] : memref<1x1x64xf32, #tpu.memory_space<vmem>>, vector<1x1x64xf32>
    %30 = vector.shape_cast %29 : vector<1x1x64xf32> to vector<1x64xf32>
    %31 = vector.broadcast %30 : vector<1x64xf32> to vector<32x64xf32>
    %32 = arith.addf %28, %31 : vector<32x64xf32>
    %33 = arith.truncf %32 : vector<32x64xf32> to vector<32x64xbf16>
    %c0_12 = arith.constant 0 : index
    %c0_13 = arith.constant 0 : index
    %c0_14 = arith.constant 0 : index
    %34 = vector.load %arg6[%c0_12, %c0_13, %c0_14] : memref<1x64x192xbf16, #tpu.memory_space<vmem>>, vector<1x64x192xbf16>
    %35 = vector.shape_cast %34 : vector<1x64x192xbf16> to vector<64x192xbf16>
    %cst_15 = arith.constant dense<0.000000e+00> : vector<32x192xf32>
    %36 = tpu.matmul %33, %35, %cst_15 {dimension_numbers = #tpu.dot_dimension_numbers<[1], [0], [0], [1], [0, 0, 1, 1], [], []>} : vector<32x64xbf16>, vector<64x192xbf16>, vector<32x192xf32> -> vector<32x192xf32>
    %c0_16 = arith.constant 0 : index
    %c0_17 = arith.constant 0 : index
    %c0_18 = arith.constant 0 : index
    %37 = vector.load %arg7[%c0_16, %c0_17, %c0_18] : memref<1x1x192xf32, #tpu.memory_space<vmem>>, vector<1x1x192xf32>
    %38 = vector.shape_cast %37 : vector<1x1x192xf32> to vector<1x192xf32>
    %39 = vector.broadcast %38 : vector<1x192xf32> to vector<32x192xf32>
    %40 = arith.addf %36, %39 : vector<32x192xf32>
    %41 = vector.extract_strided_slice %40 {offsets = [0, 0], sizes = [32, 64], strides = [1, 1]} : vector<32x192xf32> to vector<32x64xf32>
    %cst_19 = arith.constant 2.500000e-01 : f32
    %42 = vector.broadcast %cst_19 : f32 to vector<32x64xf32>
    %43 = arith.mulf %41, %42 : vector<32x64xf32>
    %44 = vector.extract_strided_slice %40 {offsets = [0, 64], sizes = [32, 64], strides = [1, 1]} : vector<32x192xf32> to vector<32x64xf32>
    %45 = vector.extract_strided_slice %40 {offsets = [0, 128], sizes = [32, 64], strides = [1, 1]} : vector<32x192xf32> to vector<32x64xf32>
    %46 = vector.extract_strided_slice %43 {offsets = [0, 0], sizes = [32, 16], strides = [1, 1]} : vector<32x64xf32> to vector<32x16xf32>
    %47 = vector.extract_strided_slice %44 {offsets = [0, 0], sizes = [32, 16], strides = [1, 1]} : vector<32x64xf32> to vector<32x16xf32>
    %cst_20 = arith.constant dense<0.000000e+00> : vector<32x32xf32>
    %48 = tpu.matmul %46, %47, %cst_20 {dimension_numbers = #tpu.dot_dimension_numbers<[1], [1], [0], [0], [0, 0, 1, 0], [], []>} : vector<32x16xf32>, vector<32x16xf32>, vector<32x32xf32> -> vector<32x32xf32>
    %cst_21 = arith.constant -1.000000e+30 : f32
    %49 = vector.broadcast %cst_21 : f32 to vector<32x32xf32>
    %50 = arith.select %5, %48, %49 : vector<32x32xi1>, vector<32x32xf32>
    %cst_22 = arith.constant dense<0xFF800000> : vector<32xf32>
    %51 = vector.multi_reduction <maximumf>, %50, %cst_22 [1] : vector<32x32xf32> to vector<32xf32>
    %52 = vector.shape_cast %51 : vector<32xf32> to vector<32x1xf32>
    %53 = vector.broadcast %52 : vector<32x1xf32> to vector<32x32xf32>
    %54 = arith.subf %50, %53 : vector<32x32xf32>
    %55 = math.exp %54 : vector<32x32xf32>
    %cst_23 = arith.constant dense<0.000000e+00> : vector<32xf32>
    %56 = vector.multi_reduction <add>, %55, %cst_23 [1] : vector<32x32xf32> to vector<32xf32>
    %57 = vector.shape_cast %56 : vector<32xf32> to vector<32x1xf32>
    %58 = tpu.reciprocal %57 {approx = true} : vector<32x1xf32> -> vector<32x1xf32>
    %59 = vector.extract_strided_slice %45 {offsets = [0, 0], sizes = [32, 16], strides = [1, 1]} : vector<32x64xf32> to vector<32x16xf32>
    %cst_24 = arith.constant dense<0.000000e+00> : vector<32x16xf32>
    %60 = tpu.matmul %55, %59, %cst_24 {dimension_numbers = #tpu.dot_dimension_numbers<[1], [0], [0], [1], [0, 0, 1, 1], [], []>} : vector<32x32xf32>, vector<32x16xf32>, vector<32x16xf32> -> vector<32x16xf32>
    %61 = vector.broadcast %58 : vector<32x1xf32> to vector<32x16xf32>
    %62 = arith.mulf %60, %61 : vector<32x16xf32>
    %63 = vector.extract_strided_slice %43 {offsets = [0, 16], sizes = [32, 16], strides = [1, 1]} : vector<32x64xf32> to vector<32x16xf32>
    %64 = vector.extract_strided_slice %44 {offsets = [0, 16], sizes = [32, 16], strides = [1, 1]} : vector<32x64xf32> to vector<32x16xf32>
    %cst_25 = arith.constant dense<0.000000e+00> : vector<32x32xf32>
    %65 = tpu.matmul %63, %64, %cst_25 {dimension_numbers = #tpu.dot_dimension_numbers<[1], [1], [0], [0], [0, 0, 1, 0], [], []>} : vector<32x16xf32>, vector<32x16xf32>, vector<32x32xf32> -> vector<32x32xf32>
    %cst_26 = arith.constant -1.000000e+30 : f32
    %66 = vector.broadcast %cst_26 : f32 to vector<32x32xf32>
    %67 = arith.select %5, %65, %66 : vector<32x32xi1>, vector<32x32xf32>
    %cst_27 = arith.constant dense<0xFF800000> : vector<32xf32>
    %68 = vector.multi_reduction <maximumf>, %67, %cst_27 [1] : vector<32x32xf32> to vector<32xf32>
    %69 = vector.shape_cast %68 : vector<32xf32> to vector<32x1xf32>
    %70 = vector.broadcast %69 : vector<32x1xf32> to vector<32x32xf32>
    %71 = arith.subf %67, %70 : vector<32x32xf32>
    %72 = math.exp %71 : vector<32x32xf32>
    %cst_28 = arith.constant dense<0.000000e+00> : vector<32xf32>
    %73 = vector.multi_reduction <add>, %72, %cst_28 [1] : vector<32x32xf32> to vector<32xf32>
    %74 = vector.shape_cast %73 : vector<32xf32> to vector<32x1xf32>
    %75 = tpu.reciprocal %74 {approx = true} : vector<32x1xf32> -> vector<32x1xf32>
    %76 = vector.extract_strided_slice %45 {offsets = [0, 16], sizes = [32, 16], strides = [1, 1]} : vector<32x64xf32> to vector<32x16xf32>
    %cst_29 = arith.constant dense<0.000000e+00> : vector<32x16xf32>
    %77 = tpu.matmul %72, %76, %cst_29 {dimension_numbers = #tpu.dot_dimension_numbers<[1], [0], [0], [1], [0, 0, 1, 1], [], []>} : vector<32x32xf32>, vector<32x16xf32>, vector<32x16xf32> -> vector<32x16xf32>
    %78 = vector.broadcast %75 : vector<32x1xf32> to vector<32x16xf32>
    %79 = arith.mulf %77, %78 : vector<32x16xf32>
    %80 = vector.extract_strided_slice %43 {offsets = [0, 32], sizes = [32, 16], strides = [1, 1]} : vector<32x64xf32> to vector<32x16xf32>
    %81 = vector.extract_strided_slice %44 {offsets = [0, 32], sizes = [32, 16], strides = [1, 1]} : vector<32x64xf32> to vector<32x16xf32>
    %cst_30 = arith.constant dense<0.000000e+00> : vector<32x32xf32>
    %82 = tpu.matmul %80, %81, %cst_30 {dimension_numbers = #tpu.dot_dimension_numbers<[1], [1], [0], [0], [0, 0, 1, 0], [], []>} : vector<32x16xf32>, vector<32x16xf32>, vector<32x32xf32> -> vector<32x32xf32>
    %cst_31 = arith.constant -1.000000e+30 : f32
    %83 = vector.broadcast %cst_31 : f32 to vector<32x32xf32>
    %84 = arith.select %5, %82, %83 : vector<32x32xi1>, vector<32x32xf32>
    %cst_32 = arith.constant dense<0xFF800000> : vector<32xf32>
    %85 = vector.multi_reduction <maximumf>, %84, %cst_32 [1] : vector<32x32xf32> to vector<32xf32>
    %86 = vector.shape_cast %85 : vector<32xf32> to vector<32x1xf32>
    %87 = vector.broadcast %86 : vector<32x1xf32> to vector<32x32xf32>
    %88 = arith.subf %84, %87 : vector<32x32xf32>
    %89 = math.exp %88 : vector<32x32xf32>
    %cst_33 = arith.constant dense<0.000000e+00> : vector<32xf32>
    %90 = vector.multi_reduction <add>, %89, %cst_33 [1] : vector<32x32xf32> to vector<32xf32>
    %91 = vector.shape_cast %90 : vector<32xf32> to vector<32x1xf32>
    %92 = tpu.reciprocal %91 {approx = true} : vector<32x1xf32> -> vector<32x1xf32>
    %93 = vector.extract_strided_slice %45 {offsets = [0, 32], sizes = [32, 16], strides = [1, 1]} : vector<32x64xf32> to vector<32x16xf32>
    %cst_34 = arith.constant dense<0.000000e+00> : vector<32x16xf32>
    %94 = tpu.matmul %89, %93, %cst_34 {dimension_numbers = #tpu.dot_dimension_numbers<[1], [0], [0], [1], [0, 0, 1, 1], [], []>} : vector<32x32xf32>, vector<32x16xf32>, vector<32x16xf32> -> vector<32x16xf32>
    %95 = vector.broadcast %92 : vector<32x1xf32> to vector<32x16xf32>
    %96 = arith.mulf %94, %95 : vector<32x16xf32>
    %97 = vector.extract_strided_slice %43 {offsets = [0, 48], sizes = [32, 16], strides = [1, 1]} : vector<32x64xf32> to vector<32x16xf32>
    %98 = vector.extract_strided_slice %44 {offsets = [0, 48], sizes = [32, 16], strides = [1, 1]} : vector<32x64xf32> to vector<32x16xf32>
    %cst_35 = arith.constant dense<0.000000e+00> : vector<32x32xf32>
    %99 = tpu.matmul %97, %98, %cst_35 {dimension_numbers = #tpu.dot_dimension_numbers<[1], [1], [0], [0], [0, 0, 1, 0], [], []>} : vector<32x16xf32>, vector<32x16xf32>, vector<32x32xf32> -> vector<32x32xf32>
    %cst_36 = arith.constant -1.000000e+30 : f32
    %100 = vector.broadcast %cst_36 : f32 to vector<32x32xf32>
    %101 = arith.select %5, %99, %100 : vector<32x32xi1>, vector<32x32xf32>
    %cst_37 = arith.constant dense<0xFF800000> : vector<32xf32>
    %102 = vector.multi_reduction <maximumf>, %101, %cst_37 [1] : vector<32x32xf32> to vector<32xf32>
    %103 = vector.shape_cast %102 : vector<32xf32> to vector<32x1xf32>
    %104 = vector.broadcast %103 : vector<32x1xf32> to vector<32x32xf32>
    %105 = arith.subf %101, %104 : vector<32x32xf32>
    %106 = math.exp %105 : vector<32x32xf32>
    %cst_38 = arith.constant dense<0.000000e+00> : vector<32xf32>
    %107 = vector.multi_reduction <add>, %106, %cst_38 [1] : vector<32x32xf32> to vector<32xf32>
    %108 = vector.shape_cast %107 : vector<32xf32> to vector<32x1xf32>
    %109 = tpu.reciprocal %108 {approx = true} : vector<32x1xf32> -> vector<32x1xf32>
    %110 = vector.extract_strided_slice %45 {offsets = [0, 48], sizes = [32, 16], strides = [1, 1]} : vector<32x64xf32> to vector<32x16xf32>
    %cst_39 = arith.constant dense<0.000000e+00> : vector<32x16xf32>
    %111 = tpu.matmul %106, %110, %cst_39 {dimension_numbers = #tpu.dot_dimension_numbers<[1], [0], [0], [1], [0, 0, 1, 1], [], []>} : vector<32x32xf32>, vector<32x16xf32>, vector<32x16xf32> -> vector<32x16xf32>
    %112 = vector.broadcast %109 : vector<32x1xf32> to vector<32x16xf32>
    %113 = arith.mulf %111, %112 : vector<32x16xf32>
    %114 = tpu.concatenate %62, %79, %96, %113 in 1 : vector<32x16xf32>, vector<32x16xf32>, vector<32x16xf32>, vector<32x16xf32> -> vector<32x64xf32>
    %115 = arith.truncf %114 : vector<32x64xf32> to vector<32x64xbf16>
    %c0_40 = arith.constant 0 : index
    %c0_41 = arith.constant 0 : index
    %c0_42 = arith.constant 0 : index
    %116 = vector.load %arg8[%c0_40, %c0_41, %c0_42] : memref<1x64x64xbf16, #tpu.memory_space<vmem>>, vector<1x64x64xbf16>
    %117 = vector.shape_cast %116 : vector<1x64x64xbf16> to vector<64x64xbf16>
    %cst_43 = arith.constant dense<0.000000e+00> : vector<32x64xf32>
    %118 = tpu.matmul %115, %117, %cst_43 {dimension_numbers = #tpu.dot_dimension_numbers<[1], [0], [0], [1], [0, 0, 1, 1], [], []>} : vector<32x64xbf16>, vector<64x64xbf16>, vector<32x64xf32> -> vector<32x64xf32>
    %119 = arith.addf %6, %118 : vector<32x64xf32>
    %c0_44 = arith.constant 0 : index
    %c0_45 = arith.constant 0 : index
    %c0_46 = arith.constant 0 : index
    %120 = vector.load %arg9[%c0_44, %c0_45, %c0_46] : memref<1x1x64xf32, #tpu.memory_space<vmem>>, vector<1x1x64xf32>
    %121 = vector.shape_cast %120 : vector<1x1x64xf32> to vector<1x64xf32>
    %122 = vector.broadcast %121 : vector<1x64xf32> to vector<32x64xf32>
    %123 = arith.addf %119, %122 : vector<32x64xf32>
    %cst_47 = arith.constant dense<0.000000e+00> : vector<32xf32>
    %124 = vector.multi_reduction <add>, %123, %cst_47 [1] : vector<32x64xf32> to vector<32xf32>
    %125 = vector.shape_cast %124 : vector<32xf32> to vector<32x1xf32>
    %cst_48 = arith.constant 6.400000e+01 : f32
    %126 = vector.broadcast %cst_48 : f32 to vector<32x1xf32>
    %127 = arith.divf %125, %126 : vector<32x1xf32>
    %128 = vector.broadcast %127 : vector<32x1xf32> to vector<32x64xf32>
    %129 = arith.subf %123, %128 : vector<32x64xf32>
    %130 = arith.mulf %129, %129 : vector<32x64xf32>
    %cst_49 = arith.constant dense<0.000000e+00> : vector<32xf32>
    %131 = vector.multi_reduction <add>, %130, %cst_49 [1] : vector<32x64xf32> to vector<32xf32>
    %132 = vector.shape_cast %131 : vector<32xf32> to vector<32x1xf32>
    %cst_50 = arith.constant 6.400000e+01 : f32
    %133 = vector.broadcast %cst_50 : f32 to vector<32x1xf32>
    %134 = arith.divf %132, %133 : vector<32x1xf32>
    %135 = vector.broadcast %127 : vector<32x1xf32> to vector<32x64xf32>
    %136 = arith.subf %123, %135 : vector<32x64xf32>
    %cst_51 = arith.constant 9.99999974E-6 : f32
    %137 = vector.broadcast %cst_51 : f32 to vector<32x1xf32>
    %138 = arith.addf %134, %137 : vector<32x1xf32>
    %139 = math.rsqrt %138 : vector<32x1xf32>
    %140 = vector.broadcast %139 : vector<32x1xf32> to vector<32x64xf32>
    %141 = arith.mulf %136, %140 : vector<32x64xf32>
    %c0_52 = arith.constant 0 : index
    %c0_53 = arith.constant 0 : index
    %c0_54 = arith.constant 0 : index
    %142 = vector.load %arg10[%c0_52, %c0_53, %c0_54] : memref<1x1x64xf32, #tpu.memory_space<vmem>>, vector<1x1x64xf32>
    %143 = vector.shape_cast %142 : vector<1x1x64xf32> to vector<1x64xf32>
    %144 = vector.broadcast %143 : vector<1x64xf32> to vector<32x64xf32>
    %145 = arith.mulf %141, %144 : vector<32x64xf32>
    %c0_55 = arith.constant 0 : index
    %c0_56 = arith.constant 0 : index
    %c0_57 = arith.constant 0 : index
    %146 = vector.load %arg11[%c0_55, %c0_56, %c0_57] : memref<1x1x64xf32, #tpu.memory_space<vmem>>, vector<1x1x64xf32>
    %147 = vector.shape_cast %146 : vector<1x1x64xf32> to vector<1x64xf32>
    %148 = vector.broadcast %147 : vector<1x64xf32> to vector<32x64xf32>
    %149 = arith.addf %145, %148 : vector<32x64xf32>
    %150 = arith.truncf %149 : vector<32x64xf32> to vector<32x64xbf16>
    %c0_58 = arith.constant 0 : index
    %c0_59 = arith.constant 0 : index
    %c0_60 = arith.constant 0 : index
    %151 = vector.load %arg12[%c0_58, %c0_59, %c0_60] : memref<1x64x64xbf16, #tpu.memory_space<vmem>>, vector<1x64x64xbf16>
    %152 = vector.shape_cast %151 : vector<1x64x64xbf16> to vector<64x64xbf16>
    %cst_61 = arith.constant dense<0.000000e+00> : vector<32x64xf32>
    %153 = tpu.matmul %150, %152, %cst_61 {dimension_numbers = #tpu.dot_dimension_numbers<[1], [0], [0], [1], [0, 0, 1, 1], [], []>} : vector<32x64xbf16>, vector<64x64xbf16>, vector<32x64xf32> -> vector<32x64xf32>
    %c0_62 = arith.constant 0 : index
    %c0_63 = arith.constant 0 : index
    %c0_64 = arith.constant 0 : index
    %154 = vector.load %arg13[%c0_62, %c0_63, %c0_64] : memref<1x1x64xf32, #tpu.memory_space<vmem>>, vector<1x1x64xf32>
    %155 = vector.shape_cast %154 : vector<1x1x64xf32> to vector<1x64xf32>
    %156 = vector.broadcast %155 : vector<1x64xf32> to vector<32x64xf32>
    %157 = arith.addf %153, %156 : vector<32x64xf32>
    %cst_65 = arith.constant 2.500000e-01 : f32
    %158 = vector.broadcast %cst_65 : f32 to vector<32x64xf32>
    %159 = arith.mulf %157, %158 : vector<32x64xf32>
    %c0_66 = arith.constant 0 : index
    %c0_67 = arith.constant 0 : index
    %c0_68 = arith.constant 0 : index
    %160 = vector.load %arg3[%c0_66, %c0_67, %c0_68] : memref<1x8x64xbf16, #tpu.memory_space<vmem>>, vector<1x8x64xbf16>
    %161 = vector.shape_cast %160 : vector<1x8x64xbf16> to vector<8x64xbf16>
    %c0_69 = arith.constant 0 : index
    %c0_70 = arith.constant 0 : index
    %c0_71 = arith.constant 0 : index
    %162 = vector.load %arg14[%c0_69, %c0_70, %c0_71] : memref<1x64x128xbf16, #tpu.memory_space<vmem>>, vector<1x64x128xbf16>
    %163 = vector.shape_cast %162 : vector<1x64x128xbf16> to vector<64x128xbf16>
    %cst_72 = arith.constant dense<0.000000e+00> : vector<8x128xf32>
    %164 = tpu.matmul %161, %163, %cst_72 {dimension_numbers = #tpu.dot_dimension_numbers<[1], [0], [0], [1], [0, 0, 1, 1], [], []>} : vector<8x64xbf16>, vector<64x128xbf16>, vector<8x128xf32> -> vector<8x128xf32>
    %c0_73 = arith.constant 0 : index
    %c0_74 = arith.constant 0 : index
    %c0_75 = arith.constant 0 : index
    %165 = vector.load %arg15[%c0_73, %c0_74, %c0_75] : memref<1x1x128xf32, #tpu.memory_space<vmem>>, vector<1x1x128xf32>
    %166 = vector.shape_cast %165 : vector<1x1x128xf32> to vector<1x128xf32>
    %167 = vector.broadcast %166 : vector<1x128xf32> to vector<8x128xf32>
    %168 = arith.addf %164, %167 : vector<8x128xf32>
    %169 = vector.extract_strided_slice %168 {offsets = [0, 0], sizes = [8, 64], strides = [1, 1]} : vector<8x128xf32> to vector<8x64xf32>
    %170 = vector.extract_strided_slice %168 {offsets = [0, 64], sizes = [8, 64], strides = [1, 1]} : vector<8x128xf32> to vector<8x64xf32>
    %171 = vector.extract_strided_slice %159 {offsets = [0, 0], sizes = [32, 16], strides = [1, 1]} : vector<32x64xf32> to vector<32x16xf32>
    %172 = vector.extract_strided_slice %169 {offsets = [0, 0], sizes = [8, 16], strides = [1, 1]} : vector<8x64xf32> to vector<8x16xf32>
    %cst_76 = arith.constant dense<0.000000e+00> : vector<32x8xf32>
    %173 = tpu.matmul %171, %172, %cst_76 {dimension_numbers = #tpu.dot_dimension_numbers<[1], [1], [0], [0], [0, 0, 1, 0], [], []>} : vector<32x16xf32>, vector<8x16xf32>, vector<32x8xf32> -> vector<32x8xf32>
    %cst_77 = arith.constant dense<0xFF800000> : vector<32xf32>
    %174 = vector.multi_reduction <maximumf>, %173, %cst_77 [1] : vector<32x8xf32> to vector<32xf32>
    %175 = vector.shape_cast %174 : vector<32xf32> to vector<32x1xf32>
    %176 = vector.broadcast %175 : vector<32x1xf32> to vector<32x8xf32>
    %177 = arith.subf %173, %176 : vector<32x8xf32>
    %178 = math.exp %177 : vector<32x8xf32>
    %cst_78 = arith.constant dense<0.000000e+00> : vector<32xf32>
    %179 = vector.multi_reduction <add>, %178, %cst_78 [1] : vector<32x8xf32> to vector<32xf32>
    %180 = vector.shape_cast %179 : vector<32xf32> to vector<32x1xf32>
    %181 = tpu.reciprocal %180 {approx = true} : vector<32x1xf32> -> vector<32x1xf32>
    %182 = vector.extract_strided_slice %170 {offsets = [0, 0], sizes = [8, 16], strides = [1, 1]} : vector<8x64xf32> to vector<8x16xf32>
    %cst_79 = arith.constant dense<0.000000e+00> : vector<32x16xf32>
    %183 = tpu.matmul %178, %182, %cst_79 {dimension_numbers = #tpu.dot_dimension_numbers<[1], [0], [0], [1], [0, 0, 1, 1], [], []>} : vector<32x8xf32>, vector<8x16xf32>, vector<32x16xf32> -> vector<32x16xf32>
    %184 = vector.broadcast %181 : vector<32x1xf32> to vector<32x16xf32>
    %185 = arith.mulf %183, %184 : vector<32x16xf32>
    %186 = vector.extract_strided_slice %159 {offsets = [0, 16], sizes = [32, 16], strides = [1, 1]} : vector<32x64xf32> to vector<32x16xf32>
    %187 = vector.extract_strided_slice %169 {offsets = [0, 16], sizes = [8, 16], strides = [1, 1]} : vector<8x64xf32> to vector<8x16xf32>
    %cst_80 = arith.constant dense<0.000000e+00> : vector<32x8xf32>
    %188 = tpu.matmul %186, %187, %cst_80 {dimension_numbers = #tpu.dot_dimension_numbers<[1], [1], [0], [0], [0, 0, 1, 0], [], []>} : vector<32x16xf32>, vector<8x16xf32>, vector<32x8xf32> -> vector<32x8xf32>
    %cst_81 = arith.constant dense<0xFF800000> : vector<32xf32>
    %189 = vector.multi_reduction <maximumf>, %188, %cst_81 [1] : vector<32x8xf32> to vector<32xf32>
    %190 = vector.shape_cast %189 : vector<32xf32> to vector<32x1xf32>
    %191 = vector.broadcast %190 : vector<32x1xf32> to vector<32x8xf32>
    %192 = arith.subf %188, %191 : vector<32x8xf32>
    %193 = math.exp %192 : vector<32x8xf32>
    %cst_82 = arith.constant dense<0.000000e+00> : vector<32xf32>
    %194 = vector.multi_reduction <add>, %193, %cst_82 [1] : vector<32x8xf32> to vector<32xf32>
    %195 = vector.shape_cast %194 : vector<32xf32> to vector<32x1xf32>
    %196 = tpu.reciprocal %195 {approx = true} : vector<32x1xf32> -> vector<32x1xf32>
    %197 = vector.extract_strided_slice %170 {offsets = [0, 16], sizes = [8, 16], strides = [1, 1]} : vector<8x64xf32> to vector<8x16xf32>
    %cst_83 = arith.constant dense<0.000000e+00> : vector<32x16xf32>
    %198 = tpu.matmul %193, %197, %cst_83 {dimension_numbers = #tpu.dot_dimension_numbers<[1], [0], [0], [1], [0, 0, 1, 1], [], []>} : vector<32x8xf32>, vector<8x16xf32>, vector<32x16xf32> -> vector<32x16xf32>
    %199 = vector.broadcast %196 : vector<32x1xf32> to vector<32x16xf32>
    %200 = arith.mulf %198, %199 : vector<32x16xf32>
    %201 = vector.extract_strided_slice %159 {offsets = [0, 32], sizes = [32, 16], strides = [1, 1]} : vector<32x64xf32> to vector<32x16xf32>
    %202 = vector.extract_strided_slice %169 {offsets = [0, 32], sizes = [8, 16], strides = [1, 1]} : vector<8x64xf32> to vector<8x16xf32>
    %cst_84 = arith.constant dense<0.000000e+00> : vector<32x8xf32>
    %203 = tpu.matmul %201, %202, %cst_84 {dimension_numbers = #tpu.dot_dimension_numbers<[1], [1], [0], [0], [0, 0, 1, 0], [], []>} : vector<32x16xf32>, vector<8x16xf32>, vector<32x8xf32> -> vector<32x8xf32>
    %cst_85 = arith.constant dense<0xFF800000> : vector<32xf32>
    %204 = vector.multi_reduction <maximumf>, %203, %cst_85 [1] : vector<32x8xf32> to vector<32xf32>
    %205 = vector.shape_cast %204 : vector<32xf32> to vector<32x1xf32>
    %206 = vector.broadcast %205 : vector<32x1xf32> to vector<32x8xf32>
    %207 = arith.subf %203, %206 : vector<32x8xf32>
    %208 = math.exp %207 : vector<32x8xf32>
    %cst_86 = arith.constant dense<0.000000e+00> : vector<32xf32>
    %209 = vector.multi_reduction <add>, %208, %cst_86 [1] : vector<32x8xf32> to vector<32xf32>
    %210 = vector.shape_cast %209 : vector<32xf32> to vector<32x1xf32>
    %211 = tpu.reciprocal %210 {approx = true} : vector<32x1xf32> -> vector<32x1xf32>
    %212 = vector.extract_strided_slice %170 {offsets = [0, 32], sizes = [8, 16], strides = [1, 1]} : vector<8x64xf32> to vector<8x16xf32>
    %cst_87 = arith.constant dense<0.000000e+00> : vector<32x16xf32>
    %213 = tpu.matmul %208, %212, %cst_87 {dimension_numbers = #tpu.dot_dimension_numbers<[1], [0], [0], [1], [0, 0, 1, 1], [], []>} : vector<32x8xf32>, vector<8x16xf32>, vector<32x16xf32> -> vector<32x16xf32>
    %214 = vector.broadcast %211 : vector<32x1xf32> to vector<32x16xf32>
    %215 = arith.mulf %213, %214 : vector<32x16xf32>
    %216 = vector.extract_strided_slice %159 {offsets = [0, 48], sizes = [32, 16], strides = [1, 1]} : vector<32x64xf32> to vector<32x16xf32>
    %217 = vector.extract_strided_slice %169 {offsets = [0, 48], sizes = [8, 16], strides = [1, 1]} : vector<8x64xf32> to vector<8x16xf32>
    %cst_88 = arith.constant dense<0.000000e+00> : vector<32x8xf32>
    %218 = tpu.matmul %216, %217, %cst_88 {dimension_numbers = #tpu.dot_dimension_numbers<[1], [1], [0], [0], [0, 0, 1, 0], [], []>} : vector<32x16xf32>, vector<8x16xf32>, vector<32x8xf32> -> vector<32x8xf32>
    %cst_89 = arith.constant dense<0xFF800000> : vector<32xf32>
    %219 = vector.multi_reduction <maximumf>, %218, %cst_89 [1] : vector<32x8xf32> to vector<32xf32>
    %220 = vector.shape_cast %219 : vector<32xf32> to vector<32x1xf32>
    %221 = vector.broadcast %220 : vector<32x1xf32> to vector<32x8xf32>
    %222 = arith.subf %218, %221 : vector<32x8xf32>
    %223 = math.exp %222 : vector<32x8xf32>
    %cst_90 = arith.constant dense<0.000000e+00> : vector<32xf32>
    %224 = vector.multi_reduction <add>, %223, %cst_90 [1] : vector<32x8xf32> to vector<32xf32>
    %225 = vector.shape_cast %224 : vector<32xf32> to vector<32x1xf32>
    %226 = tpu.reciprocal %225 {approx = true} : vector<32x1xf32> -> vector<32x1xf32>
    %227 = vector.extract_strided_slice %170 {offsets = [0, 48], sizes = [8, 16], strides = [1, 1]} : vector<8x64xf32> to vector<8x16xf32>
    %cst_91 = arith.constant dense<0.000000e+00> : vector<32x16xf32>
    %228 = tpu.matmul %223, %227, %cst_91 {dimension_numbers = #tpu.dot_dimension_numbers<[1], [0], [0], [1], [0, 0, 1, 1], [], []>} : vector<32x8xf32>, vector<8x16xf32>, vector<32x16xf32> -> vector<32x16xf32>
    %229 = vector.broadcast %226 : vector<32x1xf32> to vector<32x16xf32>
    %230 = arith.mulf %228, %229 : vector<32x16xf32>
    %231 = tpu.concatenate %185, %200, %215, %230 in 1 : vector<32x16xf32>, vector<32x16xf32>, vector<32x16xf32>, vector<32x16xf32> -> vector<32x64xf32>
    %232 = arith.truncf %231 : vector<32x64xf32> to vector<32x64xbf16>
    %c0_92 = arith.constant 0 : index
    %c0_93 = arith.constant 0 : index
    %c0_94 = arith.constant 0 : index
    %233 = vector.load %arg16[%c0_92, %c0_93, %c0_94] : memref<1x64x64xbf16, #tpu.memory_space<vmem>>, vector<1x64x64xbf16>
    %234 = vector.shape_cast %233 : vector<1x64x64xbf16> to vector<64x64xbf16>
    %cst_95 = arith.constant dense<0.000000e+00> : vector<32x64xf32>
    %235 = tpu.matmul %232, %234, %cst_95 {dimension_numbers = #tpu.dot_dimension_numbers<[1], [0], [0], [1], [0, 0, 1, 1], [], []>} : vector<32x64xbf16>, vector<64x64xbf16>, vector<32x64xf32> -> vector<32x64xf32>
    %236 = arith.addf %123, %235 : vector<32x64xf32>
    %c0_96 = arith.constant 0 : index
    %c0_97 = arith.constant 0 : index
    %c0_98 = arith.constant 0 : index
    %237 = vector.load %arg17[%c0_96, %c0_97, %c0_98] : memref<1x1x64xf32, #tpu.memory_space<vmem>>, vector<1x1x64xf32>
    %238 = vector.shape_cast %237 : vector<1x1x64xf32> to vector<1x64xf32>
    %239 = vector.broadcast %238 : vector<1x64xf32> to vector<32x64xf32>
    %240 = arith.addf %236, %239 : vector<32x64xf32>
    %cst_99 = arith.constant dense<0.000000e+00> : vector<32xf32>
    %241 = vector.multi_reduction <add>, %240, %cst_99 [1] : vector<32x64xf32> to vector<32xf32>
    %242 = vector.shape_cast %241 : vector<32xf32> to vector<32x1xf32>
    %cst_100 = arith.constant 6.400000e+01 : f32
    %243 = vector.broadcast %cst_100 : f32 to vector<32x1xf32>
    %244 = arith.divf %242, %243 : vector<32x1xf32>
    %245 = vector.broadcast %244 : vector<32x1xf32> to vector<32x64xf32>
    %246 = arith.subf %240, %245 : vector<32x64xf32>
    %247 = arith.mulf %246, %246 : vector<32x64xf32>
    %cst_101 = arith.constant dense<0.000000e+00> : vector<32xf32>
    %248 = vector.multi_reduction <add>, %247, %cst_101 [1] : vector<32x64xf32> to vector<32xf32>
    %249 = vector.shape_cast %248 : vector<32xf32> to vector<32x1xf32>
    %cst_102 = arith.constant 6.400000e+01 : f32
    %250 = vector.broadcast %cst_102 : f32 to vector<32x1xf32>
    %251 = arith.divf %249, %250 : vector<32x1xf32>
    %252 = vector.broadcast %244 : vector<32x1xf32> to vector<32x64xf32>
    %253 = arith.subf %240, %252 : vector<32x64xf32>
    %cst_103 = arith.constant 9.99999974E-6 : f32
    %254 = vector.broadcast %cst_103 : f32 to vector<32x1xf32>
    %255 = arith.addf %251, %254 : vector<32x1xf32>
    %256 = math.rsqrt %255 : vector<32x1xf32>
    %257 = vector.broadcast %256 : vector<32x1xf32> to vector<32x64xf32>
    %258 = arith.mulf %253, %257 : vector<32x64xf32>
    %c0_104 = arith.constant 0 : index
    %c0_105 = arith.constant 0 : index
    %c0_106 = arith.constant 0 : index
    %259 = vector.load %arg18[%c0_104, %c0_105, %c0_106] : memref<1x1x64xf32, #tpu.memory_space<vmem>>, vector<1x1x64xf32>
    %260 = vector.shape_cast %259 : vector<1x1x64xf32> to vector<1x64xf32>
    %261 = vector.broadcast %260 : vector<1x64xf32> to vector<32x64xf32>
    %262 = arith.mulf %258, %261 : vector<32x64xf32>
    %c0_107 = arith.constant 0 : index
    %c0_108 = arith.constant 0 : index
    %c0_109 = arith.constant 0 : index
    %263 = vector.load %arg19[%c0_107, %c0_108, %c0_109] : memref<1x1x64xf32, #tpu.memory_space<vmem>>, vector<1x1x64xf32>
    %264 = vector.shape_cast %263 : vector<1x1x64xf32> to vector<1x64xf32>
    %265 = vector.broadcast %264 : vector<1x64xf32> to vector<32x64xf32>
    %266 = arith.addf %262, %265 : vector<32x64xf32>
    %267 = arith.truncf %266 : vector<32x64xf32> to vector<32x64xbf16>
    %c0_110 = arith.constant 0 : index
    %c0_111 = arith.constant 0 : index
    %c0_112 = arith.constant 0 : index
    %268 = vector.load %arg20[%c0_110, %c0_111, %c0_112] : memref<1x64x256xbf16, #tpu.memory_space<vmem>>, vector<1x64x256xbf16>
    %269 = vector.shape_cast %268 : vector<1x64x256xbf16> to vector<64x256xbf16>
    %cst_113 = arith.constant dense<0.000000e+00> : vector<32x256xf32>
    %270 = tpu.matmul %267, %269, %cst_113 {dimension_numbers = #tpu.dot_dimension_numbers<[1], [0], [0], [1], [0, 0, 1, 1], [], []>} : vector<32x64xbf16>, vector<64x256xbf16>, vector<32x256xf32> -> vector<32x256xf32>
    %c0_114 = arith.constant 0 : index
    %c0_115 = arith.constant 0 : index
    %c0_116 = arith.constant 0 : index
    %271 = vector.load %arg21[%c0_114, %c0_115, %c0_116] : memref<1x1x256xf32, #tpu.memory_space<vmem>>, vector<1x1x256xf32>
    %272 = vector.shape_cast %271 : vector<1x1x256xf32> to vector<1x256xf32>
    %273 = vector.broadcast %272 : vector<1x256xf32> to vector<32x256xf32>
    %274 = arith.addf %270, %273 : vector<32x256xf32>
    %275 = arith.mulf %274, %274 : vector<32x256xf32>
    %276 = arith.mulf %274, %275 : vector<32x256xf32>
    %cst_117 = arith.constant 4.471500e-02 : f32
    %277 = vector.broadcast %cst_117 : f32 to vector<32x256xf32>
    %278 = arith.mulf %277, %276 : vector<32x256xf32>
    %279 = arith.addf %274, %278 : vector<32x256xf32>
    %cst_118 = arith.constant 0.797884583 : f32
    %280 = vector.broadcast %cst_118 : f32 to vector<32x256xf32>
    %281 = arith.mulf %280, %279 : vector<32x256xf32>
    %282 = math.tanh %281 : vector<32x256xf32>
    %cst_119 = arith.constant 1.000000e+00 : f32
    %283 = vector.broadcast %cst_119 : f32 to vector<32x256xf32>
    %284 = arith.addf %283, %282 : vector<32x256xf32>
    %cst_120 = arith.constant 5.000000e-01 : f32
    %285 = vector.broadcast %cst_120 : f32 to vector<32x256xf32>
    %286 = arith.mulf %285, %284 : vector<32x256xf32>
    %287 = arith.mulf %274, %286 : vector<32x256xf32>
    %288 = arith.truncf %287 : vector<32x256xf32> to vector<32x256xbf16>
    %c0_121 = arith.constant 0 : index
    %c0_122 = arith.constant 0 : index
    %c0_123 = arith.constant 0 : index
    %289 = vector.load %arg22[%c0_121, %c0_122, %c0_123] : memref<1x256x64xbf16, #tpu.memory_space<vmem>>, vector<1x256x64xbf16>
    %290 = vector.shape_cast %289 : vector<1x256x64xbf16> to vector<256x64xbf16>
    %cst_124 = arith.constant dense<0.000000e+00> : vector<32x64xf32>
    %291 = tpu.matmul %288, %290, %cst_124 {dimension_numbers = #tpu.dot_dimension_numbers<[1], [0], [0], [1], [0, 0, 1, 1], [], []>} : vector<32x256xbf16>, vector<256x64xbf16>, vector<32x64xf32> -> vector<32x64xf32>
    %292 = arith.addf %240, %291 : vector<32x64xf32>
    %c0_125 = arith.constant 0 : index
    %c0_126 = arith.constant 0 : index
    %c0_127 = arith.constant 0 : index
    %293 = vector.load %arg23[%c0_125, %c0_126, %c0_127] : memref<1x1x64xf32, #tpu.memory_space<vmem>>, vector<1x1x64xf32>
    %294 = vector.shape_cast %293 : vector<1x1x64xf32> to vector<1x64xf32>
    %295 = vector.broadcast %294 : vector<1x64xf32> to vector<32x64xf32>
    %296 = arith.addf %292, %295 : vector<32x64xf32>
    %c0_128 = arith.constant 0 : index
    %c0_129 = arith.constant 0 : index
    %297 = vector.load %arg29[%c0_128, %c0_129] : memref<32x64xf32, #tpu.memory_space<vmem>>, vector<32x64xf32>
    tpu.vector_store %arg29[%c0_128, %c0_129], %296 {strides = array<i32>} : memref<32x64xf32, #tpu.memory_space<vmem>>, vector<32x64xf32>,
    %c1_i32 = arith.constant 1 : i32
    %298 = arith.cmpi eq, %arg1, %c1_i32 : i32
    %299 = arith.extui %298 : i1 to i32
    %c0_i32_130 = arith.constant 0 : i32
    %300 = arith.cmpi ne, %299, %c0_i32_130 : i32
    scf.if %300 {
      %cst_131 = arith.constant dense<0.000000e+00> : vector<32xf32>
      %301 = vector.multi_reduction <add>, %296, %cst_131 [1] : vector<32x64xf32> to vector<32xf32>
      %302 = vector.shape_cast %301 : vector<32xf32> to vector<32x1xf32>
      %cst_132 = arith.constant 6.400000e+01 : f32
      %303 = vector.broadcast %cst_132 : f32 to vector<32x1xf32>
      %304 = arith.divf %302, %303 : vector<32x1xf32>
      %305 = vector.broadcast %304 : vector<32x1xf32> to vector<32x64xf32>
      %306 = arith.subf %296, %305 : vector<32x64xf32>
      %307 = arith.mulf %306, %306 : vector<32x64xf32>
      %cst_133 = arith.constant dense<0.000000e+00> : vector<32xf32>
      %308 = vector.multi_reduction <add>, %307, %cst_133 [1] : vector<32x64xf32> to vector<32xf32>
      %309 = vector.shape_cast %308 : vector<32xf32> to vector<32x1xf32>
      %cst_134 = arith.constant 6.400000e+01 : f32
      %310 = vector.broadcast %cst_134 : f32 to vector<32x1xf32>
      %311 = arith.divf %309, %310 : vector<32x1xf32>
      %312 = vector.broadcast %304 : vector<32x1xf32> to vector<32x64xf32>
      %313 = arith.subf %296, %312 : vector<32x64xf32>
      %cst_135 = arith.constant 9.99999974E-6 : f32
      %314 = vector.broadcast %cst_135 : f32 to vector<32x1xf32>
      %315 = arith.addf %311, %314 : vector<32x1xf32>
      %316 = math.rsqrt %315 : vector<32x1xf32>
      %317 = vector.broadcast %316 : vector<32x1xf32> to vector<32x64xf32>
      %318 = arith.mulf %313, %317 : vector<32x64xf32>
      %c0_136 = arith.constant 0 : index
      %c0_137 = arith.constant 0 : index
      %c0_138 = arith.constant 0 : index
      %319 = vector.load %arg24[%c0_136, %c0_137, %c0_138] : memref<1x1x64xf32, #tpu.memory_space<vmem>>, vector<1x1x64xf32>
      %320 = vector.shape_cast %319 : vector<1x1x64xf32> to vector<1x64xf32>
      %321 = vector.broadcast %320 : vector<1x64xf32> to vector<32x64xf32>
      %322 = arith.mulf %318, %321 : vector<32x64xf32>
      %c0_139 = arith.constant 0 : index
      %c0_140 = arith.constant 0 : index
      %c0_141 = arith.constant 0 : index
      %323 = vector.load %arg25[%c0_139, %c0_140, %c0_141] : memref<1x1x64xf32, #tpu.memory_space<vmem>>, vector<1x1x64xf32>
      %324 = vector.shape_cast %323 : vector<1x1x64xf32> to vector<1x64xf32>
      %325 = vector.broadcast %324 : vector<1x64xf32> to vector<32x64xf32>
      %326 = arith.addf %322, %325 : vector<32x64xf32>
      %327 = arith.truncf %326 : vector<32x64xf32> to vector<32x64xbf16>
      %c0_142 = arith.constant 0 : index
      %c0_143 = arith.constant 0 : index
      %328 = vector.load %arg26[%c0_142, %c0_143] : memref<64x4xbf16, #tpu.memory_space<vmem>>, vector<64x4xbf16>
      %cst_144 = arith.constant dense<0.000000e+00> : vector<32x4xf32>
      %329 = tpu.matmul %327, %328, %cst_144 {dimension_numbers = #tpu.dot_dimension_numbers<[1], [0], [0], [1], [0, 0, 1, 1], [], []>} : vector<32x64xbf16>, vector<64x4xbf16>, vector<32x4xf32> -> vector<32x4xf32>
      %c0_145 = arith.constant 0 : index
      %c0_146 = arith.constant 0 : index
      %330 = vector.load %arg27[%c0_145, %c0_146] : memref<1x4xf32, #tpu.memory_space<vmem>>, vector<1x4xf32>
      %331 = vector.broadcast %330 : vector<1x4xf32> to vector<32x4xf32>
      %332 = arith.addf %329, %331 : vector<32x4xf32>
      %c0_147 = arith.constant 0 : index
      %c0_148 = arith.constant 0 : index
      %c0_149 = arith.constant 0 : index
      %333 = vector.load %arg28[%c0_147, %c0_148, %c0_149] : memref<1x32x4xf32, #tpu.memory_space<vmem>>, vector<1x32x4xf32>
      %334 = vector.shape_cast %333 : vector<1x32x4xf32> to vector<32x4xf32>
      %335 = vector.shape_cast %332 : vector<32x4xf32> to vector<1x32x4xf32>
      tpu.vector_store %arg28[%c0_147, %c0_148, %c0_149], %335 {strides = array<i32>} : memref<1x32x4xf32, #tpu.memory_space<vmem>>, vector<1x32x4xf32>,
    } else {
    }
    return
  }
  func.func @transform_0(%arg0: i32, %arg1: i32) -> (i32, i32, i32) {
    %c0_i32 = arith.constant 0 : i32
    %c0_i32_0 = arith.constant 0 : i32
    %c0_i32_1 = arith.constant 0 : i32
    return %arg0, %c0_i32, %c0_i32_0 : i32, i32, i32
  }
  func.func @transform_1(%arg0: i32, %arg1: i32) -> (i32, i32, i32) {
    %c0_i32 = arith.constant 0 : i32
    %c0_i32_0 = arith.constant 0 : i32
    %c0_i32_1 = arith.constant 0 : i32
    return %arg0, %c0_i32, %c0_i32_0 : i32, i32, i32
  }
  func.func @transform_2(%arg0: i32, %arg1: i32) -> (i32, i32, i32) {
    %c0_i32 = arith.constant 0 : i32
    %c0_i32_0 = arith.constant 0 : i32
    %c0_i32_1 = arith.constant 0 : i32
    return %arg1, %c0_i32, %c0_i32_0 : i32, i32, i32
  }
  func.func @transform_3(%arg0: i32, %arg1: i32) -> (i32, i32, i32) {
    %c0_i32 = arith.constant 0 : i32
    %c0_i32_0 = arith.constant 0 : i32
    %c0_i32_1 = arith.constant 0 : i32
    return %arg1, %c0_i32, %c0_i32_0 : i32, i32, i32
  }
  func.func @transform_4(%arg0: i32, %arg1: i32) -> (i32, i32, i32) {
    %c0_i32 = arith.constant 0 : i32
    %c0_i32_0 = arith.constant 0 : i32
    %c0_i32_1 = arith.constant 0 : i32
    return %arg1, %c0_i32, %c0_i32_0 : i32, i32, i32
  }
  func.func @transform_5(%arg0: i32, %arg1: i32) -> (i32, i32, i32) {
    %c0_i32 = arith.constant 0 : i32
    %c0_i32_0 = arith.constant 0 : i32
    %c0_i32_1 = arith.constant 0 : i32
    return %arg1, %c0_i32, %c0_i32_0 : i32, i32, i32
  }
  func.func @transform_6(%arg0: i32, %arg1: i32) -> (i32, i32, i32) {
    %c0_i32 = arith.constant 0 : i32
    %c0_i32_0 = arith.constant 0 : i32
    %c0_i32_1 = arith.constant 0 : i32
    return %arg1, %c0_i32, %c0_i32_0 : i32, i32, i32
  }
  func.func @transform_7(%arg0: i32, %arg1: i32) -> (i32, i32, i32) {
    %c0_i32 = arith.constant 0 : i32
    %c0_i32_0 = arith.constant 0 : i32
    %c0_i32_1 = arith.constant 0 : i32
    return %arg1, %c0_i32, %c0_i32_0 : i32, i32, i32
  }
  func.func @transform_8(%arg0: i32, %arg1: i32) -> (i32, i32, i32) {
    %c0_i32 = arith.constant 0 : i32
    %c0_i32_0 = arith.constant 0 : i32
    %c0_i32_1 = arith.constant 0 : i32
    return %arg1, %c0_i32, %c0_i32_0 : i32, i32, i32
  }
  func.func @transform_9(%arg0: i32, %arg1: i32) -> (i32, i32, i32) {
    %c0_i32 = arith.constant 0 : i32
    %c0_i32_0 = arith.constant 0 : i32
    %c0_i32_1 = arith.constant 0 : i32
    return %arg1, %c0_i32, %c0_i32_0 : i32, i32, i32
  }
  func.func @transform_10(%arg0: i32, %arg1: i32) -> (i32, i32, i32) {
    %c0_i32 = arith.constant 0 : i32
    %c0_i32_0 = arith.constant 0 : i32
    %c0_i32_1 = arith.constant 0 : i32
    return %arg1, %c0_i32, %c0_i32_0 : i32, i32, i32
  }
  func.func @transform_11(%arg0: i32, %arg1: i32) -> (i32, i32, i32) {
    %c0_i32 = arith.constant 0 : i32
    %c0_i32_0 = arith.constant 0 : i32
    %c0_i32_1 = arith.constant 0 : i32
    return %arg1, %c0_i32, %c0_i32_0 : i32, i32, i32
  }
  func.func @transform_12(%arg0: i32, %arg1: i32) -> (i32, i32, i32) {
    %c0_i32 = arith.constant 0 : i32
    %c0_i32_0 = arith.constant 0 : i32
    %c0_i32_1 = arith.constant 0 : i32
    return %arg1, %c0_i32, %c0_i32_0 : i32, i32, i32
  }
  func.func @transform_13(%arg0: i32, %arg1: i32) -> (i32, i32, i32) {
    %c0_i32 = arith.constant 0 : i32
    %c0_i32_0 = arith.constant 0 : i32
    %c0_i32_1 = arith.constant 0 : i32
    return %arg1, %c0_i32, %c0_i32_0 : i32, i32, i32
  }
  func.func @transform_14(%arg0: i32, %arg1: i32) -> (i32, i32, i32) {
    %c0_i32 = arith.constant 0 : i32
    %c0_i32_0 = arith.constant 0 : i32
    %c0_i32_1 = arith.constant 0 : i32
    return %arg1, %c0_i32, %c0_i32_0 : i32, i32, i32
  }
  func.func @transform_15(%arg0: i32, %arg1: i32) -> (i32, i32, i32) {
    %c0_i32 = arith.constant 0 : i32
    %c0_i32_0 = arith.constant 0 : i32
    %c0_i32_1 = arith.constant 0 : i32
    return %arg1, %c0_i32, %c0_i32_0 : i32, i32, i32
  }
  func.func @transform_16(%arg0: i32, %arg1: i32) -> (i32, i32, i32) {
    %c0_i32 = arith.constant 0 : i32
    %c0_i32_0 = arith.constant 0 : i32
    %c0_i32_1 = arith.constant 0 : i32
    return %arg1, %c0_i32, %c0_i32_0 : i32, i32, i32
  }
  func.func @transform_17(%arg0: i32, %arg1: i32) -> (i32, i32, i32) {
    %c0_i32 = arith.constant 0 : i32
    %c0_i32_0 = arith.constant 0 : i32
    %c0_i32_1 = arith.constant 0 : i32
    return %arg1, %c0_i32, %c0_i32_0 : i32, i32, i32
  }
  func.func @transform_18(%arg0: i32, %arg1: i32) -> (i32, i32, i32) {
    %c0_i32 = arith.constant 0 : i32
    %c0_i32_0 = arith.constant 0 : i32
    %c0_i32_1 = arith.constant 0 : i32
    return %arg1, %c0_i32, %c0_i32_0 : i32, i32, i32
  }
  func.func @transform_19(%arg0: i32, %arg1: i32) -> (i32, i32, i32) {
    %c0_i32 = arith.constant 0 : i32
    %c0_i32_0 = arith.constant 0 : i32
    %c0_i32_1 = arith.constant 0 : i32
    return %arg1, %c0_i32, %c0_i32_0 : i32, i32, i32
  }
  func.func @transform_20(%arg0: i32, %arg1: i32) -> (i32, i32, i32) {
    %c0_i32 = arith.constant 0 : i32
    %c0_i32_0 = arith.constant 0 : i32
    %c0_i32_1 = arith.constant 0 : i32
    return %arg1, %c0_i32, %c0_i32_0 : i32, i32, i32
  }
  func.func @transform_21(%arg0: i32, %arg1: i32) -> (i32, i32, i32) {
    %c0_i32 = arith.constant 0 : i32
    %c0_i32_0 = arith.constant 0 : i32
    %c0_i32_1 = arith.constant 0 : i32
    return %arg1, %c0_i32, %c0_i32_0 : i32, i32, i32
  }
  func.func @transform_22(%arg0: i32, %arg1: i32) -> (i32, i32, i32) {
    %c0_i32 = arith.constant 0 : i32
    %c0_i32_0 = arith.constant 0 : i32
    %c0_i32_1 = arith.constant 0 : i32
    %c0_i32_2 = arith.constant 0 : i32
    return %c0_i32, %c0_i32_0, %c0_i32_1 : i32, i32, i32
  }
  func.func @transform_23(%arg0: i32, %arg1: i32) -> (i32, i32, i32) {
    %c0_i32 = arith.constant 0 : i32
    %c0_i32_0 = arith.constant 0 : i32
    %c0_i32_1 = arith.constant 0 : i32
    %c0_i32_2 = arith.constant 0 : i32
    return %c0_i32, %c0_i32_0, %c0_i32_1 : i32, i32, i32
  }
  func.func @transform_24(%arg0: i32, %arg1: i32) -> (i32, i32) {
    %c0_i32 = arith.constant 0 : i32
    %c0_i32_0 = arith.constant 0 : i32
    %c0_i32_1 = arith.constant 0 : i32
    return %c0_i32, %c0_i32_0 : i32, i32
  }
  func.func @transform_25(%arg0: i32, %arg1: i32) -> (i32, i32) {
    %c0_i32 = arith.constant 0 : i32
    %c0_i32_0 = arith.constant 0 : i32
    %c0_i32_1 = arith.constant 0 : i32
    return %c0_i32, %c0_i32_0 : i32, i32
  }
  func.func @transform_26(%arg0: i32, %arg1: i32) -> (i32, i32, i32) {
    %c0_i32 = arith.constant 0 : i32
    %c0_i32_0 = arith.constant 0 : i32
    %c0_i32_1 = arith.constant 0 : i32
    return %arg0, %c0_i32, %c0_i32_0 : i32, i32, i32
  }
}

</mosaic_0001>

<bundles_post_ra>
// kernel: run.1
= control target key start
LH: loop header
LB: loop body
LE: loop exit
PB: predicated region body
PF: predicated region fallthrough
CT: control target
= control target key end

     0   :  { %s6267_s27 = smov 0   ;;  %s6273_s28 = smov 0   ;;  %s7293_s0 = inlined_call_operand.vmem [shape: bf16[4,32,64], index: 0, kind: input, shape index: {}]   ;;  %s7294_s1 = inlined_call_operand.vmem [shape: bf16[4,8,64], index: 1, kind: input, shape index: {}]   ;;  %s7295_s2 = inlined_call_operand.vmem [shape: f32[2,1,64], index: 2, kind: input, shape index: {}]   ;;  %s7296_s3 = inlined_call_operand.vmem [shape: f32[2,1,64], index: 3, kind: input, shape index: {}]   ;;  %s7297_s4 = inlined_call_operand.vmem [shape: bf16[2,64,192], index: 4, kind: input, shape index: {}]   ;;  %s7298_s5 = inlined_call_operand.vmem [shape: f32[2,1,192], index: 5, kind: input, shape index: {}]   ;;  %s7299_s6 = inlined_call_operand.vmem [shape: bf16[2,64,64], index: 6, kind: input, shape index: {}]   ;;  %s7300_s7 = inlined_call_operand.vmem [shape: f32[2,1,64], index: 7, kind: input, shape index: {}]   ;;  %s7301_s8 = inlined_call_operand.vmem [shape: f32[2,1,64], index: 8, kind: input, shape index: {}]   ;;  %s7302_s9 = inlined_call_operand.vmem [shape: f32[2,1,64], index: 9, kind: input, shape index: {}]   ;;  %s7303_s10 = inlined_call_operand.vmem [shape: bf16[2,64,64], index: 10, kind: input, shape index: {}]   ;;  %s7304_s11 = inlined_call_operand.vmem [shape: f32[2,1,64], index: 11, kind: input, shape index: {}]   ;;  %s7305_s12 = inlined_call_operand.vmem [shape: bf16[2,64,128], index: 12, kind: input, shape index: {}]   ;;  %s7306_s13 = inlined_call_operand.vmem [shape: f32[2,1,128], index: 13, kind: input, shape index: {}]   ;;  %s7307_s14 = inlined_call_operand.vmem [shape: bf16[2,64,64], index: 14, kind: input, shape index: {}]   ;;  %s7308_s15 = inlined_call_operand.vmem [shape: f32[2,1,64], index: 15, kind: input, shape index: {}]   ;;  %s7309_s16 = inlined_call_operand.vmem [shape: f32[2,1,64], index: 16, kind: input, shape index: {}]   ;;  %s7310_s17 = inlined_call_operand.vmem [shape: f32[2,1,64], index: 17, kind: input, shape index: {}]   ;;  %s7311_s18 = inlined_call_operand.vmem [shape: bf16[2,64,256], index: 18, kind: input, shape index: {}]   ;;  %s7312_s19 = inlined_call_operand.vmem [shape: f32[2,1,256], index: 19, kind: input, shape index: {}]   ;;  %s7313_s20 = inlined_call_operand.vmem [shape: bf16[2,256,64], index: 20, kind: input, shape index: {}]   ;;  %s7314_s21 = inlined_call_operand.vmem [shape: f32[2,1,64], index: 21, kind: input, shape index: {}]   ;;  %s7315_s22 = inlined_call_operand.vmem [shape: f32[1,1,64], index: 22, kind: input, shape index: {}]   ;;  %s7316_s23 = inlined_call_operand.vmem [shape: f32[1,1,64], index: 23, kind: input, shape index: {}]   ;;  %s7317_s24 = inlined_call_operand.vmem [shape: bf16[64,4], index: 24, kind: input, shape index: {}]   ;;  %s7318_s25 = inlined_call_operand.vmem [shape: f32[1,4], index: 25, kind: input, shape index: {}]   ;;  %s7319_s26 = inlined_call_operand.vmem [shape: f32[4,32,4], index: 26, kind: output, shape index: {}]  }
   0x1   :  { %7327 = sst [smem:[#allocation13_spill]] %s7293_s0 }
   0x2   :  { %7328 = sst [smem:[#allocation14_spill]] %s7294_s1 }
   0x3   :  { %7329 = sst [smem:[#allocation15_spill]] %s7295_s2 }
   0x4   :  { %7330 = sst [smem:[#allocation16_spill]] %s7296_s3  ;;  %s6269_s3 = smov 0  }
   0x5   :  { %7331 = sst [smem:[#allocation17_spill]] %s7297_s4 }
   0x6   :  { %7332 = sst [smem:[#allocation18_spill]] %s7298_s5 }
   0x7   :  { %7333 = sst [smem:[#allocation19_spill]] %s7299_s6 }
   0x8   :  { %7334 = sst [smem:[#allocation20_spill]] %s7300_s7  ;;  %s6271_s7 = smov 0  }
   0x9   :  { %7335 = sst [smem:[#allocation21_spill]] %s7301_s8  ;;  %s6275_s8 = smov 0  }
   0xa   :  { %7336 = sst [smem:[#allocation22_spill]] %s7302_s9 }
   0xb   :  { %7337 = sst [smem:[#allocation23_spill]] %s7303_s10 }
   0xc   :  { %7338 = sst [smem:[#allocation24_spill]] %s7305_s12 }
   0xd   :  { %7339 = sst [smem:[#allocation25_spill]] %s7307_s14 }
   0xe   :  { %7340 = sst [smem:[#allocation26_spill]] %s7310_s17 }
   0xf   :  { %7341 = sst [smem:[#allocation27_spill]] %s7311_s18 }
  0x10   :  { %7342 = sst [smem:[#allocation28_spill]] %s7312_s19 }
  0x11   :  { %7343 = sst [smem:[#allocation29_spill]] %s7313_s20 }
  0x12   :  { %7344 = sst [smem:[#allocation30_spill]] %s7314_s21 }
  0x13   :  { %7345 = sst [smem:[#allocation31_spill]] %s7315_s22 }
  0x14   :  { %7346 = sst [smem:[#allocation32_spill]] %s7316_s23 }
  0x15   :  { %7347 = sst [smem:[#allocation33_spill]] %s7317_s24 }
  0x16   :  { %7348 = sst [smem:[#allocation34_spill]] %s7318_s25 }
  0x17   :  { %7349 = sst [smem:[#allocation35_spill]] %s7319_s26 }
  0x18 LB: > { %7350 = sst [smem:[#allocation3_spill]] %s6104_s27  ;;  %s45_s4 = sadd.s32 1, %s6112_s7  ;;  %s6120_s8 = sphi %s6275_s8, %s36_s8   ;;  %s6116_s28 = sphi %s6273_s28, %s7412_s28   ;;  %s6112_s7 = sphi %s6271_s7, %s7411_s7   ;;  %s6108_s3 = sphi %s6269_s3, %s7410_s3   ;;  %s6104_s27 = sphi %s6267_s27, %s7409_s27  }
  0x19   : > { %7351 = sst [smem:[#allocation4_spill]] %s6112_s7  ;;  %s48_s29 = sadd.s32 1, %s6116_s28 }
  0x1a   : > { %7352 = sst [smem:[#allocation5_spill]] %s6116_s28  ;;  %p46_p0 = scmp.ge.s32.totalorder %s45_s4, 2 }
  0x1b   : > { %7353 = sst [smem:[#allocation6_spill]] %s6120_s8  ;;  %p4978_p1 = scmp.ge.s32.totalorder %s6120_s8, 1 }
  0x1c   : > { %p909_p2 = scmp.lt.s32.totalorder %s6120_s8, 9  ;;  %s7414_s4 = smov (%p46_p0, %s45_s4), 0 }
  0x1d   : > { %7354 = sst [smem:[#allocation7_spill]] %s7414_s4  ;;  %s7416_s29 = smov (!%p46_p0, %s48_s29), %s6116_s28 }
  0x1e   : > { %p910_p3 = pnand %p4978_p1, %p909_p2  ;;  %p50_p4 = scmp.ge.s32.totalorder %s7416_s29, 4 }
  0x20   : > { %s7418_s29 = smov (%p50_p4, %s7416_s29), 0  ;;  %913 = sbr.rel (%p910_p3) target bundleno = 5104 (0x13f0), region = 124 }
  0x21   : > { %7355 = sst [smem:[#allocation8_spill]] %s7418_s29 }
  0x27   : > { %p1059_p5 = scmp.lt.s32.totalorder %s6108_s3, 3  ;;  %p1068_p6 = scmp.lt.s32.totalorder %s6104_s27, 1 }
  0x28   : > { %s7356_s10 = sld [smem:[#allocation13_spill]]  ;;  %s7358_s4 = sld [smem:[#allocation14_spill]] }
  0x29   : > { %s7420_s3 = smov (!%p1059_p5, %s6108_s3), 3  ;;  %s7364_s1 = sld [smem:[#allocation18_spill]] }
  0x2a   : > { %s6303_s0 = scalar_select %p1068_p6, %s6104_s27, 1 }
  0x2b   : > { %s5167_s9 = sshll.u32 %s7420_s3, 4  ;;  %s4981_s30 = sshll.u32 %s7420_s3, 2 }
  0x2c   : > { %s5168_s21 = sshll.u32 %s6303_s0, 6  ;;  %s5169_s25 = sshll.u32 %s6303_s0, 5 }
  0x2d   : > { %s7367_s23 = sld [smem:[#allocation19_spill]]  ;;  %s7370_s18 = sld [smem:[#allocation23_spill]] }
  0x2e   : > { %s6310_s6 = scalar_lea.vmem %s7356_s10, %s5167_s9  ;;  %s6315_s28 = scalar_lea.vmem %s7358_s4, %s4981_s30 }
  0x2f   : > { %7357 = sst [smem:[#allocation9_spill]] %s6310_s6  ;;  %s4984_s9 = sshll.u32 %s6303_s0, 1 }
  0x30   : > { %7359 = sst [smem:[#allocation10_spill]] %s6315_s28  ;;  %s7362_s10 = sld [smem:[#allocation17_spill]] }
  0x31   : > { %s6335_s28 = scalar_lea.vmem %s7364_s1, %s4984_s9  ;;  %s7371_s12 = sld [smem:[#allocation24_spill]] }
  0x32   : > { %7365 = sst [smem:[#allocation12_spill]] %s6335_s28  ;;  %s7372_s14 = sld [smem:[#allocation25_spill]] }
  0x33   : > { %s6345_s6 = scalar_lea.vmem %s7367_s23, %s5169_s25  ;;  %s6358_s7 = scalar_lea.vmem %s7370_s18, %s5169_s25 }
  0x34   : > { %s7374_s5 = sld [smem:[#allocation27_spill]]  ;;  %s7375_s30 = sld [smem:[#allocation28_spill]] }
  0x35   : > { %s5174_s18 = sshll.u32 %s6303_s0, 7  ;;  %s7377_s23 = sld [smem:[#allocation30_spill]] }
  0x36   : > { %s6330_s29 = scalar_lea.vmem %s7362_s10, %s5168_s21  ;;  %s5175_s28 = sshll.u32 %s7420_s3, 5 }
  0x37   : > { %7363 = sst [smem:[#allocation11_spill]] %s6330_s29  ;;  %s6367_s27 = scalar_lea.vmem %s7371_s12, %s5169_s25 }
  0x38   : > { %s6376_s1 = scalar_lea.vmem %s7372_s14, %s5169_s25  ;;  %s7376_s14 = sld [smem:[#allocation29_spill]] }
  0x3a   : > { %s6393_s10 = scalar_lea.vmem %s7374_s5, %s5168_s21  ;;  %s6398_s12 = scalar_lea.vmem %s7375_s30, %s4984_s9 }
  0x3b   : > { %s1143_s8 = scalar_lea.vmem %s7377_s23, %s6303_s0  ;;  %s7378_s21 = sld [smem:[#allocation35_spill]] }
  0x3c   : > { %s7379_s5 = sld [smem:[#allocation3_spill]] }
  0x3e   : > { %s6404_s22 = scalar_lea.vmem %s7376_s14, %s5174_s18 }
  0x41   : > { %s6414_s2 = scalar_lea.vmem %s7378_s21, %s5175_s28 }
  0x42   : > { %p5000_p7 = scmp.ne.s32.totalorder %s7379_s5, 0 }
  0x43   : > { %s7380_s9 = sld [smem:[#allocation9_spill]] (!%p5000_p7)  ;;  %vm1162_vm0 = vcmask (!%p5000_p7), 523264  }
  0x44   : > { %1153 = sbr.rel (%p5000_p7) target bundleno = 78 (0x4e), region = 128 }
  0x49   : > { %v5177_v0 = vld [vmem:[%s7380_s9] sm:$0xff] (!%p5000_p7)   ;;  %v5184_v1 = vld [vmem:[%s7380_s9 + $0x8] sm:$0xff] (!%p5000_p7)  }
  0x4a   : > { %v5178_v2 = vunpack.c.l.bf16 (!%p5000_p7), %v5177_v0  ;;  %v5179_v3 = vunpack.c.h.bf16 (!%p5000_p7), %v5177_v0  ;;  %v5182_v4 = vunpack.c.l.bf16 (!%p5000_p7), %v5184_v1  ;;  %v5183_v5 = vunpack.c.h.bf16 (!%p5000_p7), %v5184_v1 }
  0x4c   : > { %1163 = vst.msk [vmem:[#allocation2] sm:$0xff] %vm1162_vm0, %v5178_v2  ;;  %1164 = vst.msk [vmem:[#allocation2 + $0x8] sm:$0xff] %vm1162_vm0, %v5179_v3 }
  0x4d   : > { %1165 = vst.msk [vmem:[#allocation2 + $0x10] sm:$0xff] %vm1162_vm0, %v5182_v4  ;;  %1166 = vst.msk [vmem:[#allocation2 + $0x18] sm:$0xff] %vm1162_vm0, %v5183_v5 }
  0x4e PF: > { %vm1174_vm1 = vcmask 523264   ;;  %s7381_s14 = sld [smem:[#allocation11_spill]]  ;;  %v6122_v39 = vmov 0   ;;  %s7384_s25 = sld [smem:[#allocation16_spill]]  ;;  %vm1387_vm2 = vcmask 130048   ;;  %vm1497_vm5 = vcmask 261120  }
  0x4f   : > { %1350 = vmatprep.mubr.bf16.mxu1 %v6122_v39  ;;  %s7382_s28 = sld [smem:[#allocation15_spill]]  ;;  %s7386_s18 = sld [smem:[#allocation12_spill]]  ;;  %vm6520_vm3 = vmpackc.low %vm1387_vm2, %vm1387_vm2  ;;  %vm2521_vm6 = vcmask 392192   ;;  %vm6131_vm7 = vmmov 0   ;;  %vm2987_vm8 = vcmask 64512  }
  0x50   : > { %s6123_s19 = smov 48   ;;  %s6124_s24 = smov 64  }
  0x51   : > { %s6125_s23 = smov 32   ;;  %s6126_s29 = smov 112  }
  0x52   : > { %s6127_s21 = smov 96   ;;  %s6128_s5 = smov 16  }
  0x53   : > { %v1170_v6 = vld [vmem:[#allocation2] sm:$0xff]  ;;  %v1171_v8 = vld [vmem:[#allocation2 + $0x8] sm:$0xff]  ;;  %s6129_s9 = smov 80   ;;  %s7389_s17 = sld [smem:[#allocation20_spill]] }
  0x54   : > { %v1172_v7 = vld [vmem:[#allocation2 + $0x10] sm:$0xff]  ;;  %v1175_v9 = vsel %vm1174_vm1, %v1170_v6, 0.0  ;;  %v1173_v11 = vld [vmem:[#allocation2 + $0x18] sm:$0xff]  ;;  %v1178_v12 = vsel %vm1174_vm1, %v1171_v8, 0.0  ;;  %v5842_v34 = vld [vmem:[%s7381_s14 + $0x4] ss:$8 sps:$4 sm:$0xff]   ;;  %s7385_s30 = scalar_lea.vmem %s7384_s25, %s6303_s0 }
  0x55   : > { %v1181_v10 = vsel %vm1174_vm1, %v1172_v7, 0.0  ;;  %1176 = vadd.xlane.f32.xlu0 %v1175_v9  ;;  %v1184_v13 = vsel %vm1174_vm1, %v1173_v11, 0.0  ;;  %v5844_v35 = vld [vmem:[%s7381_s14] ss:$8 sps:$4 sm:$0xff]   ;;  %1318 = vmatprep.subr.bf16.mxu1 %v5842_v34  ;;  %v5845_v36 = vld [vmem:[%s7381_s14 + $0x14] ss:$8 sps:$4 sm:$0xff]   ;;  %s7383_s26 = scalar_lea.vmem %s7382_s28, %s6303_s0 }
  0x56   : > { %1182 = vadd.xlane.f32.xlu1 %v1181_v10  ;;  %1319 = vmatpush1.bf16.msra.mxu1 %v5844_v35  ;;  %v5847_v37 = vld [vmem:[%s7381_s14 + $0x10] ss:$8 sps:$4 sm:$0xff]   ;;  %v5848_v38 = vld [vmem:[%s7381_s14 + $0x24] ss:$8 sps:$4 sm:$0xff]   ;;  %v5850_v40 = vld [vmem:[%s7381_s14 + $0x20] ss:$8 sps:$4 sm:$0xff]  }
  0x57   : > { %1320 = vmatprep.subr.bf16.mxu1 %v5845_v36  ;;  %v5851_v41 = vld [vmem:[%s7381_s14 + $0x34] ss:$8 sps:$4 sm:$0xff]   ;;  %v5853_v42 = vld [vmem:[%s7381_s14 + $0x30] ss:$8 sps:$4 sm:$0xff]   ;;  %v5001_v57 = vld [vmem:[%s7383_s26] ss:$0 sm:$0xff] }
  0x58   : > { %v5002_v62 = vld [vmem:[%s7385_s30] ss:$0 sm:$0xff]  ;;  %s7391_s28 = sld [smem:[#allocation10_spill]]  ;;  %s7392_s26 = sld [smem:[#allocation21_spill]] }
  0x59   : > { %1179 = vadd.xlane.f32.xlu0 %v1178_v12  ;;  %s7390_s3 = scalar_lea.vmem %s7389_s17, %s6303_s0  ;;  %s7394_s30 = sld [smem:[#allocation22_spill]] }
  0x5a   : > { %1185 = vadd.xlane.f32.xlu1 %v1184_v13  ;;  %1321 = vmatpush1.bf16.msra.mxu1 %v5847_v37  ;;  %s7396_s17 = scalar_lea.vmem %s7306_s13, %s6303_s0 }
  0x5b   : > { %1322 = vmatprep.subr.bf16.mxu1 %v5848_v38 }
  0x5e   : > { %1323 = vmatpush1.bf16.msra.mxu1 %v5850_v40  ;;  %s7393_s20 = scalar_lea.vmem %s7392_s26, %s6303_s0 }
  0x5f   : > { %1324 = vmatprep.subr.bf16.mxu1 %v5851_v41 }
  0x62   : > { %1325 = vmatpush1.bf16.msra.mxu1 %v5853_v42 }
  0xe2   : > { %v1177_v14 = vpop.xlane.xlu0 %1176 }
  0xe3   : > { %v1183_v15 = vpop.xlane.xlu1 %1182  ;;  %v1188_v16 = vmul.f32 0.015625, %v1177_v14  ;;  %v1260_v14 = vld [vmem:[%s7386_s18] sm:$0x3]  ;;  %s7395_s18 = scalar_lea.vmem %s7394_s30, %s6303_s0 }
  0xe4   : > { %v1190_v17 = vmul.f32 0.015625, %v1183_v15 }
  0xe5   : > { %v1192_v18 = vsub.f32 %v1170_v6, %v1188_v16 }
  0xe6   : > { %v6423_v19 = vsub.f32 %v1172_v7, %v1190_v17  ;;  %v1180_v20 = vpop.xlane.xlu0 %1179 }
  0xe7   : > { %v1186_v21 = vpop.xlane.xlu1 %1185  ;;  %v1189_v22 = vmul.f32 0.015625, %v1180_v20  ;;  %v1196_v24 = vmul.f32 %v1192_v18, %v1192_v18 }
  0xe8   : > { %v1191_v23 = vmul.f32 0.015625, %v1186_v21  ;;  %v1198_v25 = vmul.f32 %v6423_v19, %v6423_v19 }
  0xe9   : > { %v1193_v26 = vsub.f32 %v1171_v8, %v1189_v22  ;;  %v1200_v28 = vsel %vm1174_vm1, %v1196_v24, 0.0 }
  0xea   : > { %v1195_v27 = vsub.f32 %v1173_v11, %v1191_v23  ;;  %1201 = vadd.xlane.f32.xlu0 %v1200_v28  ;;  %v1206_v29 = vsel %vm1174_vm1, %v1198_v25, 0.0  ;;  %v1167_v11 = vlaneseq }
  0xeb   : > { %v1197_v30 = vmul.f32 %v1193_v26, %v1193_v26 }
  0xec   : > { %v1199_v31 = vmul.f32 %v1195_v27, %v1195_v27  ;;  %v6455_v12 = vshrl.u32 %v1167_v11, 7 }
  0xed   : > { %v1203_v32 = vsel %vm1174_vm1, %v1197_v30, 0.0 }
  0xee   : > { %1207 = vadd.xlane.f32.xlu0 %v1206_v29  ;;  %1204 = vadd.xlane.f32.xlu1 %v1203_v32  ;;  %v1209_v33 = vsel %vm1174_vm1, %v1199_v31, 0.0  ;;  %v1264_v13 = vsub.s32 0, %v6455_v12  ;;  %v1268_v15 = vsub.s32 1, %v6455_v12 }
  0xf0   : > { %v1265_v16 = vrot.slane %v1260_v14, %v1264_v13 }
  0xf2   : > { %1210 = vadd.xlane.f32.xlu1 %v1209_v33 }
 0x177   : > { %v1202_v43 = vpop.xlane.xlu0 %1201 }
 0x178   : > { %v1212_v44 = vmul.f32 0.015625, %v1202_v43 }
 0x17a   : > { %v1216_v45 = vadd.f32 1e-05, %v1212_v44 }
 0x17b   : > { %v1205_v46 = vpop.xlane.xlu1 %1204  ;;  %v1208_v47 = vpop.xlane.xlu0 %1207 }
 0x17c   : > { %5898 = vrsqrt.f32 %v1216_v45  ;;  %v1213_v48 = vmul.f32 0.015625, %v1205_v46  ;;  %v1214_v49 = vmul.f32 0.015625, %v1208_v47 }
 0x17e   : > { %v1217_v50 = vadd.f32 1e-05, %v1213_v48  ;;  %v1218_v51 = vadd.f32 1e-05, %v1214_v49 }
 0x17f   : > { %v1211_v52 = vpop.xlane.xlu1 %1210 }
 0x180   : > { %5900 = vrsqrt.f32 %v1217_v50  ;;  %v1215_v53 = vmul.f32 0.015625, %v1211_v52 }
 0x181   : > { %5902 = vrsqrt.f32 %v1218_v51 }
 0x182   : > { %v1219_v54 = vadd.f32 1e-05, %v1215_v53 }
 0x184   : > { %5904 = vrsqrt.f32 %v1219_v54 }
 0x186   : > { %v5899_v55 = vpop.eup %5898 }
 0x187   : > { %v1224_v56 = vmul.f32 %v5899_v55, %v1192_v18  ;;  %v1269_v18 = vrot.slane %v1260_v14, %v1268_v15 }
 0x189   : > { %v1235_v60 = vmul.f32 %v5001_v57, %v1224_v56 }
 0x18a   : > { %v5901_v58 = vpop.eup %5900 }
 0x18b   : > { %v1225_v59 = vmul.f32 %v5901_v58, %v1193_v26  ;;  %v5903_v61 = vpop.eup %5902  ;;  %v1246_v1 = vadd.f32 %v5002_v62, %v1235_v60 }
 0x18c   : > { %v1226_v3 = vmul.f32 %v5903_v61, %v6423_v19 }
 0x18d   : > { %v1236_v63 = vmul.f32 %v5001_v57, %v1225_v59 }
 0x18e   : > { %v5905_v0 = vpop.eup %5904  ;;  %v1237_v7 = vmul.f32 %v5001_v57, %v1226_v3 }
 0x18f   : > { %v1247_v2 = vadd.f32 %v5002_v62, %v1236_v63  ;;  %v1227_v4 = vmul.f32 %v5905_v0, %v1195_v27 }
 0x190   : > { %v1248_v9 = vadd.f32 %v5002_v62, %v1237_v7 }
 0x191   : > { %v1250_v5 = vpack.c.bf16 %v1247_v2, %v1246_v1  ;;  %v1238_v6 = vmul.f32 %v5001_v57, %v1227_v4 }
 0x193   : > { %5011 = vmatmul.mubr.msk.bf16.vlgmr.msra.gmra.mrb[0].mxu1 %vm1174_vm1, %v1250_v5  ;;  %v1249_v8 = vadd.f32 %v5002_v62, %v1238_v6 }
 0x194   : > { %1360 = vmatprep.mubr.bf16.mxu1 %v6122_v39 }
 0x195   : > { %v1251_v10 = vpack.c.bf16 %v1249_v8, %v1248_v9 }
 0x19b   : > { %5012 = vmatmul.mubr.msk.bf16.gmra.mrb[4].mxu1 %vm1174_vm1, %v1251_v10 }
 0x266   : > { %v1352_v17 = vpop.f32.mrb[0].mxu1 }
 0x267   : > { %v1353_v19 = vadd.f32 %v1352_v17, %v1265_v16  ;;  %v1354_v20 = vpop.f32.mrb[1].mxu1 }
 0x268   : > { %v1356_v21 = vpop.f32.mrb[2].mxu1  ;;  %v1355_v25 = vadd.f32 %v1354_v20, %v1269_v18 }
 0x269   : > { %v1357_v22 = vadd.f32 %v1356_v21, %v1265_v16  ;;  %v1358_v23 = vpop.f32.mrb[3].mxu1  ;;  %v6464_v24 = vmul.f32 0.25, %v1353_v19 }
 0x26a   : > { %v1359_v26 = vadd.f32 %v1358_v23, %v1269_v18 }
 0x26b   : > { %5354 = vmatprep.mubr.msk.f32.mxu1 %vm1387_vm2, %v6464_v24  ;;  %v6468_v27 = vpack.i.bf16 %v1357_v22, %v1353_v19  ;;  %v6482_v40 = vmul.f32 0.25, %v1357_v22  ;;  %v6570_v22 = vand.u32 127, %v1167_v11 }
 0x26c   : > { %v6470_v28 = vpack.i.bf16 %v1359_v26, %v1355_v25  ;;  %v6472_v29 = vpack.c.bf16 %v1359_v26, %v1355_v25 }
 0x26d   : > { %5718 = vrot.lane.b32.xlu1 %v6468_v27, %s6123_s19  ;;  %5713 = vrot.lane.b32.xlu0 %v6468_v27, %s6124_s24  ;;  %vm1169_vm4 = vcmp.lt.s32.totalorder %v6570_v22, 17 }
 0x26e   : > { %v1362_v30 = vpop.f32.mrb[4].mxu1 }
 0x26f   : > { %v1364_v31 = vpop.f32.mrb[5].mxu1  ;;  %v1363_v33 = vadd.f32 %v1362_v30, %v1265_v16 }
 0x270   : > { %v1366_v32 = vpop.f32.mrb[6].mxu1  ;;  %v1365_v36 = vadd.f32 %v1364_v31, %v1269_v18 }
 0x271   : > { %v1367_v34 = vadd.f32 %v1366_v32, %v1265_v16  ;;  %v1368_v35 = vpop.f32.mrb[7].mxu1  ;;  %5733 = vrot.lane.b32.xlu0 %v6468_v27, %s6125_s23  ;;  %v6492_v43 = vmul.f32 0.25, %v1363_v33 }
 0x272   : > { %v1369_v37 = vadd.f32 %v1368_v35, %v1269_v18 }
 0x273   : > { %v6480_v38 = vpack.i.bf16 %v1367_v34, %v1363_v33  ;;  %v6506_v44 = vmul.f32 0.25, %v1367_v34 }
 0x274   : > { %v6484_v41 = vpack.i.bf16 %v1369_v37, %v1365_v36  ;;  %v6486_v42 = vpack.c.bf16 %v1369_v37, %v1365_v36 }
 0x275   : > { %5723 = vrot.lane.b32.xlu1 %v6480_v38, %s6124_s24  ;;  %1641 = vrot.lane.b32.xlu0 %v6482_v40, %s6126_s29 }
 0x279   : > { %5728 = vrot.lane.b32.xlu1 %v6480_v38, %s6123_s19  ;;  %1643 = vrot.lane.b32.xlu0 %v6492_v43, %s6126_s29 }
 0x27d   : > { %1917 = vrot.lane.b32.xlu0 %v6464_v24, %s6127_s21  ;;  %1639 = vrot.lane.b32.xlu1 %v6464_v24, %s6126_s29 }
 0x281   : > { %1921 = vrot.lane.b32.xlu0 %v6492_v43, %s6127_s21  ;;  %5738 = vrot.lane.b32.xlu1 %v6480_v38, %s6125_s23 }
 0x285   : > { %5743 = vrot.lane.b32.xlu0 %v6470_v28, %s6126_s29  ;;  %1645 = vrot.lane.b32.xlu1 %v6506_v44, %s6126_s29 }
 0x289   : > { %1919 = vrot.lane.b32.xlu1 %v6482_v40, %s6127_s21 }
 0x28d   : > { %1923 = vrot.lane.b32.xlu1 %v6506_v44, %s6127_s21 }
 0x291   : > { %5748 = vrot.lane.b32.xlu1 %v6484_v41, %s6126_s29 }
 0x2df   : > { %v5719_v45 = vpop.permute.xlu1 %5718  ;;  %v5714_v46 = vpop.permute.xlu0 %5713 }
 0x2e0   : > { %v5716_v47 = vunpack.i.h.bf16 %v5714_v46  ;;  %v5715_v48 = vunpack.i.l.bf16 %v5714_v46  ;;  %v5721_v49 = vunpack.i.h.bf16 %v5719_v45  ;;  %v5720_v50 = vunpack.i.l.bf16 %v5719_v45 }
 0x2e2   : > { %v5582_v52 = vpack.c.bf16 %v5716_v47, %v5715_v48  ;;  %v5602_v53 = vpack.c.bf16 %v5721_v49, %v5720_v50 }
 0x2e3   : > { %v5734_v54 = vpop.permute.xlu0 %5733 }
 0x2e4   : > { %5584 = vmatprep.subr.msk.bf16.mxu1 %vm6520_vm3, %v5582_v52  ;;  %5604 = vmatprep.subr.msk.bf16.mxu0 %vm6520_vm3, %v5602_v53  ;;  %v5736_v62 = vunpack.i.h.bf16 %v5734_v54  ;;  %v5735_v63 = vunpack.i.l.bf16 %v5734_v54 }
 0x2e5   : > { %5587 = vmatpush3.bf16.xpose.msk.msra.mxu1 %vm6520_vm3, %v5582_v52  ;;  %5607 = vmatpush3.bf16.xpose.msk.msra.mxu0 %vm6520_vm3, %v5602_v53 }
 0x2e6   : > { %v5622_v5 = vpack.c.bf16 %v5736_v62, %v5735_v63 }
 0x2e7   : > { %v5724_v55 = vpop.permute.xlu1 %5723  ;;  %v1642_v56 = vpop.permute.xlu0 %1641 }
 0x2e8   : > { %v5726_v57 = vunpack.i.h.bf16 %v5724_v55  ;;  %v5725_v58 = vunpack.i.l.bf16 %v5724_v55 }
 0x2ea   : > { %v5588_v59 = vpack.c.bf16 %v5726_v57, %v5725_v58 }
 0x2eb   : > { %v5729_v60 = vpop.permute.xlu1 %5728  ;;  %v1644_v61 = vpop.permute.xlu0 %1643 }
 0x2ec   : > { %v5731_v0 = vunpack.i.h.bf16 %v5729_v60  ;;  %v5730_v1 = vunpack.i.l.bf16 %v5729_v60  ;;  %5590 = vmatprep.subr.msk.bf16.mxu1 %vm6520_vm3, %v5588_v59 }
 0x2ed   : > { %5593 = vmatpush3.bf16.xpose.msk.msra.mxu1 %vm6520_vm3, %v5588_v59 }
 0x2ee   : > { %v5608_v2 = vpack.c.bf16 %v5731_v0, %v5730_v1  ;;  %5595 = vmatprep.subr.bf16.mxu1 %v6472_v29 }
 0x2ef   : > { %v1918_v3 = vpop.permute.xlu0 %1917  ;;  %v1640_v4 = vpop.permute.xlu1 %1639 }
 0x2f0   : > { %5610 = vmatprep.subr.msk.bf16.mxu0 %vm6520_vm3, %v5608_v2  ;;  %5382 = vmatprep.mubr.msk.f32.mxu0 %vm1387_vm2, %v1640_v4 }
 0x2f1   : > { %5613 = vmatpush3.bf16.xpose.msk.msra.mxu0 %vm6520_vm3, %v5608_v2 }
 0x2f2   : > { %5624 = vmatprep.subr.msk.bf16.mxu0 %vm6520_vm3, %v5622_v5 }
 0x2f3   : > { %v1922_v6 = vpop.permute.xlu0 %1921  ;;  %v5739_v7 = vpop.permute.xlu1 %5738 }
 0x2f4   : > { %5355 = vmatmul.mubr.msk.f32.vlgmr.msra.gmra.mrb[8].mxu1 %vm1387_vm2, %v6482_v40  ;;  %v5741_v8 = vunpack.i.h.bf16 %v5739_v7  ;;  %v5740_v9 = vunpack.i.l.bf16 %v5739_v7 }
 0x2f5   : > { %5357 = vmatprep.mubr.msk.f32.mxu1 %vm1387_vm2, %v6492_v43  ;;  %5597 = vmatpush3.bf16.msra.mxu1 %v6472_v29 }
 0x2f6   : > { %5599 = vmatprep.subr.bf16.mxu1 %v6486_v42  ;;  %v5628_v17 = vpack.c.bf16 %v5741_v8, %v5740_v9 }
 0x2f7   : > { %v5744_v10 = vpop.permute.xlu0 %5743  ;;  %v1646_v19 = vpop.permute.xlu1 %1645 }
 0x2f8   : > { %v5746_v14 = vunpack.i.h.bf16 %v5744_v10  ;;  %v5745_v16 = vunpack.i.l.bf16 %v5744_v10  ;;  %5358 = vmatmul.mubr.msk.f32.gmra.mrb[10].mxu1 %vm1387_vm2, %v6506_v44  ;;  %5383 = vmatmul.mubr.msk.f32.vlgmr.msra.gmra.mrb[0].mxu0 %vm1387_vm2, %v1642_v56 }
 0x2f9   : > { %5601 = vmatpush3.bf16.msra.mxu1 %v6486_v42  ;;  %5385 = vmatprep.mubr.msk.f32.mxu0 %vm1387_vm2, %v1644_v61 }
 0x2fa   : > { %5627 = vmatpush3.bf16.xpose.msk.msra.mxu0 %vm6520_vm3, %v5622_v5  ;;  %v6557_v18 = vpack.c.bf16 %v5746_v14, %v5745_v16 }
 0x2fb   : > { %5630 = vmatprep.subr.msk.bf16.mxu0 %vm6520_vm3, %v5628_v17  ;;  %v1920_v20 = vpop.permute.xlu1 %1919 }
 0x2fc   : > { %5386 = vmatmul.mubr.msk.f32.gmra.mrb[2].mxu0 %vm1387_vm2, %v1646_v19  ;;  %5615 = vmatprep.subr.bf16.mxu1 %v6557_v18 }
 0x2fd   : > { %5410 = vmatprep.mubr.msk.f32.mxu0 %vm1387_vm2, %v1918_v3 }
 0x2ff   : > { %v1924_v21 = vpop.permute.xlu1 %1923 }
 0x302   : > { %5633 = vmatpush3.bf16.xpose.msk.msra.mxu0 %vm6520_vm3, %v5628_v17 }
 0x309   : > { %5411 = vmatmul.mubr.msk.f32.vlgmr.msra.gmra.mrb[4].mxu0 %vm1387_vm2, %v1920_v20 }
 0x30a   : > { %5413 = vmatprep.mubr.msk.f32.mxu0 %vm1387_vm2, %v1922_v6 }
 0x30d   : > { %5414 = vmatmul.mubr.msk.f32.gmra.mrb[6].mxu0 %vm1387_vm2, %v1924_v21 }
 0x3c7   : > { %v5356_v23 = vpop.f32.mrb[8].mxu1 }
 0x3c8   : > { %v1494_v25 = vsel %vm1169_vm4, %v5356_v23, -1e+30  ;;  %v1474_v26 = vpop.f32.mrb[9].mxu1 }
 0x3c9   : > { %v1493_v29 = vsel %vm1169_vm4, %v1474_v26, -1e+30  ;;  %v1501_v30 = vsel %vm1497_vm5, %v1494_v25, -inf }
 0x3ca   : > { %1502 = vmax.xlane.f32.xlu1 %v1501_v30  ;;  %v1498_v31 = vsel %vm1497_vm5, %v1493_v29, -inf }
 0x3cb   : > { %v5359_v32 = vpop.f32.mrb[10].mxu1  ;;  %v5384_v33 = vpop.f32.mrb[0].mxu0  ;;  %1499 = vmax.xlane.f32.xlu0 %v1498_v31 }
 0x3cc   : > { %v6581_v11 = vsel %vm1169_vm4, %v5384_v33, -1e+30  ;;  %v1484_v34 = vpop.f32.mrb[11].mxu1  ;;  %v1737_v35 = vpop.f32.mrb[1].mxu0  ;;  %v1496_v45 = vsel %vm1169_vm4, %v5359_v32, -1e+30 }
 0x3cd   : > { %v6585_v36 = vsel %vm1169_vm4, %v1737_v35, -1e+30  ;;  %v1763_v37 = vsel %vm1497_vm5, %v6581_v11, -inf  ;;  %v1507_v50 = vsel %vm1497_vm5, %v1496_v45, -inf  ;;  %v1495_v52 = vsel %vm1169_vm4, %v1484_v34, -1e+30 }
 0x3ce   : > { %1764 = vmax.xlane.f32.xlu1 %v1763_v37  ;;  %v1760_v42 = vsel %vm1497_vm5, %v6585_v36, -inf  ;;  %v1504_v53 = vsel %vm1497_vm5, %v1495_v52, -inf }
 0x3cf   : > { %v5387_v46 = vpop.f32.mrb[2].mxu0  ;;  %1761 = vmax.xlane.f32.xlu0 %v1760_v42 }
 0x3d0   : > { %v6595_v47 = vsel %vm1169_vm4, %v5387_v46, -1e+30  ;;  %v1747_v48 = vpop.f32.mrb[3].mxu0 }
 0x3d1   : > { %v1769_v49 = vsel %vm1497_vm5, %v6595_v47, -inf  ;;  %v6605_v54 = vsel %vm1169_vm4, %v1747_v48, -1e+30 }
 0x3d2   : > { %1770 = vmax.xlane.f32.xlu1 %v1769_v49  ;;  %v1766_v55 = vsel %vm1497_vm5, %v6605_v54, -inf }
 0x3d3   : > { %1508 = vmax.xlane.f32.xlu0 %v1507_v50 }
 0x3d7   : > { %1505 = vmax.xlane.f32.xlu0 %v1504_v53 }
 0x3db   : > { %1767 = vmax.xlane.f32.xlu0 %v1766_v55 }
 0x3dc   : > { %v5412_v56 = vpop.f32.mrb[4].mxu0 }
 0x3dd   : > { %v6611_v57 = vsel %vm1169_vm4, %v5412_v56, -1e+30  ;;  %v2015_v58 = vpop.f32.mrb[5].mxu0 }
 0x3de   : > { %v6615_v59 = vsel %vm1169_vm4, %v2015_v58, -1e+30  ;;  %v2041_v60 = vsel %vm1497_vm5, %v6611_v57, -inf }
 0x3df   : > { %2042 = vmax.xlane.f32.xlu1 %v2041_v60  ;;  %v2038_v61 = vsel %vm1497_vm5, %v6615_v59, -inf }
 0x3e0   : > { %v5415_v62 = vpop.f32.mrb[6].mxu0  ;;  %2039 = vmax.xlane.f32.xlu0 %v2038_v61 }
 0x3e1   : > { %v6623_v63 = vsel %vm1169_vm4, %v5415_v62, -1e+30  ;;  %v2025_v0 = vpop.f32.mrb[7].mxu0 }
 0x3e2   : > { %v2047_v1 = vsel %vm1497_vm5, %v6623_v63, -inf  ;;  %v6641_v2 = vsel %vm1169_vm4, %v2025_v0, -1e+30 }
 0x3e4   : > { %2048 = vmax.xlane.f32.xlu0 %v2047_v1 }
 0x3f0   : > { %5758 = vrot.lane.b32.xlu1 %v6484_v41, %s6127_s21 }
 0x3f4   : > { %5763 = vrot.lane.b32.xlu1 %v6468_v27, %s6128_s5  ;;  %v2044_v27 = vsel %vm1497_vm5, %v6641_v2, -inf }
 0x3f8   : > { %5768 = vrot.lane.b32.xlu1 %v6480_v38, %s6128_s5  ;;  %v5749_v38 = vpop.permute.xlu1 %5748 }
 0x3f9   : > { %v5750_v17 = vunpack.i.l.bf16 %v5749_v38 }
 0x3fa   : > { %5753 = vrot.lane.b32.xlu0 %v6470_v28, %s6127_s21 }
 0x3fe   : > { %2191 = vrot.lane.b32.xlu0 %v6464_v24, %s6129_s9 }
 0x402   : > { %2195 = vrot.lane.b32.xlu0 %v6492_v43, %s6129_s9 }
 0x41c   : > { %2045 = vmax.xlane.f32.xlu1 %v2044_v27 }
 0x42d   : > { %2193 = vrot.lane.b32.xlu1 %v6482_v40, %s6129_s9  ;;  %v5751_v40 = vunpack.i.h.bf16 %v5749_v38 }
 0x42f   : > { %v5618_v32 = vpack.c.bf16 %v5751_v40, %v5750_v17 }
 0x431   : > { %2197 = vrot.lane.b32.xlu1 %v6506_v44, %s6129_s9 }
 0x457   : > { %v1503_v3 = vpop.xlane.xlu1 %1502 }
 0x458   : > { %v1511_v24 = vsub.f32 %v1494_v25, %v1503_v3  ;;  %v1500_v4 = vpop.xlane.xlu0 %1499 }
 0x459   : > { %v1510_v5 = vsub.f32 %v1493_v29, %v1500_v4 }
 0x45a   : > { %v1516_v43 = vmul.f32 1.442695, %v1511_v24 }
 0x45b   : > { %v1514_v6 = vmul.f32 1.442695, %v1510_v5  ;;  %v1765_v9 = vpop.xlane.xlu1 %1764 }
 0x45c   : > { %v1762_v7 = vpop.xlane.xlu0 %1761  ;;  %v1773_v44 = vsub.f32 %v6581_v11, %v1765_v9 }
 0x45d   : > { %5906 = vpow2.f32 %v1514_v6  ;;  %v1772_v14 = vsub.f32 %v6585_v36, %v1762_v7 }
 0x45e   : > { %5908 = vpow2.f32 %v1516_v43  ;;  %v1778_v33 = vmul.f32 1.442695, %v1773_v44 }
 0x45f   : > { %v1776_v23 = vmul.f32 1.442695, %v1772_v14  ;;  %v1771_v25 = vpop.xlane.xlu1 %1770 }
 0x460   : > { %v1509_v8 = vpop.xlane.xlu0 %1508  ;;  %v1775_v11 = vsub.f32 %v6595_v47, %v1771_v25 }
 0x461   : > { %v1513_v10 = vsub.f32 %v1496_v45, %v1509_v8 }
 0x462   : > { %v1782_v37 = vmul.f32 1.442695, %v1775_v11 }
 0x463   : > { %v1520_v20 = vmul.f32 1.442695, %v1513_v10 }
 0x464   : > { %v1506_v16 = vpop.xlane.xlu0 %1505 }
 0x465   : > { %v1512_v19 = vsub.f32 %v1495_v52, %v1506_v16 }
 0x467   : > { %v6651_v21 = vpop.eup %5906  ;;  %v1518_v26 = vmul.f32 1.442695, %v1512_v19 }
 0x468   : > { %v6653_v29 = vpop.eup %5908  ;;  %5368 = vmatprep.mubr.msk.f32.mxu1 %vm1497_vm5, %v6651_v21  ;;  %v1768_v30 = vpop.xlane.xlu0 %1767 }
 0x469   : > { %5910 = vpow2.f32 %v1518_v26  ;;  %v1774_v31 = vsub.f32 %v6605_v54, %v1768_v30  ;;  %5369 = vmatmul.mubr.msk.f32.vlgmr.msra.gmra.mrb[12].mxu1 %vm1497_vm5, %v6653_v29 }
 0x46a   : > { %5912 = vpow2.f32 %v1520_v20  ;;  %5617 = vmatpush3.bf16.msra.mxu1 %v6557_v18 }
 0x46b   : > { %5914 = vpow2.f32 %v1776_v23  ;;  %v1780_v34 = vmul.f32 1.442695, %v1774_v31  ;;  %5619 = vmatprep.subr.bf16.mxu1 %v5618_v32 }
 0x46c   : > { %v2043_v35 = vpop.xlane.xlu1 %2042  ;;  %5916 = vpow2.f32 %v1778_v33 }
 0x46d   : > { %v2040_v36 = vpop.xlane.xlu0 %2039  ;;  %5918 = vpow2.f32 %v1780_v34  ;;  %v2051_v45 = vsub.f32 %v6611_v57, %v2043_v35 }
 0x46e   : > { %v2050_v42 = vsub.f32 %v6615_v59, %v2040_v36  ;;  %5621 = vmatpush3.bf16.msra.mxu1 %v5618_v32  ;;  %5920 = vpow2.f32 %v1782_v37 }
 0x46f   : > { %v2056_v18 = vmul.f32 1.442695, %v2051_v45 }
 0x470   : > { %v2054_v46 = vmul.f32 1.442695, %v2050_v42  ;;  %v5759_v48 = vpop.permute.xlu1 %5758 }
 0x471   : > { %v2049_v49 = vpop.xlane.xlu0 %2048  ;;  %v5761_v54 = vunpack.i.h.bf16 %v5759_v48  ;;  %v5760_v55 = vunpack.i.l.bf16 %v5759_v48 }
 0x472   : > { %5922 = vpow2.f32 %v2054_v46  ;;  %v2053_v7 = vsub.f32 %v6623_v63, %v2049_v49 }
 0x473   : > { %v6664_v47 = vpop.eup %5910  ;;  %5924 = vpow2.f32 %v2056_v18  ;;  %v5638_v1 = vpack.c.bf16 %v5761_v54, %v5760_v55 }
 0x474   : > { %v6666_v50 = vpop.eup %5912  ;;  %5371 = vmatprep.mubr.msk.f32.mxu1 %vm1497_vm5, %v6664_v47  ;;  %v5764_v58 = vpop.permute.xlu1 %5763  ;;  %v2060_v10 = vmul.f32 1.442695, %v2053_v7 }
 0x475   : > { %v6670_v52 = vpop.eup %5914  ;;  %v5754_v53 = vpop.permute.xlu0 %5753  ;;  %5372 = vmatmul.mubr.msk.f32.gmra.mrb[14].mxu1 %vm1497_vm5, %v6666_v50  ;;  %v5766_v62 = vunpack.i.h.bf16 %v5764_v58  ;;  %v5765_v0 = vunpack.i.l.bf16 %v5764_v58 }
 0x476   : > { %v5756_v56 = vunpack.i.h.bf16 %v5754_v53  ;;  %v5755_v57 = vunpack.i.l.bf16 %v5754_v53  ;;  %5396 = vmatprep.mubr.msk.f32.mxu1 %vm1497_vm5, %v6670_v52  ;;  %v6676_v59 = vpop.eup %5916 }
 0x477   : > { %v6678_v61 = vpop.eup %5918  ;;  %v5642_v3 = vpack.c.bf16 %v5766_v62, %v5765_v0  ;;  %v1787_v58 = vsel %vm1497_vm5, %v6676_v59, 0.0 }
 0x478   : > { %v5634_v60 = vpack.c.bf16 %v5756_v56, %v5755_v57  ;;  %v6684_v27 = vpop.eup %5920  ;;  %v5769_v24 = vpop.permute.xlu1 %5768  ;;  %v1784_v56 = vsel %vm1497_vm5, %v6670_v52, 0.0 }
 0x479   : > { %5397 = vmatmul.mubr.msk.f32.vlgmr.msra.gmra.mrb[16].mxu1 %vm1497_vm5, %v6676_v59  ;;  %v5771_v5 = vunpack.i.h.bf16 %v5769_v24  ;;  %v5770_v43 = vunpack.i.l.bf16 %v5769_v24  ;;  %v2192_v40 = vpop.permute.xlu0 %2191  ;;  %v1793_v57 = vsel %vm1497_vm5, %v6684_v27, 0.0 }
 0x47a   : > { %5635 = vmatprep.subr.bf16.mxu1 %v5634_v60  ;;  %5399 = vmatprep.mubr.msk.f32.mxu1 %vm1497_vm5, %v6678_v61 }
 0x47b   : > { %5637 = vmatpush3.bf16.msra.mxu1 %v5634_v60  ;;  %v5648_v6 = vpack.c.bf16 %v5771_v5, %v5770_v43 }
 0x47c   : > { %5639 = vmatprep.subr.bf16.mxu1 %v5638_v1  ;;  %v6686_v38 = vpop.eup %5922 }
 0x47d   : > { %5400 = vmatmul.mubr.msk.f32.gmra.mrb[18].mxu1 %vm1497_vm5, %v6684_v27  ;;  %v5925_v4 = vpop.eup %5924  ;;  %v2196_v51 = vpop.permute.xlu0 %2195  ;;  %v2062_v52 = vsel %vm1497_vm5, %v6686_v38, 0.0 }
 0x47e   : > { %5424 = vmatprep.mubr.msk.f32.mxu1 %vm1497_vm5, %v6686_v38  ;;  %v2065_v22 = vsel %vm1497_vm5, %v5925_v4, 0.0 }
 0x47f   : > { %5641 = vmatpush3.bf16.msra.mxu1 %v5638_v1 }
 0x480   : > { %5644 = vmatprep.subr.msk.bf16.mxu1 %vm6520_vm3, %v5642_v3 }
 0x482   : > { %5425 = vmatmul.mubr.msk.f32.vlgmr.msra.gmra.mrb[20].mxu1 %vm1497_vm5, %v5925_v4 }
 0x488   : > { %5647 = vmatpush3.bf16.xpose.msk.msra.mxu1 %vm6520_vm3, %v5642_v3 }
 0x489   : > { %5650 = vmatprep.subr.msk.bf16.mxu1 %vm6520_vm3, %v5648_v6 }
 0x490   : > { %5653 = vmatpush3.bf16.xpose.msk.msra.mxu1 %vm6520_vm3, %v5648_v6 }
 0x4a9   : > { %v2046_v8 = vpop.xlane.xlu1 %2045 }
 0x4aa   : > { %v2052_v9 = vsub.f32 %v6641_v2, %v2046_v8 }
 0x4ac   : > { %v2058_v14 = vmul.f32 1.442695, %v2052_v9 }
 0x4ad   : > { %v2194_v19 = vpop.permute.xlu1 %2193 }
 0x4ae   : > { %5926 = vpow2.f32 %v2058_v14 }
 0x4af   : > { %5928 = vpow2.f32 %v2060_v10 }
 0x4b1   : > { %v2198_v63 = vpop.permute.xlu1 %2197 }
 0x4b8   : > { %v5927_v16 = vpop.eup %5926 }
 0x4b9   : > { %v5929_v17 = vpop.eup %5928  ;;  %5427 = vmatprep.mubr.msk.f32.mxu1 %vm1497_vm5, %v5927_v16  ;;  %v2068_v60 = vsel %vm1497_vm5, %v5927_v16, 0.0 }
 0x4ba   : > { %5428 = vmatmul.mubr.msk.f32.gmra.mrb[22].mxu1 %vm1497_vm5, %v5929_v17 }
 0x4bb   : > { %5438 = vmatprep.mubr.msk.f32.mxu1 %vm1387_vm2, %v2192_v40 }
 0x4be   : > { %5439 = vmatmul.mubr.msk.f32.vlgmr.msra.gmra.mrb[24].mxu1 %vm1387_vm2, %v2194_v19 }
 0x4bf   : > { %5441 = vmatprep.mubr.msk.f32.mxu1 %vm1387_vm2, %v2196_v51 }
 0x4c2   : > { %5442 = vmatmul.mubr.msk.f32.gmra.mrb[26].mxu1 %vm1387_vm2, %v2198_v63 }
 0x53c   : > { %v6709_v2 = vpop.f32.mrb[12].mxu1 }
 0x53d   : > { %v6711_v44 = vpop.f32.mrb[13].mxu1 }
 0x548   : > { %v6713_v20 = vpop.f32.mrb[14].mxu1 }
 0x549   : > { %v6715_v23 = vpop.f32.mrb[15].mxu1 }
 0x54c   : > { %v6717_v25 = vpop.f32.mrb[16].mxu1 }
 0x54d   : > { %v6719_v26 = vpop.f32.mrb[17].mxu1 }
 0x550   : > { %v6721_v30 = vpop.f32.mrb[18].mxu1 }
 0x551   : > { %v6723_v31 = vpop.f32.mrb[19].mxu1 }
 0x555   : > { %v6725_v32 = vpop.f32.mrb[20].mxu1 }
 0x556   : > { %v6727_v33 = vpop.f32.mrb[21].mxu1 }
 0x58d   : > { %v6729_v11 = vpop.f32.mrb[22].mxu1 }
 0x58e   : > { %v6731_v34 = vpop.f32.mrb[23].mxu1 }
 0x591   : > { %v5440_v35 = vpop.f32.mrb[24].mxu1 }
 0x592   : > { %v2309_v36 = vsel %vm1169_vm4, %v5440_v35, -1e+30  ;;  %v2289_v37 = vpop.f32.mrb[25].mxu1 }
 0x593   : > { %v2308_v42 = vsel %vm1169_vm4, %v2289_v37, -1e+30  ;;  %v2315_v45 = vsel %vm1497_vm5, %v2309_v36, -inf }
 0x594   : > { %2316 = vmax.xlane.f32.xlu1 %v2315_v45  ;;  %v2312_v46 = vsel %vm1497_vm5, %v2308_v42, -inf }
 0x595   : > { %2313 = vmax.xlane.f32.xlu0 %v2312_v46  ;;  %v5443_v48 = vpop.f32.mrb[26].mxu1  ;;  %v1531_v46 = vsel %vm1497_vm5, %v6666_v50, 0.0 }
 0x596   : > { %v2311_v49 = vsel %vm1169_vm4, %v5443_v48, -1e+30  ;;  %v2299_v18 = vpop.f32.mrb[27].mxu1  ;;  %v1522_v48 = vsel %vm1497_vm5, %v6651_v21, 0.0 }
 0x597   : > { %v2321_v53 = vsel %vm1497_vm5, %v2311_v49, -inf  ;;  %v2310_v54 = vsel %vm1169_vm4, %v2299_v18, -1e+30 }
 0x598   : > { %v2318_v55 = vsel %vm1497_vm5, %v2310_v54, -inf }
 0x599   : > { %2322 = vmax.xlane.f32.xlu0 %v2321_v53 }
 0x59d   : > { %2319 = vmax.xlane.f32.xlu0 %v2318_v55 }
 0x5a5   : > { %5778 = vrot.lane.b32.xlu1 %v6484_v41, %s6129_s9  ;;  %v2071_v41 = vsel %vm1497_vm5, %v5929_v17, 0.0 }
 0x5b3   : > { %5773 = vrot.lane.b32.xlu0 %v6470_v28, %s6129_s9  ;;  %v1790_v28 = vsel %vm1497_vm5, %v6678_v61, 0.0 }
 0x5c9   : > { %1785 = vadd.xlane.f32.xlu1 %v1784_v56 }
 0x5cd   : > { %1794 = vadd.xlane.f32.xlu1 %v1793_v57 }
 0x5d1   : > { %2066 = vadd.xlane.f32.xlu1 %v2065_v22 }
 0x5d2   : > { %1788 = vadd.xlane.f32.xlu0 %v1787_v58 }
 0x5d5   : > { %2072 = vadd.xlane.f32.xlu1 %v2071_v41 }
 0x5d6   : > { %1791 = vadd.xlane.f32.xlu0 %v1790_v28 }
 0x5da   : > { %2063 = vadd.xlane.f32.xlu0 %v2062_v52 }
 0x5de   : > { %2069 = vadd.xlane.f32.xlu0 %v2068_v60 }
 0x621   : > { %v2317_v62 = vpop.xlane.xlu1 %2316 }
 0x622   : > { %v2325_v0 = vsub.f32 %v2309_v36, %v2317_v62  ;;  %v2314_v1 = vpop.xlane.xlu0 %2313 }
 0x623   : > { %v2324_v27 = vsub.f32 %v2308_v42, %v2314_v1  ;;  %v1525_v42 = vsel %vm1497_vm5, %v6653_v29, 0.0  ;;  %v1528_v29 = vsel %vm1497_vm5, %v6664_v47, 0.0 }
 0x624   : > { %v2330_v59 = vmul.f32 1.442695, %v2325_v0 }
 0x625   : > { %v2328_v3 = vmul.f32 1.442695, %v2324_v27  ;;  %v5779_v43 = vpop.permute.xlu1 %5778 }
 0x626   : > { %5930 = vpow2.f32 %v2330_v59  ;;  %v2323_v24 = vpop.xlane.xlu0 %2322  ;;  %v5781_v7 = vunpack.i.h.bf16 %v5779_v43  ;;  %v5780_v9 = vunpack.i.l.bf16 %v5779_v43 }
 0x627   : > { %5932 = vpow2.f32 %v2328_v3  ;;  %v2327_v4 = vsub.f32 %v2311_v49, %v2323_v24 }
 0x628   : > { %v5658_v63 = vpack.c.bf16 %v5781_v7, %v5780_v9 }
 0x629   : > { %v2334_v5 = vmul.f32 1.442695, %v2327_v4 }
 0x62a   : > { %v2320_v61 = vpop.xlane.xlu0 %2319 }
 0x62b   : > { %5934 = vpow2.f32 %v2334_v5  ;;  %v2326_v6 = vsub.f32 %v2310_v54, %v2320_v61  ;;  %v5854_v5 = vld [vmem:[%s6345_s6] sm:$0xff]   ;;  %v5855_v61 = vld [vmem:[%s6345_s6 + $0x8] sm:$0xff]  }
 0x62d   : > { %v2332_v38 = vmul.f32 1.442695, %v2326_v6 }
 0x62e   : > { %v5774_v8 = vpop.permute.xlu0 %5773 }
 0x62f   : > { %5936 = vpow2.f32 %v2332_v38  ;;  %v5776_v10 = vunpack.i.h.bf16 %v5774_v8  ;;  %v5775_v14 = vunpack.i.l.bf16 %v5774_v8 }
 0x630   : > { %v5931_v16 = vpop.eup %5930 }
 0x631   : > { %v5933_v40 = vpop.eup %5932  ;;  %v5654_v17 = vpack.c.bf16 %v5776_v10, %v5775_v14  ;;  %v2339_v19 = vsel %vm1497_vm5, %v5931_v16, 0.0 }
 0x632   : > { %2340 = vadd.xlane.f32.xlu1 %v2339_v19  ;;  %5452 = vmatprep.mubr.msk.f32.mxu0 %vm1497_vm5, %v5933_v40  ;;  %v2336_v51 = vsel %vm1497_vm5, %v5933_v40, 0.0 }
 0x633   : > { %2337 = vadd.xlane.f32.xlu0 %v2336_v51  ;;  %5655 = vmatprep.subr.bf16.mxu0 %v5654_v17 }
 0x634   : > { %5657 = vmatpush3.bf16.msra.mxu0 %v5654_v17 }
 0x635   : > { %v5935_v35 = vpop.eup %5934  ;;  %5659 = vmatprep.subr.bf16.mxu0 %v5658_v63 }
 0x636   : > { %v2345_v36 = vsel %vm1497_vm5, %v5935_v35, 0.0 }
 0x637   : > { %2346 = vadd.xlane.f32.xlu1 %v2345_v36 }
 0x638   : > { %5661 = vmatpush3.bf16.msra.mxu0 %v5658_v63 }
 0x639   : > { %v5937_v37 = vpop.eup %5936  ;;  %5458 = vmatprep.subr.bf16.mxu0 %v5854_v5 }
 0x63a   : > { %v2342_v45 = vsel %vm1497_vm5, %v5937_v37, 0.0 }
 0x63b   : > { %1526 = vadd.xlane.f32.xlu1 %v1525_v42  ;;  %2343 = vadd.xlane.f32.xlu0 %v2342_v45 }
 0x63c   : > { %5453 = vmatmul.mubr.msk.f32.vlgmr.msra.gmra.mrb[8].mxu0 %vm1497_vm5, %v5931_v16 }
 0x63d   : > { %5455 = vmatprep.mubr.msk.f32.mxu0 %vm1497_vm5, %v5937_v37  ;;  %5459 = vmatpush3.bf16.msra.mxu0 %v5854_v5 }
 0x63e   : > { %5460 = vmatprep.subr.bf16.mxu0 %v5855_v61 }
 0x63f   : > { %1532 = vadd.xlane.f32.xlu1 %v1531_v46  ;;  %1523 = vadd.xlane.f32.xlu0 %v1522_v48 }
 0x640   : > { %5456 = vmatmul.mubr.msk.f32.gmra.mrb[10].mxu0 %vm1497_vm5, %v5935_v35 }
 0x641   : > { %5461 = vmatpush3.bf16.msra.mxu0 %v5855_v61 }
 0x643   : > { %1529 = vadd.xlane.f32.xlu0 %v1528_v29 }
 0x656   : > { %v1786_v49 = vpop.xlane.xlu1 %1785 }
 0x657   : > { %5938 = vrcp.f32 %v1786_v49 }
 0x65a   : > { %v1795_v18 = vpop.xlane.xlu1 %1794 }
 0x65e   : > { %v2067_v54 = vpop.xlane.xlu1 %2066 }
 0x65f   : > { %v1789_v53 = vpop.xlane.xlu0 %1788 }
 0x660   : > { %5940 = vrcp.f32 %v1789_v53 }
 0x661   : > { %5942 = vrcp.f32 %v1795_v18  ;;  %v5939_v56 = vpop.eup %5938 }
 0x662   : > { %v2073_v50 = vpop.xlane.xlu1 %2072  ;;  %v1913_v47 = vmul.f32 %v5939_v56, %v6719_v26 }
 0x663   : > { %v1792_v55 = vpop.xlane.xlu0 %1791 }
 0x664   : > { %5944 = vrcp.f32 %v1792_v55 }
 0x665   : > { %5946 = vrcp.f32 %v2067_v54 }
 0x667   : > { %v2064_v21 = vpop.xlane.xlu0 %2063 }
 0x668   : > { %5948 = vrcp.f32 %v2064_v21 }
 0x669   : > { %5950 = vrcp.f32 %v2073_v50 }
 0x66a   : > { %v5941_v57 = vpop.eup %5940 }
 0x66b   : > { %v2070_v22 = vpop.xlane.xlu0 %2069  ;;  %v1914_v58 = vmul.f32 %v5941_v57, %v6717_v25  ;;  %v5943_v41 = vpop.eup %5942 }
 0x66c   : > { %5952 = vrcp.f32 %v2070_v22  ;;  %v1916_v62 = vmul.f32 %v5943_v41, %v6721_v30 }
 0x66d   : > { %v5782_v28 = vpack.i.bf16 %v1914_v58, %v1913_v47 }
 0x66e   : > { %v5945_v52 = vpop.eup %5944 }
 0x66f   : > { %5783 = vrot.lane.b32.xlu0 %v5782_v28, %s6128_s5  ;;  %v1915_v60 = vmul.f32 %v5945_v52, %v6723_v31  ;;  %v5947_v0 = vpop.eup %5946 }
 0x670   : > { %v2188_v25 = vmul.f32 %v5947_v0, %v6725_v32 }
 0x671   : > { %v5787_v1 = vpack.i.bf16 %v1916_v62, %v1915_v60 }
 0x672   : > { %v5949_v27 = vpop.eup %5948 }
 0x673   : > { %5788 = vrot.lane.b32.xlu1 %v5787_v1, %s6128_s5  ;;  %v2187_v26 = vmul.f32 %v5949_v27, %v6727_v33  ;;  %v5951_v59 = vpop.eup %5950 }
 0x674   : > { %v2190_v30 = vmul.f32 %v5951_v59, %v6729_v11  ;;  %v5857_v11 = vld [vmem:[%s6345_s6 + $0x18] sm:$0xff]  }
 0x675   : > { %v5792_v3 = vpack.i.bf16 %v2188_v25, %v2187_v26 }
 0x676   : > { %v5953_v24 = vpop.eup %5952 }
 0x677   : > { %5793 = vrot.lane.b32.xlu1 %v5792_v3, %s6125_s23  ;;  %v2189_v31 = vmul.f32 %v5953_v24, %v6731_v34  ;;  %v5856_v34 = vld [vmem:[%s6345_s6 + $0x10] sm:$0xff]  }
 0x678   : > { %5462 = vmatprep.subr.bf16.mxu0 %v5856_v34 }
 0x679   : > { %v5797_v4 = vpack.i.bf16 %v2190_v30, %v2189_v31  ;;  %5463 = vmatpush3.bf16.msra.mxu0 %v5856_v34 }
 0x67a   : > { %5464 = vmatprep.subr.bf16.mxu0 %v5857_v11 }
 0x67b   : > { %5798 = vrot.lane.b32.xlu1 %v5797_v4, %s6125_s23 }
 0x67d   : > { %5465 = vmatpush3.bf16.msra.mxu0 %v5857_v11  ;;  %v5067_v11 = vld [vmem:[%s7390_s3] ss:$0 sm:$0xff] }
 0x6bf   : > { %v2341_v32 = vpop.xlane.xlu1 %2340 }
 0x6c0   : > { %v2338_v33 = vpop.xlane.xlu0 %2337  ;;  %5954 = vrcp.f32 %v2341_v32 }
 0x6c1   : > { %5956 = vrcp.f32 %v2338_v33 }
 0x6c4   : > { %v2347_v43 = vpop.xlane.xlu1 %2346 }
 0x6c5   : > { %5958 = vrcp.f32 %v2347_v43 }
 0x6c8   : > { %v2344_v6 = vpop.xlane.xlu0 %2343  ;;  %v1527_v37 = vpop.xlane.xlu1 %1526 }
 0x6c9   : > { %5960 = vrcp.f32 %v2344_v6 }
 0x6ca   : > { %v5955_v38 = vpop.eup %5954  ;;  %5962 = vrcp.f32 %v1527_v37 }
 0x6cb   : > { %v5957_v8 = vpop.eup %5956 }
 0x6cc   : > { %v1524_v42 = vpop.xlane.xlu0 %1523  ;;  %v1533_v45 = vpop.xlane.xlu1 %1532 }
 0x6cd   : > { %5964 = vrcp.f32 %v1524_v42 }
 0x6ce   : > { %5966 = vrcp.f32 %v1533_v45 }
 0x6cf   : > { %v5959_v16 = vpop.eup %5958 }
 0x6d0   : > { %v1530_v46 = vpop.xlane.xlu0 %1529 }
 0x6d1   : > { %5968 = vrcp.f32 %v1530_v46 }
 0x6d3   : > { %v5961_v19 = vpop.eup %5960 }
 0x6d4   : > { %v5963_v18 = vpop.eup %5962 }
 0x6d5   : > { %v1636_v21 = vmul.f32 %v5963_v18, %v6709_v2 }
 0x6d7   : > { %v5965_v53 = vpop.eup %5964 }
 0x6d8   : > { %v1635_v50 = vmul.f32 %v5965_v53, %v6711_v44  ;;  %v5967_v22 = vpop.eup %5966 }
 0x6d9   : > { %v1638_v25 = vmul.f32 %v5967_v22, %v6713_v20 }
 0x6db   : > { %v5969_v58 = vpop.eup %5968 }
 0x6dc   : > { %v1637_v59 = vmul.f32 %v5969_v58, %v6715_v23 }
 0x6e1   : > { %v5784_v29 = vpop.permute.xlu0 %5783 }
 0x6e2   : > { %v5786_v54 = vunpack.i.h.bf16 %v5784_v29  ;;  %v5785_v55 = vunpack.i.l.bf16 %v5784_v29 }
 0x6e4   : > { %v2514_v41 = vsel %vm1387_vm2, %v1636_v21, %v5786_v54  ;;  %v2513_v28 = vsel %vm1387_vm2, %v1635_v50, %v5785_v55 }
 0x6e5   : > { %v5789_v48 = vpop.permute.xlu1 %5788 }
 0x6e6   : > { %v5791_v60 = vunpack.i.h.bf16 %v5789_v48  ;;  %v5790_v62 = vunpack.i.l.bf16 %v5789_v48 }
 0x6e8   : > { %v2516_v4 = vsel %vm1387_vm2, %v1638_v25, %v5791_v60  ;;  %v2515_v5 = vsel %vm1387_vm2, %v1637_v59, %v5790_v62  ;;  %v5861_v25 = vld [vmem:[%s6367_s27 + $0x8] sm:$0xff]   ;;  %v5862_v59 = vld [vmem:[%s6358_s7 + $0x10] sm:$0xff]  }
 0x6e9   : > { %v5794_v49 = vpop.permute.xlu1 %5793 }
 0x6ea   : > { %v5796_v56 = vunpack.i.h.bf16 %v5794_v49  ;;  %v5795_v57 = vunpack.i.l.bf16 %v5794_v49 }
 0x6ec   : > { %v2517_v27 = vsel %vm1497_vm5, %v2513_v28, %v5795_v57  ;;  %v2518_v44 = vsel %vm1497_vm5, %v2514_v41, %v5796_v56 }
 0x6ed   : > { %v5799_v47 = vpop.permute.xlu1 %5798 }
 0x6ee   : > { %v5801_v2 = vunpack.i.h.bf16 %v5799_v47  ;;  %v5800_v26 = vunpack.i.l.bf16 %v5799_v47 }
 0x6f0   : > { %v2520_v33 = vsel %vm1497_vm5, %v2516_v4, %v5801_v2  ;;  %v2519_v43 = vsel %vm1497_vm5, %v2515_v5, %v5800_v26  ;;  %v6130_v2 = vmov 0.0   ;;  %v5860_v26 = vld [vmem:[%s6358_s7 + $0x8] sm:$0xff]  }
 0x6f1   : > { %5482 = vmatprep.subr.bf16.mxu0 %v6130_v2 }
 0x70f   : > { %v5454_v7 = vpop.f32.mrb[8].mxu0 }
 0x710   : > { %v2462_v9 = vmul.f32 %v5955_v38, %v5454_v7  ;;  %v2442_v10 = vpop.f32.mrb[9].mxu0  ;;  %v6066_v7 = vld [vmem:[#allocation2 + $0x10] sm:$0xff] }
 0x711   : > { %v2461_v14 = vmul.f32 %v5957_v8, %v2442_v10 }
 0x713   : > { %v5802_v40 = vpack.i.bf16 %v2462_v9, %v2461_v14  ;;  %v5457_v17 = vpop.f32.mrb[10].mxu0  ;;  %v6067_v9 = vld [vmem:[#allocation2] sm:$0xff] }
 0x714   : > { %v2464_v51 = vmul.f32 %v5959_v16, %v5457_v17  ;;  %v2452_v63 = vpop.f32.mrb[11].mxu0  ;;  %v6068_v17 = vld [vmem:[#allocation2 + $0x8] sm:$0xff] }
 0x715   : > { %v2463_v35 = vmul.f32 %v5961_v19, %v2452_v63  ;;  %5803 = vrot.lane.b32.xlu0 %v5802_v40, %s6123_s19  ;;  %v6069_v63 = vld [vmem:[#allocation2 + $0x18] sm:$0xff] }
 0x717   : > { %v5807_v36 = vpack.i.bf16 %v2464_v51, %v2463_v35 }
 0x719   : > { %5808 = vrot.lane.b32.xlu1 %v5807_v36, %s6123_s19 }
 0x787   : > { %v5804_v52 = vpop.permute.xlu0 %5803 }
 0x788   : > { %v5806_v0 = vunpack.i.h.bf16 %v5804_v52  ;;  %v5805_v1 = vunpack.i.l.bf16 %v5804_v52 }
 0x78a   : > { %v2523_v3 = vsel %vm2521_vm6, %v2518_v44, %v5806_v0  ;;  %v2522_v24 = vsel %vm2521_vm6, %v2517_v27, %v5805_v1  ;;  %v5858_v27 = vld [vmem:[%s6358_s7] sm:$0xff]  }
 0x78b   : > { %v2526_v31 = vpack.c.bf16 %v2523_v3, %v2522_v24  ;;  %v5809_v30 = vpop.permute.xlu1 %5808  ;;  %v5859_v44 = vld [vmem:[%s6367_s27] sm:$0xff]   ;;  %5470 = vmatprep.subr.bf16.mxu1 %v5858_v27  ;;  %v5863_v3 = vld [vmem:[%s6367_s27 + $0x10] sm:$0xff]   ;;  %v5864_v24 = vld [vmem:[%s6358_s7 + $0x18] sm:$0xff]  }
 0x78c   : > { %v5811_v61 = vunpack.i.h.bf16 %v5809_v30  ;;  %v5810_v32 = vunpack.i.l.bf16 %v5809_v30  ;;  %5471 = vmatpush3.bf16.msra.mxu1 %v5858_v27  ;;  %v2804_v30 = vld [vmem:[%s7391_s28] sm:$0xf] }
 0x78d   : > { %5466 = vmatprep.mubr.msk.bf16.mxu0 %vm1174_vm1, %v2526_v31  ;;  %5472 = vmatprep.subr.bf16.mxu1 %v5860_v26  ;;  %v5865_v31 = vld [vmem:[%s6367_s27 + $0x18] sm:$0xff]   ;;  %s7397_s27 = scalar_lea.vmem %s7304_s11, %s6303_s0 }
 0x78e   : > { %v2525_v20 = vsel %vm2521_vm6, %v2520_v33, %v5811_v61  ;;  %v2524_v23 = vsel %vm2521_vm6, %v2519_v43, %v5810_v32 }
 0x78f   : > { %v2527_v6 = vpack.c.bf16 %v2525_v20, %v2524_v23 }
 0x790   : > { %5473 = vmatpush3.bf16.msra.mxu1 %v5860_v26 }
 0x791   : > { %5467 = vmatmul.mubr.msk.bf16.vlgmr.msra.gmra.mrb[12].mxu0 %vm1174_vm1, %v2527_v6  ;;  %5474 = vmatprep.subr.bf16.mxu1 %v5862_v59 }
 0x792   : > { %5483 = vmatpush3.bf16.msra.mxu0 %v5859_v44  ;;  %5490 = vmatprep.mubr.msk.bf16.mxu0 %vm6131_vm7, %v6130_v2 }
 0x793   : > { %5484 = vmatprep.subr.bf16.mxu0 %v6130_v2 }
 0x794   : > { %5475 = vmatpush3.bf16.msra.mxu1 %v5862_v59 }
 0x795   : > { %5476 = vmatprep.subr.bf16.mxu1 %v5864_v24 }
 0x796   : > { %5485 = vmatpush3.bf16.msra.mxu0 %v5861_v25 }
 0x797   : > { %5486 = vmatprep.subr.bf16.mxu0 %v6130_v2 }
 0x798   : > { %5477 = vmatpush3.bf16.msra.mxu1 %v5864_v24 }
 0x79a   : > { %5487 = vmatpush3.bf16.msra.mxu0 %v5863_v3 }
 0x79b   : > { %5488 = vmatprep.subr.bf16.mxu0 %v6130_v2 }
 0x79e   : > { %5489 = vmatpush3.bf16.msra.mxu0 %v5865_v31 }
 0x7a1   : > { %5491 = vmatmul.mubr.msk.bf16.vlgmr.msra.gmra.mrb[16].mxu0 %vm1174_vm1, %v2804_v30 }
 0x864   : > { %v5468_v34 = vpop.f32.mrb[12].mxu0 }
 0x865   : > { %v2600_v38 = vpop.f32.mrb[13].mxu0  ;;  %v2617_v8 = vadd.f32 %v6066_v7, %v5468_v34 }
 0x866   : > { %v2615_v10 = vadd.f32 %v6067_v9, %v2600_v38  ;;  %v5469_v14 = vpop.f32.mrb[14].mxu0 }
 0x867   : > { %v2603_v16 = vpop.f32.mrb[15].mxu0  ;;  %v6821_v51 = vadd.f32 %v5067_v11, %v2617_v8  ;;  %v2618_v35 = vadd.f32 %v6069_v63, %v5469_v14  ;;  %v5068_v8 = vld [vmem:[%s7393_s20] ss:$0 sm:$0xff] }
 0x868   : > { %v6819_v40 = vadd.f32 %v5067_v11, %v2615_v10  ;;  %v2616_v19 = vadd.f32 %v6068_v17, %v2603_v16 }
 0x869   : > { %v6829_v45 = vadd.f32 %v5067_v11, %v2618_v35  ;;  %v2636_v46 = vsel %vm1174_vm1, %v6821_v51, 0.0 }
 0x86a   : > { %v6823_v36 = vadd.f32 %v5067_v11, %v2616_v19  ;;  %v2630_v37 = vsel %vm1174_vm1, %v6819_v40, 0.0  ;;  %v5069_v19 = vld [vmem:[%s7395_s18] ss:$0 sm:$0xff] }
 0x86b   : > { %2631 = vadd.xlane.f32.xlu0 %v2630_v37  ;;  %v2639_v48 = vsel %vm1174_vm1, %v6829_v45, 0.0 }
 0x86c   : > { %v2633_v42 = vsel %vm1174_vm1, %v6823_v36, 0.0 }
 0x86d   : > { %2634 = vadd.xlane.f32.xlu1 %v2633_v42 }
 0x86f   : > { %2637 = vadd.xlane.f32.xlu0 %v2636_v46 }
 0x873   : > { %2640 = vadd.xlane.f32.xlu0 %v2639_v48 }
 0x8f8   : > { %v2632_v29 = vpop.xlane.xlu0 %2631 }
 0x8f9   : > { %v2642_v49 = vmul.f32 0.015625, %v2632_v29 }
 0x8fa   : > { %v2635_v18 = vpop.xlane.xlu1 %2634 }
 0x8fb   : > { %v6836_v53 = vsub.f32 %v6819_v40, %v2642_v49  ;;  %v2643_v54 = vmul.f32 0.015625, %v2635_v18 }
 0x8fc   : > { %v2638_v55 = vpop.xlane.xlu0 %2637 }
 0x8fd   : > { %v6839_v50 = vsub.f32 %v6823_v36, %v2643_v54  ;;  %v2644_v21 = vmul.f32 0.015625, %v2638_v55  ;;  %v2650_v56 = vmul.f32 %v6836_v53, %v6836_v53 }
 0x8ff   : > { %v6844_v57 = vsub.f32 %v6821_v51, %v2644_v21  ;;  %v2654_v22 = vsel %vm1174_vm1, %v2650_v56, 0.0  ;;  %v2651_v47 = vmul.f32 %v6839_v50, %v6839_v50  ;;  %v2881_v21 = vpop.f32.mrb[16].mxu0 }
 0x900   : > { %2655 = vadd.xlane.f32.xlu0 %v2654_v22  ;;  %v2641_v58 = vpop.xlane.xlu0 %2640 }
 0x901   : > { %v2645_v41 = vmul.f32 0.015625, %v2641_v58  ;;  %v2657_v28 = vsel %vm1174_vm1, %v2651_v47, 0.0  ;;  %v2652_v52 = vmul.f32 %v6844_v57, %v6844_v57 }
 0x902   : > { %2658 = vadd.xlane.f32.xlu1 %v2657_v28 }
 0x903   : > { %v6853_v60 = vsub.f32 %v6829_v45, %v2645_v41  ;;  %v2660_v62 = vsel %vm1174_vm1, %v2652_v52, 0.0  ;;  %v5070_v41 = vld [vmem:[%s7397_s27] ss:$0 sm:$0xff] }
 0x904   : > { %2661 = vadd.xlane.f32.xlu0 %v2660_v62 }
 0x905   : > { %v2653_v0 = vmul.f32 %v6853_v60, %v6853_v60 }
 0x907   : > { %v2663_v1 = vsel %vm1174_vm1, %v2653_v0, 0.0 }
 0x908   : > { %2664 = vadd.xlane.f32.xlu1 %v2663_v1 }
 0x98d   : > { %v2656_v4 = vpop.xlane.xlu0 %2655 }
 0x98e   : > { %v2666_v5 = vmul.f32 0.015625, %v2656_v4 }
 0x98f   : > { %v2659_v61 = vpop.xlane.xlu1 %2658 }
 0x990   : > { %v2670_v32 = vadd.f32 1e-05, %v2666_v5  ;;  %v2667_v33 = vmul.f32 0.015625, %v2659_v61 }
 0x991   : > { %v2662_v43 = vpop.xlane.xlu0 %2661 }
 0x992   : > { %5970 = vrsqrt.f32 %v2670_v32  ;;  %v2671_v20 = vadd.f32 1e-05, %v2667_v33  ;;  %v2668_v23 = vmul.f32 0.015625, %v2662_v43 }
 0x994   : > { %5972 = vrsqrt.f32 %v2671_v20  ;;  %v2672_v6 = vadd.f32 1e-05, %v2668_v23 }
 0x995   : > { %v2665_v34 = vpop.xlane.xlu1 %2664 }
 0x996   : > { %5974 = vrsqrt.f32 %v2672_v6  ;;  %v2669_v11 = vmul.f32 0.015625, %v2665_v34 }
 0x998   : > { %v2673_v38 = vadd.f32 1e-05, %v2669_v11 }
 0x99a   : > { %5976 = vrsqrt.f32 %v2673_v38 }
 0x99c   : > { %v5971_v7 = vpop.eup %5970 }
 0x99d   : > { %v2678_v9 = vmul.f32 %v5971_v7, %v6836_v53 }
 0x99e   : > { %v5973_v10 = vpop.eup %5972 }
 0x99f   : > { %v2679_v14 = vmul.f32 %v5973_v10, %v6839_v50  ;;  %v2689_v16 = vmul.f32 %v5068_v8, %v2678_v9  ;;  %v5077_v50 = vld [vmem:[%s7396_s17] ss:$0 sm:$0xff] }
 0x9a0   : > { %v5975_v17 = vpop.eup %5974  ;;  %v6890_v56 = vadd.f32 %v5077_v50, %v2881_v21 }
 0x9a1   : > { %v2680_v63 = vmul.f32 %v5975_v17, %v6844_v57  ;;  %v2690_v35 = vmul.f32 %v5068_v8, %v2679_v14  ;;  %v2700_v37 = vadd.f32 %v5069_v19, %v2689_v16  ;;  %v5492_v57 = vpop.f32.mrb[17].mxu0 }
 0x9a2   : > { %v2884_v22 = vpop.f32.mrb[18].mxu0  ;;  %3140 = vrot.lane.b32.xlu0 %v6890_v56, %s6126_s29  ;;  %5494 = vmatprep.subr.msk.mxu1 %vm1387_vm2, %v6890_v56 }
 0x9a3   : > { %v2701_v42 = vadd.f32 %v5069_v19, %v2690_v35  ;;  %v2691_v48 = vmul.f32 %v5068_v8, %v2680_v63  ;;  %v5493_v47 = vpop.f32.mrb[19].mxu0 }
 0x9a4   : > { %v5977_v46 = vpop.eup %5976 }
 0x9a5   : > { %v2681_v29 = vmul.f32 %v5977_v46, %v6853_v60  ;;  %v2704_v49 = vpack.c.bf16 %v2701_v42, %v2700_v37  ;;  %v2702_v53 = vadd.f32 %v5069_v19, %v2691_v48 }
 0x9a7   : > { %v2692_v18 = vmul.f32 %v5068_v8, %v2681_v29  ;;  %5478 = vmatprep.mubr.msk.bf16.mxu1 %vm1174_vm1, %v2704_v49 }
 0x9a9   : > { %v2703_v54 = vadd.f32 %v5069_v19, %v2692_v18 }
 0x9ab   : > { %v2705_v55 = vpack.c.bf16 %v2703_v54, %v2702_v53 }
 0x9ad   : > { %5479 = vmatmul.mubr.msk.bf16.vlgmr.msra.gmra.mrb[28].mxu1 %vm1174_vm1, %v2705_v55 }
 0x9ae   : > { %5495 = vmatpush3.xpose.msk.msra.mxu1 %vm1387_vm2, %v6890_v56 }
 0xa14   : > { %v3141_v58 = vpop.permute.xlu0 %3140 }
 0xa15   : > { %5510 = vmatprep.subr.msk.mxu0 %vm1387_vm2, %v3141_v58 }
 0xa16   : > { %5511 = vmatpush3.xpose.msk.msra.mxu0 %vm1387_vm2, %v3141_v58 }
 0xa80   : > { %v5480_v28 = vpop.f32.mrb[28].mxu1 }
 0xa81   : > { %v2794_v52 = vadd.f32 %v5480_v28, %v5070_v41  ;;  %v2785_v60 = vpop.f32.mrb[29].mxu1 }
 0xa82   : > { %v2786_v62 = vadd.f32 %v5070_v41, %v2785_v60  ;;  %v5481_v0 = vpop.f32.mrb[30].mxu1 }
 0xa83   : > { %v2802_v1 = vmul.f32 0.25, %v2794_v52  ;;  %v2797_v27 = vadd.f32 %v5481_v0, %v5070_v41  ;;  %v2788_v44 = vpop.f32.mrb[31].mxu1 }
 0xa84   : > { %v2800_v2 = vmul.f32 0.25, %v2786_v62  ;;  %v2789_v26 = vadd.f32 %v5070_v41, %v2788_v44 }
 0xa85   : > { %v2803_v25 = vmul.f32 0.25, %v2797_v27  ;;  %3136 = vrot.lane.b32.xlu1 %v2802_v1, %s6126_s29 }
 0xa86   : > { %v2801_v59 = vmul.f32 0.25, %v2789_v26  ;;  %5496 = vmatprep.mubr.msk.f32.mxu1 %vm1387_vm2, %v2800_v2 }
 0xa87   : > { %3138 = vrot.lane.b32.xlu0 %v2803_v25, %s6126_s29 }
 0xa88   : > { %5497 = vmatmul.mubr.msk.f32.vlgmr.msra.gmra.mrb[32].mxu1 %vm1387_vm2, %v2801_v59 }
 0xa89   : > { %3132 = vrot.lane.b32.xlu1 %v2800_v2, %s6126_s29  ;;  %5499 = vmatprep.mubr.msk.f32.mxu1 %vm1387_vm2, %v2802_v1 }
 0xa8b   : > { %3381 = vrot.lane.b32.xlu0 %v2800_v2, %s6127_s21 }
 0xa8c   : > { %5500 = vmatmul.mubr.msk.f32.gmra.mrb[34].mxu1 %vm1387_vm2, %v2803_v25 }
 0xa8d   : > { %3134 = vrot.lane.b32.xlu1 %v2801_v59, %s6126_s29  ;;  %s7399_s29 = scalar_lea.vmem %s7309_s16, %s6303_s0 }
 0xa8f   : > { %3385 = vrot.lane.b32.xlu0 %v2802_v1, %s6127_s21 }
 0xa91   : > { %3389 = vrot.lane.b32.xlu1 %v6890_v56, %s6127_s21 }
 0xa93   : > { %3638 = vrot.lane.b32.xlu0 %v6890_v56, %s6129_s9 }
 0xa95   : > { %3383 = vrot.lane.b32.xlu1 %v2801_v59, %s6127_s21 }
 0xa97   : > { %3632 = vrot.lane.b32.xlu0 %v2801_v59, %s6129_s9 }
 0xa99   : > { %3387 = vrot.lane.b32.xlu1 %v2803_v25, %s6127_s21 }
 0xa9b   : > { %3636 = vrot.lane.b32.xlu0 %v2803_v25, %s6129_s9 }
 0xa9d   : > { %3630 = vrot.lane.b32.xlu1 %v2800_v2, %s6129_s9 }
 0xaa1   : > { %3634 = vrot.lane.b32.xlu1 %v2802_v1, %s6129_s9  ;;  %s7400_s9 = sld [smem:[#allocation26_spill]] }
 0xaa5   : > { %3028 = vrot.lane.b32.xlu1 %v6890_v56, %s6124_s24  ;;  %s7398_s24 = scalar_lea.vmem %s7308_s15, %s6303_s0 }
 0xaa7   : > { %s7401_s7 = scalar_lea.vmem %s7400_s9, %s6303_s0  ;;  %s7403_s0 = sld [smem:[#allocation3_spill]] }
 0xaad   : > { %p5155_p8 = scmp.ne.s32.totalorder %s7403_s0, 1 }
 0xaae   : > { %s7404_s4 = sld [smem:[#allocation33_spill]] (!%p5155_p8)  ;;  %s7405_s27 = sld [smem:[#allocation31_spill]] (!%p5155_p8)  ;;  %vm4684_vm9 = vcmask (!%p5155_p8), 31744  }
 0xaf7   : > { %v3137_v3 = vpop.permute.xlu1 %3136 }
 0xaf9   : > { %v3139_v24 = vpop.permute.xlu0 %3138 }
 0xafb   : > { %v3133_v31 = vpop.permute.xlu1 %3132 }
 0xafc   : > { %5512 = vmatprep.mubr.msk.f32.mxu0 %vm1387_vm2, %v3133_v31 }
 0xafd   : > { %v3382_v30 = vpop.permute.xlu0 %3381 }
 0xaff   : > { %v3135_v4 = vpop.permute.xlu1 %3134 }
 0xb00   : > { %5513 = vmatmul.mubr.msk.f32.vlgmr.msra.gmra.mrb[20].mxu0 %vm1387_vm2, %v3135_v4 }
 0xb01   : > { %v3386_v5 = vpop.permute.xlu0 %3385  ;;  %5515 = vmatprep.mubr.msk.f32.mxu0 %vm1387_vm2, %v3137_v3 }
 0xb03   : > { %v3390_v61 = vpop.permute.xlu1 %3389 }
 0xb04   : > { %5516 = vmatmul.mubr.msk.f32.gmra.mrb[22].mxu0 %vm1387_vm2, %v3139_v24  ;;  %5526 = vmatprep.subr.msk.mxu0 %vm1387_vm2, %v3390_v61 }
 0xb05   : > { %v3639_v32 = vpop.permute.xlu0 %3638  ;;  %5527 = vmatpush3.xpose.msk.msra.mxu0 %vm1387_vm2, %v3390_v61  ;;  %5528 = vmatprep.mubr.msk.f32.mxu0 %vm1387_vm2, %v3382_v30 }
 0xb06   : > { %5542 = vmatprep.subr.msk.mxu0 %vm1387_vm2, %v3639_v32 }
 0xb07   : > { %v3384_v33 = vpop.permute.xlu1 %3383 }
 0xb08   : > { %5529 = vmatmul.mubr.msk.f32.vlgmr.msra.gmra.mrb[24].mxu0 %vm1387_vm2, %v3384_v33 }
 0xb09   : > { %5531 = vmatprep.mubr.msk.f32.mxu0 %vm1387_vm2, %v3386_v5  ;;  %5543 = vmatpush3.xpose.msk.msra.mxu0 %vm1387_vm2, %v3639_v32  ;;  %v3633_v20 = vpop.permute.xlu0 %3632 }
 0xb0b   : > { %v3388_v43 = vpop.permute.xlu1 %3387 }
 0xb0c   : > { %5532 = vmatmul.mubr.msk.f32.gmra.mrb[26].mxu0 %vm1387_vm2, %v3388_v43 }
 0xb0d   : > { %v3637_v34 = vpop.permute.xlu0 %3636 }
 0xb0f   : > { %v3631_v23 = vpop.permute.xlu1 %3630 }
 0xb10   : > { %5544 = vmatprep.mubr.msk.f32.mxu0 %vm1387_vm2, %v3631_v23 }
 0xb11   : > { %5545 = vmatmul.mubr.msk.f32.vlgmr.msra.gmra.mrb[28].mxu0 %vm1387_vm2, %v3633_v20 }
 0xb13   : > { %v3635_v6 = vpop.permute.xlu1 %3634 }
 0xb14   : > { %5547 = vmatprep.mubr.msk.f32.mxu0 %vm1387_vm2, %v3635_v6 }
 0xb15   : > { %5548 = vmatmul.mubr.msk.f32.gmra.mrb[30].mxu0 %vm1387_vm2, %v3637_v34 }
 0xb17   : > { %v3029_v11 = vpop.permute.xlu1 %3028 }
 0xb18   : > { %5502 = vmatprep.subr.mxu1 %v3029_v11 }
 0xb19   : > { %5503 = vmatpush3.msra.mxu1 %v3029_v11 }
 0xb5b   : > { %v5498_v38 = vpop.f32.mrb[32].mxu1 }
 0xb5c   : > { %v2968_v7 = vpop.f32.mrb[33].mxu1  ;;  %v2991_v8 = vsel %vm2987_vm8, %v5498_v38, -inf }
 0xb5d   : > { %2992 = vmax.xlane.f32.xlu0 %v2991_v8  ;;  %v2988_v9 = vsel %vm2987_vm8, %v2968_v7, -inf }
 0xb5e   : > { %2989 = vmax.xlane.f32.xlu1 %v2988_v9 }
 0xb5f   : > { %v5501_v10 = vpop.f32.mrb[34].mxu1 }
 0xb60   : > { %v2978_v14 = vpop.f32.mrb[35].mxu1  ;;  %v2997_v16 = vsel %vm2987_vm8, %v5501_v10, -inf }
 0xb61   : > { %2998 = vmax.xlane.f32.xlu0 %v2997_v16  ;;  %v2994_v17 = vsel %vm2987_vm8, %v2978_v14, -inf }
 0xb65   : > { %2995 = vmax.xlane.f32.xlu0 %v2994_v17 }
 0xbd3   : > { %v6947_v19 = vpop.f32.mrb[20].mxu0 }
 0xbd4   : > { %v6949_v63 = vpop.f32.mrb[21].mxu0  ;;  %v3240_v35 = vsel %vm2987_vm8, %v6947_v19, -inf }
 0xbd5   : > { %3241 = vmax.xlane.f32.xlu0 %v3240_v35  ;;  %v3237_v37 = vsel %vm2987_vm8, %v6949_v63, -inf }
 0xbd6   : > { %3238 = vmax.xlane.f32.xlu1 %v3237_v37 }
 0xbd7   : > { %v6955_v42 = vpop.f32.mrb[22].mxu0 }
 0xbd8   : > { %v6957_v46 = vpop.f32.mrb[23].mxu0  ;;  %v3246_v48 = vsel %vm2987_vm8, %v6955_v42, -inf }
 0xbd9   : > { %3247 = vmax.xlane.f32.xlu0 %v3246_v48  ;;  %v3243_v29 = vsel %vm2987_vm8, %v6957_v46, -inf }
 0xbda   : > { %3244 = vmax.xlane.f32.xlu1 %v3243_v29 }
 0xbdb   : > { %v6963_v49 = vpop.f32.mrb[24].mxu0 }
 0xbdc   : > { %v6965_v18 = vpop.f32.mrb[25].mxu0  ;;  %v3489_v53 = vsel %vm2987_vm8, %v6963_v49, -inf }
 0xbdd   : > { %3490 = vmax.xlane.f32.xlu0 %v3489_v53  ;;  %v3486_v54 = vsel %vm2987_vm8, %v6965_v18, -inf }
 0xbde   : > { %3487 = vmax.xlane.f32.xlu1 %v3486_v54 }
 0xbdf   : > { %v6971_v55 = vpop.f32.mrb[26].mxu0 }
 0xbe0   : > { %v6973_v50 = vpop.f32.mrb[27].mxu0  ;;  %v3495_v21 = vsel %vm2987_vm8, %v6971_v55, -inf }
 0xbe1   : > { %3496 = vmax.xlane.f32.xlu0 %v3495_v21  ;;  %v3492_v57 = vsel %vm2987_vm8, %v6973_v50, -inf }
 0xbe2   : > { %3493 = vmax.xlane.f32.xlu1 %v3492_v57 }
 0xbe4   : > { %v6979_v22 = vpop.f32.mrb[28].mxu0 }
 0xbe5   : > { %v6981_v47 = vpop.f32.mrb[29].mxu0  ;;  %v3738_v58 = vsel %vm2987_vm8, %v6979_v22, -inf }
 0xbe6   : > { %3739 = vmax.xlane.f32.xlu0 %v3738_v58  ;;  %v3735_v41 = vsel %vm2987_vm8, %v6981_v47, -inf }
 0xbe7   : > { %3736 = vmax.xlane.f32.xlu1 %v3735_v41 }
 0xbe8   : > { %v6987_v28 = vpop.f32.mrb[30].mxu0 }
 0xbe9   : > { %v6989_v52 = vpop.f32.mrb[31].mxu0  ;;  %v3744_v60 = vsel %vm2987_vm8, %v6987_v28, -inf }
 0xbea   : > { %v2993_v62 = vpop.xlane.xlu0 %2992  ;;  %3745 = vmax.xlane.f32.xlu0 %v3744_v60  ;;  %v3741_v2 = vsel %vm2987_vm8, %v6989_v52, -inf }
 0xbeb   : > { %v3001_v0 = vsub.f32 %v5498_v38, %v2993_v62  ;;  %v2990_v1 = vpop.xlane.xlu1 %2989 }
 0xbec   : > { %v3000_v27 = vsub.f32 %v2968_v7, %v2990_v1 }
 0xbed   : > { %v3006_v44 = vmul.f32 1.442695, %v3001_v0 }
 0xbee   : > { %v3004_v26 = vmul.f32 1.442695, %v3000_v27  ;;  %v2999_v25 = vpop.xlane.xlu0 %2998  ;;  %3742 = vmax.xlane.f32.xlu0 %v3741_v2 }
 0xbef   : > { %v3003_v59 = vsub.f32 %v5501_v10, %v2999_v25 }
 0xbf0   : > { %5978 = vpow2.f32 %v3004_v26 }
 0xbf1   : > { %5980 = vpow2.f32 %v3006_v44  ;;  %v3010_v31 = vmul.f32 1.442695, %v3003_v59 }
 0xbf2   : > { %v2996_v3 = vpop.xlane.xlu0 %2995 }
 0xbf3   : > { %v3002_v24 = vsub.f32 %v2978_v14, %v2996_v3 }
 0xbf5   : > { %v3008_v30 = vmul.f32 1.442695, %v3002_v24 }
 0xbf7   : > { %5982 = vpow2.f32 %v3008_v30 }
 0xbf8   : > { %5984 = vpow2.f32 %v3010_v31  ;;  %3526 = vrot.lane.b32.xlu1 %v6890_v56, %s6125_s23 }
 0xbfa   : > { %v6997_v4 = vpop.eup %5978 }
 0xbfb   : > { %v6999_v5 = vpop.eup %5980  ;;  %5504 = vmatprep.mubr.msk.f32.mxu1 %vm2987_vm8, %v6997_v4 }
 0xbfc   : > { %3775 = vrot.lane.b32.xlu1 %v6890_v56, %s6128_s5  ;;  %5505 = vmatmul.mubr.msk.f32.vlgmr.msra.gmra.mrb[36].mxu1 %vm2987_vm8, %v6999_v5 }
 0xc01   : > { %v7007_v61 = vpop.eup %5982 }
 0xc02   : > { %v7009_v32 = vpop.eup %5984  ;;  %5507 = vmatprep.mubr.msk.f32.mxu1 %vm2987_vm8, %v7007_v61 }
 0xc03   : > { %5508 = vmatmul.mubr.msk.f32.gmra.mrb[38].mxu1 %vm2987_vm8, %v7009_v32 }
 0xc04   : > { %3277 = vrot.lane.b32.xlu0 %v6890_v56, %s6123_s19 }
 0xc62   : > { %v3242_v33 = vpop.xlane.xlu0 %3241 }
 0xc63   : > { %v3250_v43 = vsub.f32 %v6947_v19, %v3242_v33  ;;  %v3239_v20 = vpop.xlane.xlu1 %3238 }
 0xc64   : > { %v3249_v23 = vsub.f32 %v6949_v63, %v3239_v20 }
 0xc65   : > { %v3255_v6 = vmul.f32 1.442695, %v3250_v43 }
 0xc66   : > { %v3253_v34 = vmul.f32 1.442695, %v3249_v23  ;;  %v3248_v11 = vpop.xlane.xlu0 %3247 }
 0xc67   : > { %5986 = vpow2.f32 %v3255_v6  ;;  %v3252_v38 = vsub.f32 %v6955_v42, %v3248_v11  ;;  %v3245_v7 = vpop.xlane.xlu1 %3244 }
 0xc68   : > { %5988 = vpow2.f32 %v3253_v34  ;;  %v3251_v8 = vsub.f32 %v6957_v46, %v3245_v7 }
 0xc69   : > { %v3259_v9 = vmul.f32 1.442695, %v3252_v38 }
 0xc6a   : > { %v3257_v10 = vmul.f32 1.442695, %v3251_v8  ;;  %v3491_v14 = vpop.xlane.xlu0 %3490 }
 0xc6b   : > { %5990 = vpow2.f32 %v3259_v9  ;;  %v3499_v56 = vsub.f32 %v6963_v49, %v3491_v14  ;;  %v3488_v16 = vpop.xlane.xlu1 %3487  ;;  %v3015_v9 = vsel %vm2987_vm8, %v6999_v5, 0.0  ;;  %v3021_v14 = vsel %vm2987_vm8, %v7009_v32, 0.0 }
 0xc6c   : > { %5992 = vpow2.f32 %v3257_v10  ;;  %v3498_v17 = vsub.f32 %v6965_v18, %v3488_v16  ;;  %v3018_v5 = vsel %vm2987_vm8, %v7007_v61, 0.0 }
 0xc6d   : > { %v3504_v19 = vmul.f32 1.442695, %v3499_v56  ;;  %v3012_v56 = vsel %vm2987_vm8, %v6997_v4, 0.0 }
 0xc6e   : > { %v3502_v63 = vmul.f32 1.442695, %v3498_v17  ;;  %v3497_v35 = vpop.xlane.xlu0 %3496 }
 0xc6f   : > { %5994 = vpow2.f32 %v3504_v19  ;;  %v3501_v37 = vsub.f32 %v6971_v55, %v3497_v35  ;;  %v3494_v42 = vpop.xlane.xlu1 %3493 }
 0xc70   : > { %5996 = vpow2.f32 %v3502_v63  ;;  %v3500_v46 = vsub.f32 %v6973_v50, %v3494_v42 }
 0xc71   : > { %v5987_v48 = vpop.eup %5986  ;;  %v3508_v29 = vmul.f32 1.442695, %v3501_v37 }
 0xc72   : > { %v5989_v53 = vpop.eup %5988  ;;  %v3506_v54 = vmul.f32 1.442695, %v3500_v46  ;;  %v3264_v49 = vsel %vm2987_vm8, %v5987_v48, 0.0 }
 0xc73   : > { %5998 = vpow2.f32 %v3508_v29  ;;  %5520 = vmatprep.mubr.msk.f32.mxu1 %vm2987_vm8, %v5989_v53  ;;  %3265 = vadd.xlane.f32.xlu0 %v3264_v49  ;;  %v3740_v18 = vpop.xlane.xlu0 %3739  ;;  %v3261_v21 = vsel %vm2987_vm8, %v5989_v53, 0.0 }
 0xc74   : > { %6000 = vpow2.f32 %v3506_v54  ;;  %v3748_v55 = vsub.f32 %v6979_v22, %v3740_v18  ;;  %3262 = vadd.xlane.f32.xlu1 %v3261_v21  ;;  %v3737_v57 = vpop.xlane.xlu1 %3736 }
 0xc75   : > { %v5991_v58 = vpop.eup %5990  ;;  %v3747_v50 = vsub.f32 %v6981_v47, %v3737_v57 }
 0xc76   : > { %v5993_v41 = vpop.eup %5992  ;;  %v3753_v60 = vmul.f32 1.442695, %v3748_v55  ;;  %v3270_v62 = vsel %vm2987_vm8, %v5991_v58, 0.0  ;;  %v5866_v55 = vld [vmem:[%s6376_s1] sm:$0xff]  }
 0xc77   : > { %v3751_v0 = vmul.f32 1.442695, %v3747_v50  ;;  %3271 = vadd.xlane.f32.xlu0 %v3270_v62  ;;  %v3746_v1 = vpop.xlane.xlu0 %3745  ;;  %v3267_v27 = vsel %vm2987_vm8, %v5993_v41, 0.0  ;;  %5558 = vmatprep.subr.bf16.mxu0 %v5866_v55 }
 0xc78   : > { %6002 = vpow2.f32 %v3753_v60  ;;  %v3750_v44 = vsub.f32 %v6987_v28, %v3746_v1  ;;  %3268 = vadd.xlane.f32.xlu1 %v3267_v27  ;;  %v3527_v31 = vpop.permute.xlu1 %3526  ;;  %5559 = vmatpush3.bf16.msra.mxu0 %v5866_v55  ;;  %v5867_v27 = vld [vmem:[%s6376_s1 + $0x8] sm:$0xff]  }
 0xc79   : > { %v5995_v2 = vpop.eup %5994  ;;  %6004 = vpow2.f32 %v3751_v0  ;;  %5560 = vmatprep.subr.bf16.mxu0 %v5867_v27 }
 0xc7a   : > { %v5997_v22 = vpop.eup %5996  ;;  %v3757_v26 = vmul.f32 1.442695, %v3750_v44  ;;  %v3513_v25 = vsel %vm2987_vm8, %v5995_v2, 0.0 }
 0xc7b   : > { %3514 = vadd.xlane.f32.xlu0 %v3513_v25  ;;  %v3743_v47 = vpop.xlane.xlu0 %3742  ;;  %v3510_v59 = vsel %vm2987_vm8, %v5997_v22, 0.0 }
 0xc7c   : > { %6006 = vpow2.f32 %v3757_v26  ;;  %v3749_v3 = vsub.f32 %v6989_v52, %v3743_v47  ;;  %3511 = vadd.xlane.f32.xlu1 %v3510_v59  ;;  %v3776_v6 = vpop.permute.xlu1 %3775  ;;  %5561 = vmatpush3.bf16.msra.mxu0 %v5867_v27 }
 0xc7d   : > { %v5999_v24 = vpop.eup %5998 }
 0xc7e   : > { %v6001_v30 = vpop.eup %6000  ;;  %v3755_v33 = vmul.f32 1.442695, %v3749_v3  ;;  %v3519_v28 = vsel %vm2987_vm8, %v5999_v24, 0.0 }
 0xc7f   : > { %3520 = vadd.xlane.f32.xlu0 %v3519_v28  ;;  %v3278_v43 = vpop.permute.xlu0 %3277  ;;  %v3516_v20 = vsel %vm2987_vm8, %v6001_v30, 0.0 }
 0xc80   : > { %6008 = vpow2.f32 %v3755_v33  ;;  %3517 = vadd.xlane.f32.xlu1 %v3516_v20  ;;  %5518 = vmatprep.subr.mxu1 %v3278_v43 }
 0xc81   : > { %5519 = vmatpush3.msra.mxu1 %v3278_v43 }
 0xc82   : > { %v6003_v23 = vpop.eup %6002  ;;  %5521 = vmatmul.mubr.msk.f32.vlgmr.msra.gmra.mrb[40].mxu1 %vm2987_vm8, %v5987_v48  ;;  %5534 = vmatprep.subr.mxu1 %v3527_v31 }
 0xc83   : > { %v6005_v52 = vpop.eup %6004  ;;  %5523 = vmatprep.mubr.msk.f32.mxu1 %vm2987_vm8, %v5993_v41  ;;  %5535 = vmatpush3.msra.mxu1 %v3527_v31  ;;  %v3762_v34 = vsel %vm2987_vm8, %v6003_v23, 0.0  ;;  %v5868_v31 = vld [vmem:[%s6376_s1 + $0x10] sm:$0xff]  }
 0xc84   : > { %3763 = vadd.xlane.f32.xlu0 %v3762_v34  ;;  %5550 = vmatprep.subr.mxu1 %v3776_v6  ;;  %v3759_v11 = vsel %vm2987_vm8, %v6005_v52, 0.0 }
 0xc85   : > { %3760 = vadd.xlane.f32.xlu1 %v3759_v11  ;;  %5562 = vmatprep.subr.bf16.mxu0 %v5868_v31 }
 0xc86   : > { %v6007_v38 = vpop.eup %6006  ;;  %5524 = vmatmul.mubr.msk.f32.gmra.mrb[42].mxu1 %vm2987_vm8, %v5991_v58  ;;  %5563 = vmatpush3.bf16.msra.mxu0 %v5868_v31 }
 0xc87   : > { %5536 = vmatprep.mubr.msk.f32.mxu1 %vm2987_vm8, %v5997_v22  ;;  %v3768_v7 = vsel %vm2987_vm8, %v6007_v38, 0.0 }
 0xc88   : > { %3769 = vadd.xlane.f32.xlu0 %v3768_v7 }
 0xc8a   : > { %v6009_v8 = vpop.eup %6008  ;;  %5537 = vmatmul.mubr.msk.f32.vlgmr.msra.gmra.mrb[44].mxu1 %vm2987_vm8, %v5995_v2 }
 0xc8b   : > { %5551 = vmatpush3.msra.mxu1 %v3776_v6  ;;  %5539 = vmatprep.mubr.msk.f32.mxu1 %vm2987_vm8, %v6001_v30  ;;  %v3765_v10 = vsel %vm2987_vm8, %v6009_v8, 0.0  ;;  %v5869_v6 = vld [vmem:[%s6376_s1 + $0x18] sm:$0xff]  }
 0xc8c   : > { %3016 = vadd.xlane.f32.xlu0 %v3015_v9  ;;  %3766 = vadd.xlane.f32.xlu1 %v3765_v10 }
 0xc8d   : > { %5564 = vmatprep.subr.bf16.mxu0 %v5869_v6 }
 0xc8e   : > { %5540 = vmatmul.mubr.msk.f32.gmra.mrb[46].mxu1 %vm2987_vm8, %v5999_v24  ;;  %5565 = vmatpush3.bf16.msra.mxu0 %v5869_v6 }
 0xc8f   : > { %5552 = vmatprep.mubr.msk.f32.mxu1 %vm2987_vm8, %v6005_v52 }
 0xc90   : > { %3022 = vadd.xlane.f32.xlu0 %v3021_v14  ;;  %3013 = vadd.xlane.f32.xlu1 %v3012_v56 }
 0xc92   : > { %5553 = vmatmul.mubr.msk.f32.vlgmr.msra.gmra.mrb[48].mxu1 %vm2987_vm8, %v6003_v23 }
 0xc93   : > { %5555 = vmatprep.mubr.msk.f32.mxu1 %vm2987_vm8, %v6009_v8 }
 0xc94   : > { %3019 = vadd.xlane.f32.xlu1 %v3018_v5 }
 0xc96   : > { %5556 = vmatmul.mubr.msk.f32.gmra.mrb[50].mxu1 %vm2987_vm8, %v6007_v38 }
 0xc97   : > { %4217 = vmatprep.mubr.bf16.mxu1 %v6122_v39 }
 0xccf   : > { %v7062_v16 = vpop.f32.mrb[36].mxu1 }
 0xcd0   : > { %v7064_v32 = vpop.f32.mrb[37].mxu1 }
 0xcd6   : > { %v7066_v17 = vpop.f32.mrb[38].mxu1 }
 0xcd7   : > { %v7068_v4 = vpop.f32.mrb[39].mxu1 }
 0xd00   : > { %v3266_v19 = vpop.xlane.xlu0 %3265 }
 0xd01   : > { %v3263_v63 = vpop.xlane.xlu1 %3262  ;;  %6010 = vrcp.f32 %v3266_v19 }
 0xd02   : > { %6012 = vrcp.f32 %v3263_v63 }
 0xd04   : > { %v3272_v35 = vpop.xlane.xlu0 %3271 }
 0xd05   : > { %v3269_v37 = vpop.xlane.xlu1 %3268  ;;  %6014 = vrcp.f32 %v3272_v35 }
 0xd06   : > { %6016 = vrcp.f32 %v3269_v37 }
 0xd08   : > { %v3515_v42 = vpop.xlane.xlu0 %3514 }
 0xd09   : > { %v3512_v61 = vpop.xlane.xlu1 %3511  ;;  %6018 = vrcp.f32 %v3515_v42 }
 0xd0a   : > { %6020 = vrcp.f32 %v3512_v61 }
 0xd0b   : > { %v6011_v29 = vpop.eup %6010 }
 0xd0c   : > { %v3521_v46 = vpop.xlane.xlu0 %3520  ;;  %v6013_v54 = vpop.eup %6012 }
 0xd0d   : > { %v3518_v48 = vpop.xlane.xlu1 %3517  ;;  %6022 = vrcp.f32 %v3521_v46 }
 0xd0e   : > { %6024 = vrcp.f32 %v3518_v48 }
 0xd0f   : > { %v6015_v58 = vpop.eup %6014 }
 0xd10   : > { %v6017_v62 = vpop.eup %6016 }
 0xd11   : > { %v3764_v49 = vpop.xlane.xlu0 %3763 }
 0xd12   : > { %v3761_v50 = vpop.xlane.xlu1 %3760  ;;  %6026 = vrcp.f32 %v3764_v49 }
 0xd13   : > { %6028 = vrcp.f32 %v3761_v50  ;;  %v6019_v22 = vpop.eup %6018 }
 0xd14   : > { %v6021_v59 = vpop.eup %6020 }
 0xd15   : > { %v3770_v2 = vpop.xlane.xlu0 %3769 }
 0xd16   : > { %6030 = vrcp.f32 %v3770_v2 }
 0xd17   : > { %v6023_v33 = vpop.eup %6022 }
 0xd18   : > { %v6025_v20 = vpop.eup %6024 }
 0xd19   : > { %v3767_v26 = vpop.xlane.xlu1 %3766  ;;  %v3017_v48 = vpop.xlane.xlu0 %3016 }
 0xd1a   : > { %6032 = vrcp.f32 %v3767_v26 }
 0xd1b   : > { %6034 = vrcp.f32 %v3017_v48 }
 0xd1c   : > { %v6027_v11 = vpop.eup %6026 }
 0xd1d   : > { %v6029_v8 = vpop.eup %6028  ;;  %v3014_v46 = vpop.xlane.xlu1 %3013 }
 0xd1e   : > { %6036 = vrcp.f32 %v3014_v46 }
 0xd20   : > { %v6031_v56 = vpop.eup %6030 }
 0xd24   : > { %v6033_v63 = vpop.eup %6032 }
 0xd55   : > { %v5522_v53 = vpop.f32.mrb[40].mxu1 }
 0xd56   : > { %v3378_v18 = vmul.f32 %v6011_v29, %v5522_v53  ;;  %v3358_v21 = vpop.f32.mrb[41].mxu1  ;;  %v3020_v29 = vpop.xlane.xlu1 %3019 }
 0xd57   : > { %v3377_v57 = vmul.f32 %v6013_v54, %v3358_v21  ;;  %v3023_v53 = vpop.xlane.xlu0 %3022 }
 0xd58   : > { %6038 = vrcp.f32 %v3023_v53 }
 0xd59   : > { %v5812_v41 = vpack.i.bf16 %v3378_v18, %v3377_v57  ;;  %v5525_v60 = vpop.f32.mrb[42].mxu1  ;;  %6040 = vrcp.f32 %v3020_v29  ;;  %v6035_v18 = vpop.eup %6034 }
 0xd5a   : > { %v3380_v0 = vmul.f32 %v6015_v58, %v5525_v60  ;;  %v3368_v1 = vpop.f32.mrb[43].mxu1  ;;  %v6037_v21 = vpop.eup %6036 }
 0xd5b   : > { %v3379_v44 = vmul.f32 %v6017_v62, %v3368_v1  ;;  %5813 = vrot.lane.b32.xlu1 %v5812_v41, %s6128_s5  ;;  %v3128_v50 = vmul.f32 %v6037_v21, %v7064_v32  ;;  %v3129_v41 = vmul.f32 %v6035_v18, %v7062_v16 }
 0xd5d   : > { %v5817_v25 = vpack.i.bf16 %v3380_v0, %v3379_v44  ;;  %v5538_v47 = vpop.f32.mrb[44].mxu1 }
 0xd5e   : > { %v3627_v3 = vmul.f32 %v6019_v22, %v5538_v47  ;;  %v3607_v24 = vpop.f32.mrb[45].mxu1 }
 0xd5f   : > { %v3626_v30 = vmul.f32 %v6021_v59, %v3607_v24  ;;  %5818 = vrot.lane.b32.xlu0 %v5817_v25, %s6128_s5 }
 0xd61   : > { %v5822_v28 = vpack.i.bf16 %v3627_v3, %v3626_v30  ;;  %v5541_v43 = vpop.f32.mrb[46].mxu1 }
 0xd62   : > { %v3629_v23 = vmul.f32 %v6023_v33, %v5541_v43  ;;  %v3617_v52 = vpop.f32.mrb[47].mxu1  ;;  %v6039_v1 = vpop.eup %6038 }
 0xd63   : > { %v3628_v34 = vmul.f32 %v6025_v20, %v3617_v52  ;;  %5823 = vrot.lane.b32.xlu1 %v5822_v28, %s6125_s23  ;;  %v6041_v27 = vpop.eup %6040  ;;  %v3131_v30 = vmul.f32 %v6039_v1, %v7066_v17 }
 0xd64   : > { %v3130_v31 = vmul.f32 %v6041_v27, %v7068_v4 }
 0xd65   : > { %v5827_v38 = vpack.i.bf16 %v3629_v23, %v3628_v34  ;;  %v5554_v7 = vpop.f32.mrb[48].mxu1 }
 0xd66   : > { %v3876_v9 = vmul.f32 %v6027_v11, %v5554_v7  ;;  %v3856_v10 = vpop.f32.mrb[49].mxu1 }
 0xd67   : > { %v3875_v14 = vmul.f32 %v6029_v8, %v3856_v10  ;;  %5828 = vrot.lane.b32.xlu1 %v5827_v38, %s6125_s23 }
 0xd69   : > { %v5832_v5 = vpack.i.bf16 %v3876_v9, %v3875_v14  ;;  %v5557_v19 = vpop.f32.mrb[50].mxu1  ;;  %v5125_v9 = vld [vmem:[%s7398_s24] ss:$0 sm:$0xff]  ;;  %s7406_s24 = sld [smem:[#allocation32_spill]] (!%p5155_p8) }
 0xd6a   : > { %v3878_v35 = vmul.f32 %v6031_v56, %v5557_v19  ;;  %v3866_v37 = vpop.f32.mrb[51].mxu1 }
 0xd6b   : > { %v3877_v42 = vmul.f32 %v6033_v63, %v3866_v37  ;;  %5833 = vrot.lane.b32.xlu1 %v5832_v5, %s6123_s19 }
 0xd6d   : > { %v5837_v61 = vpack.i.bf16 %v3878_v35, %v3877_v42 }
 0xd6f   : > { %5838 = vrot.lane.b32.xlu0 %v5837_v61, %s6123_s19 }
 0xdcd   : > { %v5814_v54 = vpop.permute.xlu1 %5813 }
 0xdce   : > { %v5816_v55 = vunpack.i.h.bf16 %v5814_v54  ;;  %v5815_v57 = vunpack.i.l.bf16 %v5814_v54 }
 0xdd0   : > { %v3927_v44 = vsel %vm1387_vm2, %v3128_v50, %v5815_v57  ;;  %v3928_v2 = vsel %vm1387_vm2, %v3129_v41, %v5816_v55 }
 0xdd1   : > { %v5819_v60 = vpop.permute.xlu0 %5818 }
 0xdd2   : > { %v5821_v26 = vunpack.i.h.bf16 %v5819_v60  ;;  %v5820_v25 = vunpack.i.l.bf16 %v5819_v60 }
 0xdd4   : > { %v3930_v23 = vsel %vm1387_vm2, %v3131_v30, %v5821_v26  ;;  %v3929_v52 = vsel %vm1387_vm2, %v3130_v31, %v5820_v25  ;;  %v5872_v26 = vld [vmem:[%s6393_s10 + $0x4] ss:$8 sps:$4 sm:$0xff]   ;;  %v5870_v25 = vld [vmem:[%s6393_s10] ss:$8 sps:$4 sm:$0xff]  }
 0xdd5   : > { %v5824_v49 = vpop.permute.xlu1 %5823  ;;  %4185 = vmatprep.subr.bf16.mxu1 %v5872_v26 }
 0xdd6   : > { %v5826_v62 = vunpack.i.h.bf16 %v5824_v49  ;;  %v5825_v0 = vunpack.i.l.bf16 %v5824_v49  ;;  %4186 = vmatpush1.bf16.msra.mxu1 %v5870_v25 }
 0xdd8   : > { %v3931_v3 = vsel %vm1497_vm5, %v3927_v44, %v5825_v0  ;;  %v3932_v32 = vsel %vm1497_vm5, %v3928_v2, %v5826_v62 }
 0xdd9   : > { %v5829_v58 = vpop.permute.xlu1 %5828 }
 0xdda   : > { %v5831_v24 = vunpack.i.h.bf16 %v5829_v58  ;;  %v5830_v16 = vunpack.i.l.bf16 %v5829_v58 }
 0xddc   : > { %v3933_v11 = vsel %vm1497_vm5, %v3929_v52, %v5830_v16  ;;  %v3934_v38 = vsel %vm1497_vm5, %v3930_v23, %v5831_v24  ;;  %v5881_v24 = vld [vmem:[%s6393_s10 + $0x34] ss:$8 sps:$4 sm:$0xff]   ;;  %v5879_v16 = vld [vmem:[%s6393_s10 + $0x30] ss:$8 sps:$4 sm:$0xff]  }
 0xddd   : > { %v5834_v22 = vpop.permute.xlu1 %5833 }
 0xdde   : > { %v5836_v47 = vunpack.i.h.bf16 %v5834_v22  ;;  %v5835_v59 = vunpack.i.l.bf16 %v5834_v22 }
 0xde0   : > { %v3935_v33 = vsel %vm2521_vm6, %v3931_v3, %v5835_v59  ;;  %v3936_v28 = vsel %vm2521_vm6, %v3932_v32, %v5836_v47  ;;  %v5875_v47 = vld [vmem:[%s6393_s10 + $0x14] ss:$8 sps:$4 sm:$0xff]   ;;  %v5873_v59 = vld [vmem:[%s6393_s10 + $0x10] ss:$8 sps:$4 sm:$0xff]   ;;  %v5878_v3 = vld [vmem:[%s6393_s10 + $0x24] ss:$8 sps:$4 sm:$0xff]  }
 0xde1   : > { %v3939_v43 = vpack.c.bf16 %v3936_v28, %v3935_v33  ;;  %v5839_v20 = vpop.permute.xlu0 %5838  ;;  %4187 = vmatprep.subr.bf16.mxu1 %v5875_v47  ;;  %v5876_v32 = vld [vmem:[%s6393_s10 + $0x20] ss:$8 sps:$4 sm:$0xff]  }
 0xde2   : > { %v5841_v6 = vunpack.i.h.bf16 %v5839_v20  ;;  %v5840_v34 = vunpack.i.l.bf16 %v5839_v20  ;;  %4188 = vmatpush1.bf16.msra.mxu1 %v5873_v59 }
 0xde3   : > { %5566 = vmatprep.mubr.msk.bf16.mxu0 %vm1174_vm1, %v3939_v43  ;;  %4189 = vmatprep.subr.bf16.mxu1 %v5878_v3 }
 0xde4   : > { %v3937_v17 = vsel %vm2521_vm6, %v3933_v11, %v5840_v34  ;;  %v3938_v4 = vsel %vm2521_vm6, %v3934_v38, %v5841_v6 }
 0xde5   : > { %v3940_v7 = vpack.c.bf16 %v3938_v4, %v3937_v17  ;;  %v5126_v4 = vld [vmem:[%s7399_s29] ss:$0 sm:$0xff]  ;;  %s7407_s29 = sld [smem:[#allocation34_spill]] (!%p5155_p8) }
 0xde6   : > { %4190 = vmatpush1.bf16.msra.mxu1 %v5876_v32 }
 0xde7   : > { %5567 = vmatmul.mubr.msk.bf16.vlgmr.msra.gmra.mrb[32].mxu0 %vm1174_vm1, %v3940_v7  ;;  %4191 = vmatprep.subr.bf16.mxu1 %v5881_v24 }
 0xdea   : > { %4192 = vmatpush1.bf16.msra.mxu1 %v5879_v16 }
 0xeba   : > { %v5568_v8 = vpop.f32.mrb[32].mxu0 }
 0xebb   : > { %v4013_v10 = vpop.f32.mrb[33].mxu0  ;;  %v4030_v19 = vadd.f32 %v5568_v8, %v6821_v51 }
 0xebc   : > { %v4028_v14 = vadd.f32 %v4013_v10, %v6819_v40  ;;  %v5569_v56 = vpop.f32.mrb[34].mxu0 }
 0xebd   : > { %v4016_v5 = vpop.f32.mrb[35].mxu0  ;;  %v7112_v61 = vadd.f32 %v5125_v9, %v4030_v19  ;;  %v4031_v46 = vadd.f32 %v5569_v56, %v6829_v45 }
 0xebe   : > { %v7105_v63 = vadd.f32 %v5125_v9, %v4028_v14  ;;  %v4029_v35 = vadd.f32 %v4016_v5, %v6823_v36  ;;  %v5127_v14 = vld [vmem:[%s7401_s7] ss:$0 sm:$0xff] }
 0xebf   : > { %v7117_v48 = vadd.f32 %v5125_v9, %v4031_v46  ;;  %v4049_v51 = vsel %vm1174_vm1, %v7112_v61, 0.0 }
 0xec0   : > { %v7108_v37 = vadd.f32 %v5125_v9, %v4029_v35  ;;  %v4043_v42 = vsel %vm1174_vm1, %v7105_v63, 0.0 }
 0xec1   : > { %4044 = vadd.xlane.f32.xlu1 %v4043_v42  ;;  %v4052_v36 = vsel %vm1174_vm1, %v7117_v48, 0.0 }
 0xec2   : > { %v4046_v40 = vsel %vm1174_vm1, %v7108_v37, 0.0 }
 0xec3   : > { %4047 = vadd.xlane.f32.xlu0 %v4046_v40 }
 0xec7   : > { %4050 = vadd.xlane.f32.xlu0 %v4049_v51 }
 0xecb   : > { %4053 = vadd.xlane.f32.xlu0 %v4052_v36 }
 0xf4e   : > { %v4045_v29 = vpop.xlane.xlu1 %4044 }
 0xf4f   : > { %v4055_v53 = vmul.f32 0.015625, %v4045_v29 }
 0xf50   : > { %v4048_v54 = vpop.xlane.xlu0 %4047 }
 0xf51   : > { %v4059_v49 = vsub.f32 %v7105_v63, %v4055_v53  ;;  %v4056_v45 = vmul.f32 0.015625, %v4048_v54 }
 0xf53   : > { %v4060_v18 = vsub.f32 %v7108_v37, %v4056_v45  ;;  %v4063_v21 = vmul.f32 %v4059_v49, %v4059_v49  ;;  %v5882_v45 = vld [vmem:[%s6404_s22 + $0x40] sm:$0xff]  }
 0xf54   : > { %v4051_v55 = vpop.xlane.xlu0 %4050  ;;  %5312 = vmatprep.subr.bf16.mxu0 %v5882_v45 }
 0xf55   : > { %v4057_v57 = vmul.f32 0.015625, %v4051_v55  ;;  %v4067_v58 = vsel %vm1174_vm1, %v4063_v21, 0.0  ;;  %v4064_v50 = vmul.f32 %v4060_v18, %v4060_v18  ;;  %v5884_v21 = vld [vmem:[%s6404_s22 + $0x48] sm:$0xff]  }
 0xf56   : > { %4068 = vadd.xlane.f32.xlu1 %v4067_v58  ;;  %v5885_v55 = vld [vmem:[%s6404_s22 + $0x8] sm:$0xff]   ;;  %v5888_v58 = vld [vmem:[%s6404_s22 + $0x58] sm:$0xff]  }
 0xf57   : > { %v4061_v41 = vsub.f32 %v7112_v61, %v4057_v57  ;;  %v4070_v60 = vsel %vm1174_vm1, %v4064_v50, 0.0  ;;  %v5887_v57 = vld [vmem:[%s6404_s22 + $0x10] sm:$0xff]   ;;  %v5889_v50 = vld [vmem:[%s6404_s22 + $0x18] sm:$0xff]  }
 0xf58   : > { %4071 = vadd.xlane.f32.xlu0 %v4070_v60  ;;  %v4054_v62 = vpop.xlane.xlu0 %4053  ;;  %v5891_v60 = vld [vmem:[%s6404_s22 + $0x20] sm:$0xff]  }
 0xf59   : > { %v4058_v0 = vmul.f32 0.015625, %v4054_v62  ;;  %v4065_v1 = vmul.f32 %v4061_v41, %v4061_v41  ;;  %v5892_v62 = vld [vmem:[%s6404_s22 + $0x68] sm:$0xff]  }
 0xf5b   : > { %v4062_v27 = vsub.f32 %v7117_v48, %v4058_v0  ;;  %v4073_v44 = vsel %vm1174_vm1, %v4065_v1, 0.0  ;;  %v5893_v0 = vld [vmem:[%s6404_s22 + $0x28] sm:$0xff]   ;;  %v5894_v1 = vld [vmem:[%s6404_s22 + $0x70] sm:$0xff]  }
 0xf5c   : > { %4074 = vadd.xlane.f32.xlu1 %v4073_v44  ;;  %v5896_v44 = vld [vmem:[%s6404_s22 + $0x78] sm:$0xff]  }
 0xf5d   : > { %v4066_v2 = vmul.f32 %v4062_v27, %v4062_v27 }
 0xf5f   : > { %v4076_v22 = vsel %vm1174_vm1, %v4066_v2, 0.0  ;;  %v5897_v2 = vld [vmem:[%s6404_s22 + $0x38] sm:$0xff]  }
 0xf60   : > { %4077 = vadd.xlane.f32.xlu0 %v4076_v22  ;;  %v4127_v22 = vld [vmem:[%s6398_s12] sm:$0x3] }
 0xf61   : > { %v4132_v26 = vrot.slane %v4127_v22, %v1264_v13  ;;  %v4136_v25 = vrot.slane %v4127_v22, %v1268_v15 }
 0xfe3   : > { %v4069_v31 = vpop.xlane.xlu1 %4068 }
 0xfe4   : > { %v4079_v30 = vmul.f32 0.015625, %v4069_v31 }
 0xfe5   : > { %v4072_v33 = vpop.xlane.xlu0 %4071 }
 0xfe6   : > { %v4083_v28 = vadd.f32 1e-05, %v4079_v30  ;;  %v4080_v43 = vmul.f32 0.015625, %v4072_v33 }
 0xfe8   : > { %6042 = vrsqrt.f32 %v4083_v28  ;;  %v4084_v20 = vadd.f32 1e-05, %v4080_v43 }
 0xfe9   : > { %v4075_v23 = vpop.xlane.xlu1 %4074 }
 0xfea   : > { %6044 = vrsqrt.f32 %v4084_v20  ;;  %v4081_v52 = vmul.f32 0.015625, %v4075_v23 }
 0xfec   : > { %v4085_v6 = vadd.f32 1e-05, %v4081_v52 }
 0xfed   : > { %v4078_v34 = vpop.xlane.xlu0 %4077 }
 0xfee   : > { %6046 = vrsqrt.f32 %v4085_v6  ;;  %v4082_v11 = vmul.f32 0.015625, %v4078_v34 }
 0xff0   : > { %v4086_v38 = vadd.f32 1e-05, %v4082_v11 }
 0xff2   : > { %v6043_v17 = vpop.eup %6042  ;;  %6048 = vrsqrt.f32 %v4086_v38 }
 0xff3   : > { %v4091_v7 = vmul.f32 %v6043_v17, %v4059_v49 }
 0xff4   : > { %v6045_v8 = vpop.eup %6044 }
 0xff5   : > { %v4102_v9 = vmul.f32 %v5126_v4, %v4091_v7  ;;  %v4092_v10 = vmul.f32 %v6045_v8, %v4060_v18  ;;  %v5883_v18 = vld [vmem:[%s6404_s22] sm:$0xff]  }
 0xff6   : > { %5313 = vmatpush3.bf16.msra.mxu0 %v5883_v18 }
 0xff7   : > { %v4103_v56 = vmul.f32 %v5126_v4, %v4092_v10  ;;  %v4113_v19 = vadd.f32 %v5127_v14, %v4102_v9  ;;  %5314 = vmatprep.subr.bf16.mxu0 %v5884_v21 }
 0xff8   : > { %v6047_v5 = vpop.eup %6046 }
 0xff9   : > { %v4114_v35 = vadd.f32 %v5127_v14, %v4103_v56  ;;  %v4093_v42 = vmul.f32 %v6047_v5, %v4061_v41  ;;  %v5890_v41 = vld [vmem:[%s6404_s22 + $0x60] sm:$0xff]  }
 0xffa   : > { %5315 = vmatpush3.bf16.msra.mxu0 %v5885_v55 }
 0xffb   : > { %v4117_v46 = vpack.c.bf16 %v4114_v35, %v4113_v19  ;;  %v4104_v36 = vmul.f32 %v5126_v4, %v4093_v42 }
 0xffc   : > { %v6049_v40 = vpop.eup %6048 }
 0xffd   : > { %v4094_v51 = vmul.f32 %v6049_v40, %v4062_v27  ;;  %5136 = vmatmul.mubr.msk.bf16.vlgmr.msra.gmra.mrb[52].mxu1 %vm1174_vm1, %v4117_v46  ;;  %v4115_v53 = vadd.f32 %v5127_v14, %v4104_v36  ;;  %v5895_v27 = vld [vmem:[%s6404_s22 + $0x30] sm:$0xff]  }
 0xffe   : > { %4227 = vmatprep.mubr.bf16.mxu1 %v6122_v39  ;;  %v5886_v39 = vld [vmem:[%s6404_s22 + $0x50] sm:$0xff]  }
 0xfff   : > { %v4105_v29 = vmul.f32 %v5126_v4, %v4094_v51  ;;  %5316 = vmatprep.subr.bf16.mxu0 %v5886_v39 }
0x1000   : > { %5317 = vmatpush3.bf16.msra.mxu0 %v5887_v57 }
0x1001   : > { %v4116_v54 = vadd.f32 %v5127_v14, %v4105_v29  ;;  %5318 = vmatprep.subr.bf16.mxu0 %v5888_v58 }
0x1003   : > { %v4118_v49 = vpack.c.bf16 %v4116_v54, %v4115_v53 }
0x1004   : > { %5319 = vmatpush3.bf16.msra.mxu0 %v5889_v50 }
0x1005   : > { %5137 = vmatmul.mubr.msk.bf16.gmra.mrb[56].mxu1 %vm1174_vm1, %v4118_v49  ;;  %5320 = vmatprep.subr.bf16.mxu0 %v5890_v41 }
0x1008   : > { %5321 = vmatpush3.bf16.msra.mxu0 %v5891_v60 }
0x1009   : > { %5322 = vmatprep.subr.bf16.mxu0 %v5892_v62 }
0x100c   : > { %5323 = vmatpush3.bf16.msra.mxu0 %v5893_v0 }
0x100d   : > { %5324 = vmatprep.subr.bf16.mxu0 %v5894_v1 }
0x1010   : > { %5325 = vmatpush3.bf16.msra.mxu0 %v5895_v27 }
0x1011   : > { %5326 = vmatprep.subr.bf16.mxu0 %v5896_v44 }
0x1014   : > { %5327 = vmatpush3.bf16.msra.mxu0 %v5897_v2 }
0x10d0   : > { %v4219_v47 = vpop.f32.mrb[52].mxu1 }
0x10d1   : > { %v7173_v59 = vadd.f32 %v4219_v47, %v4132_v26  ;;  %v4221_v3 = vpop.f32.mrb[53].mxu1 }
0x10d2   : > { %v7175_v32 = vadd.f32 %v4221_v3, %v4136_v25  ;;  %v4223_v24 = vpop.f32.mrb[54].mxu1 }
0x10d3   : > { %v4238_v16 = vmul.f32 %v7173_v59, %v7173_v59  ;;  %v7179_v31 = vadd.f32 %v4223_v24, %v4132_v26  ;;  %v4225_v30 = vpop.f32.mrb[55].mxu1 }
0x10d4   : > { %v4239_v33 = vmul.f32 %v7175_v32, %v7175_v32  ;;  %v7183_v13 = vadd.f32 %v4225_v30, %v4136_v25 }
0x10d5   : > { %v4246_v12 = vmul.f32 %v4238_v16, %v7173_v59  ;;  %v4240_v15 = vmul.f32 %v7179_v31, %v7179_v31 }
0x10d6   : > { %v4247_v28 = vmul.f32 %v4239_v33, %v7175_v32  ;;  %v4241_v43 = vmul.f32 %v7183_v13, %v7183_v13 }
0x10d7   : > { %v4254_v20 = vmul.f32 0.044715, %v4246_v12  ;;  %v4248_v23 = vmul.f32 %v4240_v15, %v7179_v31 }
0x10d8   : > { %v4255_v52 = vmul.f32 0.044715, %v4247_v28  ;;  %v4249_v6 = vmul.f32 %v4241_v43, %v7183_v13  ;;  %v4229_v34 = vpop.f32.mrb[56].mxu1 }
0x10d9   : > { %v4262_v11 = vadd.f32 %v4254_v20, %v7173_v59  ;;  %v4256_v38 = vmul.f32 0.044715, %v4248_v23  ;;  %v7194_v17 = vadd.f32 %v4229_v34, %v4132_v26  ;;  %v4231_v4 = vpop.f32.mrb[57].mxu1 }
0x10da   : > { %v4263_v7 = vadd.f32 %v4255_v52, %v7175_v32  ;;  %v4257_v8 = vmul.f32 0.044715, %v4249_v6  ;;  %v7197_v9 = vadd.f32 %v4231_v4, %v4136_v25  ;;  %v4233_v10 = vpop.f32.mrb[58].mxu1 }
0x10db   : > { %v4270_v14 = vmul.f32 0.7978846, %v4262_v11  ;;  %v4264_v56 = vadd.f32 %v4256_v38, %v7179_v31  ;;  %v4242_v5 = vmul.f32 %v7194_v17, %v7194_v17  ;;  %v7202_v19 = vadd.f32 %v4233_v10, %v4132_v26  ;;  %v4235_v35 = vpop.f32.mrb[59].mxu1 }
0x10dc   : > { %v4271_v42 = vmul.f32 0.7978846, %v4263_v7  ;;  %v4265_v46 = vadd.f32 %v4257_v8, %v7183_v13  ;;  %v4243_v40 = vmul.f32 %v7197_v9, %v7197_v9  ;;  %v7207_v51 = vadd.f32 %v4235_v35, %v4136_v25 }
0x10dd   : > { %6050 = vtanh.f32 %v4270_v14  ;;  %v4272_v36 = vmul.f32 0.7978846, %v4264_v56  ;;  %v4250_v29 = vmul.f32 %v4242_v5, %v7194_v17  ;;  %v4244_v53 = vmul.f32 %v7202_v19, %v7202_v19 }
0x10de   : > { %6052 = vtanh.f32 %v4271_v42  ;;  %v4273_v54 = vmul.f32 0.7978846, %v4265_v46  ;;  %v4251_v49 = vmul.f32 %v4243_v40, %v7197_v9  ;;  %v4245_v45 = vmul.f32 %v7207_v51, %v7207_v51 }
0x10df   : > { %6054 = vtanh.f32 %v4272_v36  ;;  %v4258_v18 = vmul.f32 0.044715, %v4250_v29  ;;  %v4252_v21 = vmul.f32 %v4244_v53, %v7202_v19 }
0x10e0   : > { %6056 = vtanh.f32 %v4273_v54  ;;  %v4259_v55 = vmul.f32 0.044715, %v4251_v49  ;;  %v4253_v39 = vmul.f32 %v4245_v45, %v7207_v51  ;;  %v5154_v49 = vld [vmem:[%s1143_s8] ss:$0 sm:$0xff] }
0x10e1   : > { %v4266_v57 = vadd.f32 %v4258_v18, %v7194_v17  ;;  %v4260_v58 = vmul.f32 0.044715, %v4252_v21 }
0x10e2   : > { %v4267_v50 = vadd.f32 %v4259_v55, %v7197_v9  ;;  %v4261_v41 = vmul.f32 0.044715, %v4253_v39 }
0x10e3   : > { %v4274_v60 = vmul.f32 0.7978846, %v4266_v57  ;;  %v4268_v62 = vadd.f32 %v4260_v58, %v7202_v19 }
0x10e4   : > { %v4275_v0 = vmul.f32 0.7978846, %v4267_v50  ;;  %v4269_v1 = vadd.f32 %v4261_v41, %v7207_v51 }
0x10e5   : > { %6058 = vtanh.f32 %v4274_v60  ;;  %v4276_v27 = vmul.f32 0.7978846, %v4268_v62 }
0x10e6   : > { %6060 = vtanh.f32 %v4275_v0  ;;  %v4277_v44 = vmul.f32 0.7978846, %v4269_v1 }
0x10e7   : > { %v6051_v2 = vpop.eup %6050  ;;  %6062 = vtanh.f32 %v4276_v27 }
0x10e8   : > { %v6053_v22 = vpop.eup %6052  ;;  %v4286_v26 = vadd.f32 1.0, %v6051_v2  ;;  %6064 = vtanh.f32 %v4277_v44 }
0x10e9   : > { %v6055_v25 = vpop.eup %6054  ;;  %v4287_v47 = vadd.f32 1.0, %v6053_v22 }
0x10ea   : > { %v6057_v3 = vpop.eup %6056  ;;  %v4294_v24 = vmul.f32 0.5, %v4286_v26  ;;  %v4288_v16 = vadd.f32 1.0, %v6055_v25 }
0x10eb   : > { %v4289_v30 = vadd.f32 1.0, %v6057_v3  ;;  %v4295_v33 = vmul.f32 0.5, %v4287_v47 }
0x10ec   : > { %v4296_v12 = vmul.f32 0.5, %v4288_v16  ;;  %v4302_v28 = vmul.f32 %v4294_v24, %v7173_v59 }
0x10ed   : > { %v4297_v15 = vmul.f32 0.5, %v4289_v30  ;;  %v4303_v23 = vmul.f32 %v4295_v33, %v7175_v32 }
0x10ee   : > { %v4304_v43 = vmul.f32 %v4296_v12, %v7179_v31 }
0x10ef   : > { %v6059_v20 = vpop.eup %6058  ;;  %v4305_v52 = vmul.f32 %v4297_v15, %v7183_v13 }
0x10f0   : > { %v6061_v6 = vpop.eup %6060  ;;  %v4310_v34 = vpack.c.bf16 %v4304_v43, %v4302_v28  ;;  %v4290_v11 = vadd.f32 1.0, %v6059_v20 }
0x10f1   : > { %v6063_v38 = vpop.eup %6062  ;;  %v4311_v4 = vpack.c.bf16 %v4305_v52, %v4303_v23  ;;  %v4291_v7 = vadd.f32 1.0, %v6061_v6  ;;  %v6070_v6 = vld [vmem:[%s7404_s4] sm:$0xff] (!%p5155_p8)  }
0x10f2   : > { %v6065_v8 = vpop.eup %6064  ;;  %v4292_v10 = vadd.f32 1.0, %v6063_v38  ;;  %v4298_v14 = vmul.f32 0.5, %v4290_v11  ;;  %5570 = vmatprep.subr.bf16.mxu0 (!%p5155_p8), %v6070_v6  ;;  %v6072_v11 = vld [vmem:[%s7404_s4 + $0x10] sm:$0xff] (!%p5155_p8)   ;;  %v6073_v38 = vld [vmem:[%s7404_s4 + $0x18] sm:$0xff] (!%p5155_p8)  }
0x10f3   : > { %4474 = vmatprep.mubr.bf16.mxu0 %v4311_v4  ;;  %v4293_v56 = vadd.f32 1.0, %v6065_v8  ;;  %v4299_v5 = vmul.f32 0.5, %v4291_v7 }
0x10f4   : > { %4475 = vmatmul.mubr.bf16.vlgmr.msra.gmra.mrb[36].mxu0 %v4310_v34  ;;  %v4300_v59 = vmul.f32 0.5, %v4292_v10  ;;  %v4306_v32 = vmul.f32 %v4298_v14, %v7194_v17  ;;  %v6071_v34 = vld [vmem:[%s7404_s4 + $0x8] sm:$0xff] (!%p5155_p8)  }
0x10f5   : > { %v4301_v31 = vmul.f32 0.5, %v4293_v56  ;;  %v4307_v35 = vmul.f32 %v4299_v5, %v7197_v9  ;;  %5571 = vmatpush3.bf16.msra.mxu0 (!%p5155_p8), %v6070_v6 }
0x10f6   : > { %v4308_v13 = vmul.f32 %v4300_v59, %v7202_v19  ;;  %5572 = vmatprep.subr.bf16.mxu0 (!%p5155_p8), %v6071_v34 }
0x10f7   : > { %v4309_v42 = vmul.f32 %v4301_v31, %v7207_v51 }
0x10f8   : > { %v4312_v46 = vpack.c.bf16 %v4308_v13, %v4306_v32 }
0x10f9   : > { %v4313_v40 = vpack.c.bf16 %v4309_v42, %v4307_v35  ;;  %5573 = vmatpush3.bf16.msra.mxu0 (!%p5155_p8), %v6071_v34 }
0x10fa   : > { %5574 = vmatprep.subr.bf16.mxu0 (!%p5155_p8), %v6072_v11 }
0x10fb   : > { %4482 = vmatprep.mubr.bf16.mxu0 %v4313_v40  ;;  %v5156_v40 = vld [vmem:[%s7405_s27] ss:$0 sm:$0xff] (!%p5155_p8) }
0x10fc   : > { %4483 = vmatmul.mubr.bf16.gmra.mrb[40].mxu0 %v4312_v46 }
0x10fd   : > { %5575 = vmatpush3.bf16.msra.mxu0 (!%p5155_p8), %v6072_v11 }
0x10fe   : > { %5576 = vmatprep.subr.bf16.mxu0 (!%p5155_p8), %v6073_v38 }
0x1101   : > { %5577 = vmatpush3.bf16.msra.mxu0 (!%p5155_p8), %v6073_v38 }
0x11c7   : > { %v5328_v36 = vpop.f32.mrb[36].mxu0 }
0x11c8   : > { %v5329_v29 = vpop.f32.mrb[37].mxu0 }
0x11c9   : > { %v5330_v53 = vadd.f32 %v5329_v29, %v5328_v36  ;;  %v5331_v54 = vpop.f32.mrb[38].mxu0 }
0x11ca   : > { %v5332_v17 = vpop.f32.mrb[39].mxu0 }
0x11cb   : > { %v4491_v19 = vadd.f32 %v5330_v53, %v7105_v63  ;;  %v5333_v45 = vadd.f32 %v5332_v17, %v5331_v54 }
0x11cd   : > { %v4502_v9 = vadd.f32 %v5154_v49, %v4491_v19  ;;  %v4492_v51 = vadd.f32 %v5333_v45, %v7108_v37 }
0x11cf   : > { %4506 = vst.msk [vmem:[#allocation2] sm:$0xff] %vm1174_vm1, %v4502_v9  ;;  %v4503_v18 = vadd.f32 %v5154_v49, %v4492_v51  ;;  %v5334_v21 = vpop.f32.mrb[40].mxu0  ;;  %v4514_v37 = vsel (!%p5155_p8), %vm1174_vm1, %v4502_v9, 0.0 }
0x11d0   : > { %v5335_v55 = vpop.f32.mrb[41].mxu0  ;;  %4515 = vadd.xlane.f32.xlu0 (!%p5155_p8), %v4514_v37 }
0x11d1   : > { %4507 = vst.msk [vmem:[#allocation2 + $0x8] sm:$0xff] %vm1174_vm1, %v4503_v18  ;;  %v5336_v39 = vadd.f32 %v5335_v55, %v5334_v21  ;;  %v5337_v57 = vpop.f32.mrb[42].mxu0  ;;  %v4517_v1 = vsel (!%p5155_p8), %vm1174_vm1, %v4503_v18, 0.0 }
0x11d2   : > { %v5338_v58 = vpop.f32.mrb[43].mxu0 }
0x11d3   : > { %v4493_v50 = vadd.f32 %v5336_v39, %v7112_v61  ;;  %v5339_v41 = vadd.f32 %v5338_v58, %v5337_v57  ;;  %4513 = sbr.rel (%p5155_p8) target bundleno = 5104 (0x13f0), region = 132 }
0x11d4   : > { %4518 = vadd.xlane.f32.xlu0 (!%p5155_p8), %v4517_v1 }
0x11d5   : > { %v4504_v60 = vadd.f32 %v5154_v49, %v4493_v50  ;;  %v4494_v63 = vadd.f32 %v5339_v41, %v7117_v48  ;;  %v5158_v41 = vld [vmem:[%s7407_s29] ss:$0 sm:$0xff] (!%p5155_p8) }
0x11d7   : > { %4508 = vst.msk [vmem:[#allocation2 + $0x10] sm:$0xff] %vm1174_vm1, %v4504_v60  ;;  %v4505_v62 = vadd.f32 %v5154_v49, %v4494_v63  ;;  %v4520_v0 = vsel (!%p5155_p8), %vm1174_vm1, %v4504_v60, 0.0  ;;  %v5157_v49 = vld [vmem:[%s7406_s24] ss:$0 sm:$0xff] (!%p5155_p8) }
0x11d8   : > { %4521 = vadd.xlane.f32.xlu1 (!%p5155_p8), %v4520_v0 }
0x11d9   : > { %4509 = vst.msk [vmem:[#allocation2 + $0x18] sm:$0xff] %vm1174_vm1, %v4505_v62  ;;  %v4523_v61 = vsel (!%p5155_p8), %vm1174_vm1, %v4505_v62, 0.0 }
0x11dc   : > { %4524 = vadd.xlane.f32.xlu1 %v4523_v61 }
0x125d   : > { %v4516_v48 = vpop.xlane.xlu0 %4515 }
0x125e   : > { %v4526_v44 = vmul.f32 0.015625, %v4516_v48 }
0x1260   : > { %v4530_v22 = vsub.f32 %v4502_v9, %v4526_v44 }
0x1261   : > { %v4519_v25 = vpop.xlane.xlu0 %4518 }
0x1262   : > { %v4527_v3 = vmul.f32 0.015625, %v4519_v25  ;;  %v4534_v16 = vmul.f32 %v4530_v22, %v4530_v22 }
0x1264   : > { %v4531_v33 = vsub.f32 %v4503_v18, %v4527_v3  ;;  %v4538_v15 = vsel %vm1174_vm1, %v4534_v16, 0.0 }
0x1265   : > { %v4522_v27 = vpop.xlane.xlu1 %4521  ;;  %4539 = vadd.xlane.f32.xlu0 %v4538_v15 }
0x1266   : > { %v4528_v2 = vmul.f32 0.015625, %v4522_v27  ;;  %v4535_v43 = vmul.f32 %v4531_v33, %v4531_v33 }
0x1268   : > { %v4532_v26 = vsub.f32 %v4504_v60, %v4528_v2  ;;  %v4541_v23 = vsel %vm1174_vm1, %v4535_v43, 0.0 }
0x1269   : > { %v4525_v47 = vpop.xlane.xlu1 %4524  ;;  %4542 = vadd.xlane.f32.xlu1 %v4541_v23 }
0x126a   : > { %v4529_v24 = vmul.f32 0.015625, %v4525_v47  ;;  %v4536_v30 = vmul.f32 %v4532_v26, %v4532_v26 }
0x126c   : > { %v4533_v12 = vsub.f32 %v4505_v62, %v4529_v24  ;;  %v4544_v28 = vsel %vm1174_vm1, %v4536_v30, 0.0 }
0x126d   : > { %4545 = vadd.xlane.f32.xlu0 %v4544_v28 }
0x126e   : > { %v4537_v20 = vmul.f32 %v4533_v12, %v4533_v12 }
0x1270   : > { %v4547_v52 = vsel %vm1174_vm1, %v4537_v20, 0.0 }
0x1271   : > { %4548 = vadd.xlane.f32.xlu1 %v4547_v52 }
0x12f2   : > { %v4540_v4 = vpop.xlane.xlu0 %4539 }
0x12f3   : > { %v4550_v7 = vmul.f32 0.015625, %v4540_v4 }
0x12f5   : > { %v4554_v8 = vadd.f32 1e-05, %v4550_v7 }
0x12f6   : > { %v4543_v10 = vpop.xlane.xlu1 %4542 }
0x12f7   : > { %6074 = vrsqrt.f32 %v4554_v8  ;;  %v4551_v56 = vmul.f32 0.015625, %v4543_v10 }
0x12f9   : > { %v4555_v59 = vadd.f32 1e-05, %v4551_v56 }
0x12fa   : > { %v4546_v14 = vpop.xlane.xlu0 %4545 }
0x12fb   : > { %v4552_v5 = vmul.f32 0.015625, %v4546_v14  ;;  %6076 = vrsqrt.f32 %v4555_v59 }
0x12fd   : > { %v4556_v31 = vadd.f32 1e-05, %v4552_v5 }
0x12fe   : > { %v4549_v32 = vpop.xlane.xlu1 %4548 }
0x12ff   : > { %v4553_v13 = vmul.f32 0.015625, %v4549_v32  ;;  %6078 = vrsqrt.f32 %v4556_v31 }
0x1301   : > { %v4557_v35 = vadd.f32 1e-05, %v4553_v13  ;;  %v6075_v42 = vpop.eup %6074 }
0x1302   : > { %v4562_v46 = vmul.f32 %v6075_v42, %v4530_v22 }
0x1303   : > { %6080 = vrsqrt.f32 %v4557_v35 }
0x1304   : > { %v4573_v54 = vmul.f32 %v5156_v40, %v4562_v46 }
0x1305   : > { %v6077_v36 = vpop.eup %6076 }
0x1306   : > { %v4563_v53 = vmul.f32 %v6077_v36, %v4531_v33  ;;  %v4584_v9 = vadd.f32 %v5157_v49, %v4573_v54 }
0x1308   : > { %v4574_v19 = vmul.f32 %v5156_v40, %v4563_v53 }
0x1309   : > { %v6079_v29 = vpop.eup %6078 }
0x130a   : > { %v4564_v17 = vmul.f32 %v6079_v29, %v4532_v26  ;;  %v4585_v51 = vadd.f32 %v5157_v49, %v4574_v19 }
0x130c   : > { %v4575_v21 = vmul.f32 %v5156_v40, %v4564_v17  ;;  %v4588_v55 = vpack.c.bf16 %v4585_v51, %v4584_v9 }
0x130d   : > { %v6081_v45 = vpop.eup %6080 }
0x130e   : > { %v4565_v18 = vmul.f32 %v6081_v45, %v4533_v12  ;;  %5578 = vmatprep.mubr.msk.bf16.mxu0 %vm1174_vm1, %v4588_v55  ;;  %v4586_v57 = vadd.f32 %v5157_v49, %v4575_v21 }
0x1310   : > { %v4576_v39 = vmul.f32 %v5156_v40, %v4565_v18 }
0x1312   : > { %v4587_v58 = vadd.f32 %v5157_v49, %v4576_v39 }
0x1314   : > { %v4589_v50 = vpack.c.bf16 %v4587_v58, %v4586_v57 }
0x1316   : > { %5579 = vmatmul.mubr.msk.bf16.vlgmr.msra.gmra.mrb[0].mxu0 %vm1174_vm1, %v4589_v50 }
0x13e9   : > { %v5580_v60 = vpop.f32.mrb[0].mxu0 }
0x13ea   : > { %v4678_v63 = vadd.f32 %v5580_v60, %v5158_v41  ;;  %v4669_v62 = vpop.f32.mrb[1].mxu0 }
0x13eb   : > { %v4670_v37 = vadd.f32 %v5158_v41, %v4669_v62  ;;  %v5581_v0 = vpop.f32.mrb[2].mxu0 }
0x13ec   : > { %4687 = vst.msk [vmem:[%s6414_s2 + $0x10] sm:$0xff] %vm4684_vm9, %v4678_v63  ;;  %v4681_v1 = vadd.f32 %v5581_v0, %v5158_v41  ;;  %v4672_v61 = vpop.f32.mrb[3].mxu0 }
0x13ed   : > { %4685 = vst.msk [vmem:[%s6414_s2] sm:$0xff] %vm4684_vm9, %v4670_v37  ;;  %v4673_v48 = vadd.f32 %v5158_v41, %v4672_v61 }
0x13ee   : > { %4688 = vst.msk [vmem:[%s6414_s2 + $0x18] sm:$0xff] %vm4684_vm9, %v4681_v1 }
0x13ef   : > { %4686 = vst.msk [vmem:[%s6414_s2 + $0x8] sm:$0xff] %vm4684_vm9, %v4673_v48 }
0x13f0 PF: > { %s7408_s21 = sld [smem:[#allocation6_spill]]  ;;  %s7409_s27 = sld [smem:[#allocation4_spill]] }
0x13f1   : > { %s7410_s3 = sld [smem:[#allocation5_spill]]  ;;  %s7411_s7 = sld [smem:[#allocation7_spill]] }
0x13f2   : > { %s7412_s28 = sld [smem:[#allocation8_spill]] }
0x13f6   : > { %s36_s8 = sadd.s32 1, %s7408_s21  }
0x13f7   : > { %p33_p9 = scmp.ge.s32.totalorder %s36_s8, 10  }
0x13f9   :  { %35 = sbr.rel (!%p33_p9) target bundleno = 24 (0x18), region = 225 }

</bundles_post_ra>
